<compile_context>
chip_gen: v7x
topology: tpu7x:2x2x1
jax: 0.10.0
libtpu: 0.0.40
codegen_flags: <defaults>
</compile_context>

<pallas_src>
from functools import partial

import jax
import jax.numpy as jnp
from jax.experimental import pallas as pl
from jax.experimental.pallas import tpu as pltpu

# Small, module-consistent shapes.
N, C, H, W = 2, 4, 16, 16
K = 3                       # 3x3 denoiser conv kernel
WP = W + 2                  # row stride of the flattened, width-padded layout
L = H * WP                  # 288-lane per-(channel) slab (lane-dense)
PAD_FLAT = (H + 2) * WP     # 324 = flattened zero-padded spatial extent
FLAT = 384                  # padded to a multiple of 128 (max tap offset 38 + 288 <= 384)
CENTER = WP + 1             # flat offset of tap (dy=1, dx=1) == the pixel itself


def _pnp_kernel(params_ref, xpad_ref, m_ref, out_ref, *, noisy: bool):
    """params (SMEM): [lamb, sigma/255, b(0..C-1), w.flatten()].

    xpad_ref: (C, N, FLAT)  zero-padded x, spatial dims flattened with stride WP
    m_ref:    (C, N, L)     inpainting mask in the same stride-WP layout
    out_ref:  (C, N, L)
    """
    lamb = params_ref[0]
    sigma_n = params_ref[1]            # sigma / 255
    tau = 1.0 / lamb                   # PNP.tau property

    # acc[co] accumulates sigma_n * (conv(x)[co] + b[co]); bias folded into init.
    accs = [jnp.full((N, L), sigma_n * params_ref[2 + co], dtype=jnp.float32)
            for co in range(C)]

    # Conv taps: (ci, dy, dx) outermost so each shifted slab is loaded once and
    # reused for all C output channels (36 loads total, 4-way accumulator ILP).
    for ci in range(C):
        for dy in range(K):
            for dx in range(K):
                off = dy * WP + dx
                xs = xpad_ref[ci, :, off:off + L]            # (N, L), static slice
                for co in range(C):
                    w_idx = 2 + C + ((co * C + ci) * K + dy) * K + dx
                    wv = sigma_n * params_ref[w_idx]         # scalar-unit fold
                    accs[co] = accs[co] + wv * xs

    # Elementwise PNP update + inpainting prox, written channel-by-channel.
    for co in range(C):
        xc = xpad_ref[co, :, CENTER:CENTER + L]   # x itself, same stride-WP layout
        z = xc - accs[co]                         # z == Dx (lamb * tau == 1)
        mc = m_ref[co]                            # mask M
        my = mc * xc                              # My = M * x, derived in-kernel
        if noisy:                                 # static branch on noise level
            prox = (tau * my + z) / (tau * mc + 1.0)
        else:
            prox = my + (1.0 - mc) * z
        out_ref[co] = prox                        # direct lane-dense store


def pnp_forward(x, M, w, b, lamb, sigma, noise_level_img):
    """x, M: (N,C,H,W) f32; w: (C,C,3,3); b: (C,)."""
    x = x.astype(jnp.float32)
    M = M.astype(jnp.float32)

    # --- wrapper-side layout plumbing (cheap, makes the kernel lane-dense) ---
    # channel-major + zero-padded spatial dims flattened with row stride WP.
    xt = jnp.transpose(x, (1, 0, 2, 3))                            # (C, N, H, W)
    xpad = jnp.pad(xt, ((0, 0), (0, 0), (1, 1), (1, 1)))           # (C, N, H+2, WP)
    xpad_flat = jnp.pad(xpad.reshape(C, N, PAD_FLAT),
                        ((0, 0), (0, 0), (0, FLAT - PAD_FLAT)))    # (C, N, 384)

    mt = jnp.transpose(M, (1, 0, 2, 3))                            # (C, N, H, W)
    m_slab = jnp.pad(mt, ((0, 0), (0, 0), (0, 0), (0, WP - W))).reshape(C, N, L)

    # All scalars / conv parameters packed into one small SMEM vector.
    params = jnp.concatenate([
        jnp.array([lamb, sigma / 255.0], jnp.float32),
        b.astype(jnp.float32).reshape(-1),
        w.astype(jnp.float32).reshape(-1),
    ])                                                             # (2 + C + C*C*9,)

    noisy = bool(noise_level_img > 0.01)   # resolved at trace time (recompiles if it flips)

    out_slab = pl.pallas_call(
        partial(_pnp_kernel, noisy=noisy),
        out_shape=jax.ShapeDtypeStruct((C, N, L), jnp.float32),
        in_specs=[
            pl.BlockSpec(memory_space=pltpu.MemorySpace.SMEM),   # params
            pl.BlockSpec(memory_space=pltpu.MemorySpace.VMEM),   # xpad_flat
            pl.BlockSpec(memory_space=pltpu.MemorySpace.VMEM),   # m_slab
        ],
        out_specs=pl.BlockSpec(memory_space=pltpu.MemorySpace.VMEM),
        # No grid: whole problem fits in a single invocation (~10 KB VMEM).
    )(params, xpad_flat, m_slab)

    # Undo the layout plumbing: (C, N, L) -> (N, C, H, W).
    out = out_slab.reshape(C, N, H, WP)[:, :, :, :W]
    return jnp.transpose(out, (1, 0, 2, 3))


def _reference(x, M, w, b, lamb, sigma, noise_level_img):
    """Pure-JAX reference of the same forward (literal module formulas)."""
    sigma_n = sigma / 255.0
    tau = 1.0 / lamb
    My = M * x
    conv = jax.lax.conv_general_dilated(
        x, w, window_strides=(1, 1), padding="SAME",
        dimension_numbers=("NCHW", "OIHW", "NCHW"),
    ) + b[None, :, None, None]
    Dx = x - sigma_n * conv
    z = (1.0 - lamb * tau) * x + lamb * tau * Dx
    if noise_level_img > 0.01:
        return (tau * My + z) / (tau * M + 1.0)
    return My + (1.0 - M) * z


if __name__ == "__main__":
    key = jax.random.PRNGKey(0)
    kx, km, kw, kb = jax.random.split(key, 4)

    x = jax.random.normal(kx, (N, C, H, W), jnp.float32)
    M = (jax.random.uniform(km, (N, C, H, W)) > 0.3).astype(jnp.float32)
    w = 0.1 * jax.random.normal(kw, (C, C, K, K), jnp.float32)
    b = 0.01 * jax.random.normal(kb, (C,), jnp.float32)

    lamb = 1.0                # nn.Parameter(torch.tensor(lamb))
    sigma = 5.0               # denoiser noise level (sigma / 255 inside)

    # noisy-inpainting prox branch (noise_level_img > 0.01)
    out_noisy = pnp_forward(x, M, w, b, lamb, sigma, 0.05)
    # noiseless-inpainting prox branch
    out_clean = pnp_forward(x, M, w, b, lamb, sigma, 0.001)
    out_noisy, out_clean = jax.block_until_ready((out_noisy, out_clean))

    ref_noisy = _reference(x, M, w, b, lamb, sigma, 0.05)
    ref_clean = _reference(x, M, w, b, lamb, sigma, 0.001)

    assert out_noisy.shape == (N, C, H, W)
    assert out_clean.shape == (N, C, H, W)
    assert jnp.allclose(out_noisy, ref_noisy, rtol=1e-5, atol=1e-5), "noisy branch mismatch"
    assert jnp.allclose(out_clean, ref_clean, rtol=1e-5, atol=1e-5), "noiseless branch mismatch"

    print("KERNEL_OK")
</pallas_src>

<mosaic_0001>
module attributes {stable_mosaic.version = 11 : i64} {
  func.func @_pnp_kernel(%arg0: memref<150xf32, #tpu.memory_space<smem>>, %arg1: memref<4x2x384xf32, #tpu.memory_space<vmem>>, %arg2: memref<4x2x288xf32, #tpu.memory_space<vmem>>, %arg3: memref<4x2x288xf32, #tpu.memory_space<vmem>>) attributes {dimension_semantics = [], scalar_prefetch = 0 : i64, scratch_operands = 0 : i64, tpu.core_type = #tpu.core_type<tc>} {
    %c0 = arith.constant 0 : index
    %0 = memref.load %arg0[%c0] : memref<150xf32, #tpu.memory_space<smem>>
    %c1 = arith.constant 1 : index
    %1 = memref.load %arg0[%c1] : memref<150xf32, #tpu.memory_space<smem>>
    %cst = arith.constant 1.000000e+00 : f32
    %2 = arith.divf %cst, %0 : f32
    %c2 = arith.constant 2 : index
    %3 = memref.load %arg0[%c2] : memref<150xf32, #tpu.memory_space<smem>>
    %4 = arith.mulf %1, %3 : f32
    %5 = vector.broadcast %4 : f32 to vector<2x288xf32>
    %c3 = arith.constant 3 : index
    %6 = memref.load %arg0[%c3] : memref<150xf32, #tpu.memory_space<smem>>
    %7 = arith.mulf %1, %6 : f32
    %8 = vector.broadcast %7 : f32 to vector<2x288xf32>
    %c4 = arith.constant 4 : index
    %9 = memref.load %arg0[%c4] : memref<150xf32, #tpu.memory_space<smem>>
    %10 = arith.mulf %1, %9 : f32
    %11 = vector.broadcast %10 : f32 to vector<2x288xf32>
    %c5 = arith.constant 5 : index
    %12 = memref.load %arg0[%c5] : memref<150xf32, #tpu.memory_space<smem>>
    %13 = arith.mulf %1, %12 : f32
    %14 = vector.broadcast %13 : f32 to vector<2x288xf32>
    %c0_0 = arith.constant 0 : index
    %c0_1 = arith.constant 0 : index
    %c0_2 = arith.constant 0 : index
    %15 = vector.load %arg1[%c0_0, %c0_1, %c0_2] : memref<4x2x384xf32, #tpu.memory_space<vmem>>, vector<1x2x288xf32>
    %16 = vector.shape_cast %15 : vector<1x2x288xf32> to vector<2x288xf32>
    %c6 = arith.constant 6 : index
    %17 = memref.load %arg0[%c6] : memref<150xf32, #tpu.memory_space<smem>>
    %18 = arith.mulf %1, %17 : f32
    %19 = vector.broadcast %18 : f32 to vector<2x288xf32>
    %20 = arith.mulf %19, %16 : vector<2x288xf32>
    %21 = arith.addf %5, %20 : vector<2x288xf32>
    %c42 = arith.constant 42 : index
    %22 = memref.load %arg0[%c42] : memref<150xf32, #tpu.memory_space<smem>>
    %23 = arith.mulf %1, %22 : f32
    %24 = vector.broadcast %23 : f32 to vector<2x288xf32>
    %25 = arith.mulf %24, %16 : vector<2x288xf32>
    %26 = arith.addf %8, %25 : vector<2x288xf32>
    %c78 = arith.constant 78 : index
    %27 = memref.load %arg0[%c78] : memref<150xf32, #tpu.memory_space<smem>>
    %28 = arith.mulf %1, %27 : f32
    %29 = vector.broadcast %28 : f32 to vector<2x288xf32>
    %30 = arith.mulf %29, %16 : vector<2x288xf32>
    %31 = arith.addf %11, %30 : vector<2x288xf32>
    %c114 = arith.constant 114 : index
    %32 = memref.load %arg0[%c114] : memref<150xf32, #tpu.memory_space<smem>>
    %33 = arith.mulf %1, %32 : f32
    %34 = vector.broadcast %33 : f32 to vector<2x288xf32>
    %35 = arith.mulf %34, %16 : vector<2x288xf32>
    %36 = arith.addf %14, %35 : vector<2x288xf32>
    %c0_3 = arith.constant 0 : index
    %c0_4 = arith.constant 0 : index
    %c1_5 = arith.constant 1 : index
    %37 = vector.load %arg1[%c0_3, %c0_4, %c1_5] : memref<4x2x384xf32, #tpu.memory_space<vmem>>, vector<1x2x288xf32>
    %38 = vector.shape_cast %37 : vector<1x2x288xf32> to vector<2x288xf32>
    %c7 = arith.constant 7 : index
    %39 = memref.load %arg0[%c7] : memref<150xf32, #tpu.memory_space<smem>>
    %40 = arith.mulf %1, %39 : f32
    %41 = vector.broadcast %40 : f32 to vector<2x288xf32>
    %42 = arith.mulf %41, %38 : vector<2x288xf32>
    %43 = arith.addf %21, %42 : vector<2x288xf32>
    %c43 = arith.constant 43 : index
    %44 = memref.load %arg0[%c43] : memref<150xf32, #tpu.memory_space<smem>>
    %45 = arith.mulf %1, %44 : f32
    %46 = vector.broadcast %45 : f32 to vector<2x288xf32>
    %47 = arith.mulf %46, %38 : vector<2x288xf32>
    %48 = arith.addf %26, %47 : vector<2x288xf32>
    %c79 = arith.constant 79 : index
    %49 = memref.load %arg0[%c79] : memref<150xf32, #tpu.memory_space<smem>>
    %50 = arith.mulf %1, %49 : f32
    %51 = vector.broadcast %50 : f32 to vector<2x288xf32>
    %52 = arith.mulf %51, %38 : vector<2x288xf32>
    %53 = arith.addf %31, %52 : vector<2x288xf32>
    %c115 = arith.constant 115 : index
    %54 = memref.load %arg0[%c115] : memref<150xf32, #tpu.memory_space<smem>>
    %55 = arith.mulf %1, %54 : f32
    %56 = vector.broadcast %55 : f32 to vector<2x288xf32>
    %57 = arith.mulf %56, %38 : vector<2x288xf32>
    %58 = arith.addf %36, %57 : vector<2x288xf32>
    %c0_6 = arith.constant 0 : index
    %c0_7 = arith.constant 0 : index
    %c2_8 = arith.constant 2 : index
    %59 = vector.load %arg1[%c0_6, %c0_7, %c2_8] : memref<4x2x384xf32, #tpu.memory_space<vmem>>, vector<1x2x288xf32>
    %60 = vector.shape_cast %59 : vector<1x2x288xf32> to vector<2x288xf32>
    %c8 = arith.constant 8 : index
    %61 = memref.load %arg0[%c8] : memref<150xf32, #tpu.memory_space<smem>>
    %62 = arith.mulf %1, %61 : f32
    %63 = vector.broadcast %62 : f32 to vector<2x288xf32>
    %64 = arith.mulf %63, %60 : vector<2x288xf32>
    %65 = arith.addf %43, %64 : vector<2x288xf32>
    %c44 = arith.constant 44 : index
    %66 = memref.load %arg0[%c44] : memref<150xf32, #tpu.memory_space<smem>>
    %67 = arith.mulf %1, %66 : f32
    %68 = vector.broadcast %67 : f32 to vector<2x288xf32>
    %69 = arith.mulf %68, %60 : vector<2x288xf32>
    %70 = arith.addf %48, %69 : vector<2x288xf32>
    %c80 = arith.constant 80 : index
    %71 = memref.load %arg0[%c80] : memref<150xf32, #tpu.memory_space<smem>>
    %72 = arith.mulf %1, %71 : f32
    %73 = vector.broadcast %72 : f32 to vector<2x288xf32>
    %74 = arith.mulf %73, %60 : vector<2x288xf32>
    %75 = arith.addf %53, %74 : vector<2x288xf32>
    %c116 = arith.constant 116 : index
    %76 = memref.load %arg0[%c116] : memref<150xf32, #tpu.memory_space<smem>>
    %77 = arith.mulf %1, %76 : f32
    %78 = vector.broadcast %77 : f32 to vector<2x288xf32>
    %79 = arith.mulf %78, %60 : vector<2x288xf32>
    %80 = arith.addf %58, %79 : vector<2x288xf32>
    %c0_9 = arith.constant 0 : index
    %c0_10 = arith.constant 0 : index
    %c18 = arith.constant 18 : index
    %81 = vector.load %arg1[%c0_9, %c0_10, %c18] : memref<4x2x384xf32, #tpu.memory_space<vmem>>, vector<1x2x288xf32>
    %82 = vector.shape_cast %81 : vector<1x2x288xf32> to vector<2x288xf32>
    %c9 = arith.constant 9 : index
    %83 = memref.load %arg0[%c9] : memref<150xf32, #tpu.memory_space<smem>>
    %84 = arith.mulf %1, %83 : f32
    %85 = vector.broadcast %84 : f32 to vector<2x288xf32>
    %86 = arith.mulf %85, %82 : vector<2x288xf32>
    %87 = arith.addf %65, %86 : vector<2x288xf32>
    %c45 = arith.constant 45 : index
    %88 = memref.load %arg0[%c45] : memref<150xf32, #tpu.memory_space<smem>>
    %89 = arith.mulf %1, %88 : f32
    %90 = vector.broadcast %89 : f32 to vector<2x288xf32>
    %91 = arith.mulf %90, %82 : vector<2x288xf32>
    %92 = arith.addf %70, %91 : vector<2x288xf32>
    %c81 = arith.constant 81 : index
    %93 = memref.load %arg0[%c81] : memref<150xf32, #tpu.memory_space<smem>>
    %94 = arith.mulf %1, %93 : f32
    %95 = vector.broadcast %94 : f32 to vector<2x288xf32>
    %96 = arith.mulf %95, %82 : vector<2x288xf32>
    %97 = arith.addf %75, %96 : vector<2x288xf32>
    %c117 = arith.constant 117 : index
    %98 = memref.load %arg0[%c117] : memref<150xf32, #tpu.memory_space<smem>>
    %99 = arith.mulf %1, %98 : f32
    %100 = vector.broadcast %99 : f32 to vector<2x288xf32>
    %101 = arith.mulf %100, %82 : vector<2x288xf32>
    %102 = arith.addf %80, %101 : vector<2x288xf32>
    %c0_11 = arith.constant 0 : index
    %c0_12 = arith.constant 0 : index
    %c19 = arith.constant 19 : index
    %103 = vector.load %arg1[%c0_11, %c0_12, %c19] : memref<4x2x384xf32, #tpu.memory_space<vmem>>, vector<1x2x288xf32>
    %104 = vector.shape_cast %103 : vector<1x2x288xf32> to vector<2x288xf32>
    %c10 = arith.constant 10 : index
    %105 = memref.load %arg0[%c10] : memref<150xf32, #tpu.memory_space<smem>>
    %106 = arith.mulf %1, %105 : f32
    %107 = vector.broadcast %106 : f32 to vector<2x288xf32>
    %108 = arith.mulf %107, %104 : vector<2x288xf32>
    %109 = arith.addf %87, %108 : vector<2x288xf32>
    %c46 = arith.constant 46 : index
    %110 = memref.load %arg0[%c46] : memref<150xf32, #tpu.memory_space<smem>>
    %111 = arith.mulf %1, %110 : f32
    %112 = vector.broadcast %111 : f32 to vector<2x288xf32>
    %113 = arith.mulf %112, %104 : vector<2x288xf32>
    %114 = arith.addf %92, %113 : vector<2x288xf32>
    %c82 = arith.constant 82 : index
    %115 = memref.load %arg0[%c82] : memref<150xf32, #tpu.memory_space<smem>>
    %116 = arith.mulf %1, %115 : f32
    %117 = vector.broadcast %116 : f32 to vector<2x288xf32>
    %118 = arith.mulf %117, %104 : vector<2x288xf32>
    %119 = arith.addf %97, %118 : vector<2x288xf32>
    %c118 = arith.constant 118 : index
    %120 = memref.load %arg0[%c118] : memref<150xf32, #tpu.memory_space<smem>>
    %121 = arith.mulf %1, %120 : f32
    %122 = vector.broadcast %121 : f32 to vector<2x288xf32>
    %123 = arith.mulf %122, %104 : vector<2x288xf32>
    %124 = arith.addf %102, %123 : vector<2x288xf32>
    %c0_13 = arith.constant 0 : index
    %c0_14 = arith.constant 0 : index
    %c20 = arith.constant 20 : index
    %125 = vector.load %arg1[%c0_13, %c0_14, %c20] : memref<4x2x384xf32, #tpu.memory_space<vmem>>, vector<1x2x288xf32>
    %126 = vector.shape_cast %125 : vector<1x2x288xf32> to vector<2x288xf32>
    %c11 = arith.constant 11 : index
    %127 = memref.load %arg0[%c11] : memref<150xf32, #tpu.memory_space<smem>>
    %128 = arith.mulf %1, %127 : f32
    %129 = vector.broadcast %128 : f32 to vector<2x288xf32>
    %130 = arith.mulf %129, %126 : vector<2x288xf32>
    %131 = arith.addf %109, %130 : vector<2x288xf32>
    %c47 = arith.constant 47 : index
    %132 = memref.load %arg0[%c47] : memref<150xf32, #tpu.memory_space<smem>>
    %133 = arith.mulf %1, %132 : f32
    %134 = vector.broadcast %133 : f32 to vector<2x288xf32>
    %135 = arith.mulf %134, %126 : vector<2x288xf32>
    %136 = arith.addf %114, %135 : vector<2x288xf32>
    %c83 = arith.constant 83 : index
    %137 = memref.load %arg0[%c83] : memref<150xf32, #tpu.memory_space<smem>>
    %138 = arith.mulf %1, %137 : f32
    %139 = vector.broadcast %138 : f32 to vector<2x288xf32>
    %140 = arith.mulf %139, %126 : vector<2x288xf32>
    %141 = arith.addf %119, %140 : vector<2x288xf32>
    %c119 = arith.constant 119 : index
    %142 = memref.load %arg0[%c119] : memref<150xf32, #tpu.memory_space<smem>>
    %143 = arith.mulf %1, %142 : f32
    %144 = vector.broadcast %143 : f32 to vector<2x288xf32>
    %145 = arith.mulf %144, %126 : vector<2x288xf32>
    %146 = arith.addf %124, %145 : vector<2x288xf32>
    %c0_15 = arith.constant 0 : index
    %c0_16 = arith.constant 0 : index
    %c36 = arith.constant 36 : index
    %147 = vector.load %arg1[%c0_15, %c0_16, %c36] : memref<4x2x384xf32, #tpu.memory_space<vmem>>, vector<1x2x288xf32>
    %148 = vector.shape_cast %147 : vector<1x2x288xf32> to vector<2x288xf32>
    %c12 = arith.constant 12 : index
    %149 = memref.load %arg0[%c12] : memref<150xf32, #tpu.memory_space<smem>>
    %150 = arith.mulf %1, %149 : f32
    %151 = vector.broadcast %150 : f32 to vector<2x288xf32>
    %152 = arith.mulf %151, %148 : vector<2x288xf32>
    %153 = arith.addf %131, %152 : vector<2x288xf32>
    %c48 = arith.constant 48 : index
    %154 = memref.load %arg0[%c48] : memref<150xf32, #tpu.memory_space<smem>>
    %155 = arith.mulf %1, %154 : f32
    %156 = vector.broadcast %155 : f32 to vector<2x288xf32>
    %157 = arith.mulf %156, %148 : vector<2x288xf32>
    %158 = arith.addf %136, %157 : vector<2x288xf32>
    %c84 = arith.constant 84 : index
    %159 = memref.load %arg0[%c84] : memref<150xf32, #tpu.memory_space<smem>>
    %160 = arith.mulf %1, %159 : f32
    %161 = vector.broadcast %160 : f32 to vector<2x288xf32>
    %162 = arith.mulf %161, %148 : vector<2x288xf32>
    %163 = arith.addf %141, %162 : vector<2x288xf32>
    %c120 = arith.constant 120 : index
    %164 = memref.load %arg0[%c120] : memref<150xf32, #tpu.memory_space<smem>>
    %165 = arith.mulf %1, %164 : f32
    %166 = vector.broadcast %165 : f32 to vector<2x288xf32>
    %167 = arith.mulf %166, %148 : vector<2x288xf32>
    %168 = arith.addf %146, %167 : vector<2x288xf32>
    %c0_17 = arith.constant 0 : index
    %c0_18 = arith.constant 0 : index
    %c37 = arith.constant 37 : index
    %169 = vector.load %arg1[%c0_17, %c0_18, %c37] : memref<4x2x384xf32, #tpu.memory_space<vmem>>, vector<1x2x288xf32>
    %170 = vector.shape_cast %169 : vector<1x2x288xf32> to vector<2x288xf32>
    %c13 = arith.constant 13 : index
    %171 = memref.load %arg0[%c13] : memref<150xf32, #tpu.memory_space<smem>>
    %172 = arith.mulf %1, %171 : f32
    %173 = vector.broadcast %172 : f32 to vector<2x288xf32>
    %174 = arith.mulf %173, %170 : vector<2x288xf32>
    %175 = arith.addf %153, %174 : vector<2x288xf32>
    %c49 = arith.constant 49 : index
    %176 = memref.load %arg0[%c49] : memref<150xf32, #tpu.memory_space<smem>>
    %177 = arith.mulf %1, %176 : f32
    %178 = vector.broadcast %177 : f32 to vector<2x288xf32>
    %179 = arith.mulf %178, %170 : vector<2x288xf32>
    %180 = arith.addf %158, %179 : vector<2x288xf32>
    %c85 = arith.constant 85 : index
    %181 = memref.load %arg0[%c85] : memref<150xf32, #tpu.memory_space<smem>>
    %182 = arith.mulf %1, %181 : f32
    %183 = vector.broadcast %182 : f32 to vector<2x288xf32>
    %184 = arith.mulf %183, %170 : vector<2x288xf32>
    %185 = arith.addf %163, %184 : vector<2x288xf32>
    %c121 = arith.constant 121 : index
    %186 = memref.load %arg0[%c121] : memref<150xf32, #tpu.memory_space<smem>>
    %187 = arith.mulf %1, %186 : f32
    %188 = vector.broadcast %187 : f32 to vector<2x288xf32>
    %189 = arith.mulf %188, %170 : vector<2x288xf32>
    %190 = arith.addf %168, %189 : vector<2x288xf32>
    %c0_19 = arith.constant 0 : index
    %c0_20 = arith.constant 0 : index
    %c38 = arith.constant 38 : index
    %191 = vector.load %arg1[%c0_19, %c0_20, %c38] : memref<4x2x384xf32, #tpu.memory_space<vmem>>, vector<1x2x288xf32>
    %192 = vector.shape_cast %191 : vector<1x2x288xf32> to vector<2x288xf32>
    %c14 = arith.constant 14 : index
    %193 = memref.load %arg0[%c14] : memref<150xf32, #tpu.memory_space<smem>>
    %194 = arith.mulf %1, %193 : f32
    %195 = vector.broadcast %194 : f32 to vector<2x288xf32>
    %196 = arith.mulf %195, %192 : vector<2x288xf32>
    %197 = arith.addf %175, %196 : vector<2x288xf32>
    %c50 = arith.constant 50 : index
    %198 = memref.load %arg0[%c50] : memref<150xf32, #tpu.memory_space<smem>>
    %199 = arith.mulf %1, %198 : f32
    %200 = vector.broadcast %199 : f32 to vector<2x288xf32>
    %201 = arith.mulf %200, %192 : vector<2x288xf32>
    %202 = arith.addf %180, %201 : vector<2x288xf32>
    %c86 = arith.constant 86 : index
    %203 = memref.load %arg0[%c86] : memref<150xf32, #tpu.memory_space<smem>>
    %204 = arith.mulf %1, %203 : f32
    %205 = vector.broadcast %204 : f32 to vector<2x288xf32>
    %206 = arith.mulf %205, %192 : vector<2x288xf32>
    %207 = arith.addf %185, %206 : vector<2x288xf32>
    %c122 = arith.constant 122 : index
    %208 = memref.load %arg0[%c122] : memref<150xf32, #tpu.memory_space<smem>>
    %209 = arith.mulf %1, %208 : f32
    %210 = vector.broadcast %209 : f32 to vector<2x288xf32>
    %211 = arith.mulf %210, %192 : vector<2x288xf32>
    %212 = arith.addf %190, %211 : vector<2x288xf32>
    %c1_21 = arith.constant 1 : index
    %c0_22 = arith.constant 0 : index
    %c0_23 = arith.constant 0 : index
    %213 = vector.load %arg1[%c1_21, %c0_22, %c0_23] : memref<4x2x384xf32, #tpu.memory_space<vmem>>, vector<1x2x288xf32>
    %214 = vector.shape_cast %213 : vector<1x2x288xf32> to vector<2x288xf32>
    %c15 = arith.constant 15 : index
    %215 = memref.load %arg0[%c15] : memref<150xf32, #tpu.memory_space<smem>>
    %216 = arith.mulf %1, %215 : f32
    %217 = vector.broadcast %216 : f32 to vector<2x288xf32>
    %218 = arith.mulf %217, %214 : vector<2x288xf32>
    %219 = arith.addf %197, %218 : vector<2x288xf32>
    %c51 = arith.constant 51 : index
    %220 = memref.load %arg0[%c51] : memref<150xf32, #tpu.memory_space<smem>>
    %221 = arith.mulf %1, %220 : f32
    %222 = vector.broadcast %221 : f32 to vector<2x288xf32>
    %223 = arith.mulf %222, %214 : vector<2x288xf32>
    %224 = arith.addf %202, %223 : vector<2x288xf32>
    %c87 = arith.constant 87 : index
    %225 = memref.load %arg0[%c87] : memref<150xf32, #tpu.memory_space<smem>>
    %226 = arith.mulf %1, %225 : f32
    %227 = vector.broadcast %226 : f32 to vector<2x288xf32>
    %228 = arith.mulf %227, %214 : vector<2x288xf32>
    %229 = arith.addf %207, %228 : vector<2x288xf32>
    %c123 = arith.constant 123 : index
    %230 = memref.load %arg0[%c123] : memref<150xf32, #tpu.memory_space<smem>>
    %231 = arith.mulf %1, %230 : f32
    %232 = vector.broadcast %231 : f32 to vector<2x288xf32>
    %233 = arith.mulf %232, %214 : vector<2x288xf32>
    %234 = arith.addf %212, %233 : vector<2x288xf32>
    %c1_24 = arith.constant 1 : index
    %c0_25 = arith.constant 0 : index
    %c1_26 = arith.constant 1 : index
    %235 = vector.load %arg1[%c1_24, %c0_25, %c1_26] : memref<4x2x384xf32, #tpu.memory_space<vmem>>, vector<1x2x288xf32>
    %236 = vector.shape_cast %235 : vector<1x2x288xf32> to vector<2x288xf32>
    %c16 = arith.constant 16 : index
    %237 = memref.load %arg0[%c16] : memref<150xf32, #tpu.memory_space<smem>>
    %238 = arith.mulf %1, %237 : f32
    %239 = vector.broadcast %238 : f32 to vector<2x288xf32>
    %240 = arith.mulf %239, %236 : vector<2x288xf32>
    %241 = arith.addf %219, %240 : vector<2x288xf32>
    %c52 = arith.constant 52 : index
    %242 = memref.load %arg0[%c52] : memref<150xf32, #tpu.memory_space<smem>>
    %243 = arith.mulf %1, %242 : f32
    %244 = vector.broadcast %243 : f32 to vector<2x288xf32>
    %245 = arith.mulf %244, %236 : vector<2x288xf32>
    %246 = arith.addf %224, %245 : vector<2x288xf32>
    %c88 = arith.constant 88 : index
    %247 = memref.load %arg0[%c88] : memref<150xf32, #tpu.memory_space<smem>>
    %248 = arith.mulf %1, %247 : f32
    %249 = vector.broadcast %248 : f32 to vector<2x288xf32>
    %250 = arith.mulf %249, %236 : vector<2x288xf32>
    %251 = arith.addf %229, %250 : vector<2x288xf32>
    %c124 = arith.constant 124 : index
    %252 = memref.load %arg0[%c124] : memref<150xf32, #tpu.memory_space<smem>>
    %253 = arith.mulf %1, %252 : f32
    %254 = vector.broadcast %253 : f32 to vector<2x288xf32>
    %255 = arith.mulf %254, %236 : vector<2x288xf32>
    %256 = arith.addf %234, %255 : vector<2x288xf32>
    %c1_27 = arith.constant 1 : index
    %c0_28 = arith.constant 0 : index
    %c2_29 = arith.constant 2 : index
    %257 = vector.load %arg1[%c1_27, %c0_28, %c2_29] : memref<4x2x384xf32, #tpu.memory_space<vmem>>, vector<1x2x288xf32>
    %258 = vector.shape_cast %257 : vector<1x2x288xf32> to vector<2x288xf32>
    %c17 = arith.constant 17 : index
    %259 = memref.load %arg0[%c17] : memref<150xf32, #tpu.memory_space<smem>>
    %260 = arith.mulf %1, %259 : f32
    %261 = vector.broadcast %260 : f32 to vector<2x288xf32>
    %262 = arith.mulf %261, %258 : vector<2x288xf32>
    %263 = arith.addf %241, %262 : vector<2x288xf32>
    %c53 = arith.constant 53 : index
    %264 = memref.load %arg0[%c53] : memref<150xf32, #tpu.memory_space<smem>>
    %265 = arith.mulf %1, %264 : f32
    %266 = vector.broadcast %265 : f32 to vector<2x288xf32>
    %267 = arith.mulf %266, %258 : vector<2x288xf32>
    %268 = arith.addf %246, %267 : vector<2x288xf32>
    %c89 = arith.constant 89 : index
    %269 = memref.load %arg0[%c89] : memref<150xf32, #tpu.memory_space<smem>>
    %270 = arith.mulf %1, %269 : f32
    %271 = vector.broadcast %270 : f32 to vector<2x288xf32>
    %272 = arith.mulf %271, %258 : vector<2x288xf32>
    %273 = arith.addf %251, %272 : vector<2x288xf32>
    %c125 = arith.constant 125 : index
    %274 = memref.load %arg0[%c125] : memref<150xf32, #tpu.memory_space<smem>>
    %275 = arith.mulf %1, %274 : f32
    %276 = vector.broadcast %275 : f32 to vector<2x288xf32>
    %277 = arith.mulf %276, %258 : vector<2x288xf32>
    %278 = arith.addf %256, %277 : vector<2x288xf32>
    %c1_30 = arith.constant 1 : index
    %c0_31 = arith.constant 0 : index
    %c18_32 = arith.constant 18 : index
    %279 = vector.load %arg1[%c1_30, %c0_31, %c18_32] : memref<4x2x384xf32, #tpu.memory_space<vmem>>, vector<1x2x288xf32>
    %280 = vector.shape_cast %279 : vector<1x2x288xf32> to vector<2x288xf32>
    %c18_33 = arith.constant 18 : index
    %281 = memref.load %arg0[%c18_33] : memref<150xf32, #tpu.memory_space<smem>>
    %282 = arith.mulf %1, %281 : f32
    %283 = vector.broadcast %282 : f32 to vector<2x288xf32>
    %284 = arith.mulf %283, %280 : vector<2x288xf32>
    %285 = arith.addf %263, %284 : vector<2x288xf32>
    %c54 = arith.constant 54 : index
    %286 = memref.load %arg0[%c54] : memref<150xf32, #tpu.memory_space<smem>>
    %287 = arith.mulf %1, %286 : f32
    %288 = vector.broadcast %287 : f32 to vector<2x288xf32>
    %289 = arith.mulf %288, %280 : vector<2x288xf32>
    %290 = arith.addf %268, %289 : vector<2x288xf32>
    %c90 = arith.constant 90 : index
    %291 = memref.load %arg0[%c90] : memref<150xf32, #tpu.memory_space<smem>>
    %292 = arith.mulf %1, %291 : f32
    %293 = vector.broadcast %292 : f32 to vector<2x288xf32>
    %294 = arith.mulf %293, %280 : vector<2x288xf32>
    %295 = arith.addf %273, %294 : vector<2x288xf32>
    %c126 = arith.constant 126 : index
    %296 = memref.load %arg0[%c126] : memref<150xf32, #tpu.memory_space<smem>>
    %297 = arith.mulf %1, %296 : f32
    %298 = vector.broadcast %297 : f32 to vector<2x288xf32>
    %299 = arith.mulf %298, %280 : vector<2x288xf32>
    %300 = arith.addf %278, %299 : vector<2x288xf32>
    %c1_34 = arith.constant 1 : index
    %c0_35 = arith.constant 0 : index
    %c19_36 = arith.constant 19 : index
    %301 = vector.load %arg1[%c1_34, %c0_35, %c19_36] : memref<4x2x384xf32, #tpu.memory_space<vmem>>, vector<1x2x288xf32>
    %302 = vector.shape_cast %301 : vector<1x2x288xf32> to vector<2x288xf32>
    %c19_37 = arith.constant 19 : index
    %303 = memref.load %arg0[%c19_37] : memref<150xf32, #tpu.memory_space<smem>>
    %304 = arith.mulf %1, %303 : f32
    %305 = vector.broadcast %304 : f32 to vector<2x288xf32>
    %306 = arith.mulf %305, %302 : vector<2x288xf32>
    %307 = arith.addf %285, %306 : vector<2x288xf32>
    %c55 = arith.constant 55 : index
    %308 = memref.load %arg0[%c55] : memref<150xf32, #tpu.memory_space<smem>>
    %309 = arith.mulf %1, %308 : f32
    %310 = vector.broadcast %309 : f32 to vector<2x288xf32>
    %311 = arith.mulf %310, %302 : vector<2x288xf32>
    %312 = arith.addf %290, %311 : vector<2x288xf32>
    %c91 = arith.constant 91 : index
    %313 = memref.load %arg0[%c91] : memref<150xf32, #tpu.memory_space<smem>>
    %314 = arith.mulf %1, %313 : f32
    %315 = vector.broadcast %314 : f32 to vector<2x288xf32>
    %316 = arith.mulf %315, %302 : vector<2x288xf32>
    %317 = arith.addf %295, %316 : vector<2x288xf32>
    %c127 = arith.constant 127 : index
    %318 = memref.load %arg0[%c127] : memref<150xf32, #tpu.memory_space<smem>>
    %319 = arith.mulf %1, %318 : f32
    %320 = vector.broadcast %319 : f32 to vector<2x288xf32>
    %321 = arith.mulf %320, %302 : vector<2x288xf32>
    %322 = arith.addf %300, %321 : vector<2x288xf32>
    %c1_38 = arith.constant 1 : index
    %c0_39 = arith.constant 0 : index
    %c20_40 = arith.constant 20 : index
    %323 = vector.load %arg1[%c1_38, %c0_39, %c20_40] : memref<4x2x384xf32, #tpu.memory_space<vmem>>, vector<1x2x288xf32>
    %324 = vector.shape_cast %323 : vector<1x2x288xf32> to vector<2x288xf32>
    %c20_41 = arith.constant 20 : index
    %325 = memref.load %arg0[%c20_41] : memref<150xf32, #tpu.memory_space<smem>>
    %326 = arith.mulf %1, %325 : f32
    %327 = vector.broadcast %326 : f32 to vector<2x288xf32>
    %328 = arith.mulf %327, %324 : vector<2x288xf32>
    %329 = arith.addf %307, %328 : vector<2x288xf32>
    %c56 = arith.constant 56 : index
    %330 = memref.load %arg0[%c56] : memref<150xf32, #tpu.memory_space<smem>>
    %331 = arith.mulf %1, %330 : f32
    %332 = vector.broadcast %331 : f32 to vector<2x288xf32>
    %333 = arith.mulf %332, %324 : vector<2x288xf32>
    %334 = arith.addf %312, %333 : vector<2x288xf32>
    %c92 = arith.constant 92 : index
    %335 = memref.load %arg0[%c92] : memref<150xf32, #tpu.memory_space<smem>>
    %336 = arith.mulf %1, %335 : f32
    %337 = vector.broadcast %336 : f32 to vector<2x288xf32>
    %338 = arith.mulf %337, %324 : vector<2x288xf32>
    %339 = arith.addf %317, %338 : vector<2x288xf32>
    %c128 = arith.constant 128 : index
    %340 = memref.load %arg0[%c128] : memref<150xf32, #tpu.memory_space<smem>>
    %341 = arith.mulf %1, %340 : f32
    %342 = vector.broadcast %341 : f32 to vector<2x288xf32>
    %343 = arith.mulf %342, %324 : vector<2x288xf32>
    %344 = arith.addf %322, %343 : vector<2x288xf32>
    %c1_42 = arith.constant 1 : index
    %c0_43 = arith.constant 0 : index
    %c36_44 = arith.constant 36 : index
    %345 = vector.load %arg1[%c1_42, %c0_43, %c36_44] : memref<4x2x384xf32, #tpu.memory_space<vmem>>, vector<1x2x288xf32>
    %346 = vector.shape_cast %345 : vector<1x2x288xf32> to vector<2x288xf32>
    %c21 = arith.constant 21 : index
    %347 = memref.load %arg0[%c21] : memref<150xf32, #tpu.memory_space<smem>>
    %348 = arith.mulf %1, %347 : f32
    %349 = vector.broadcast %348 : f32 to vector<2x288xf32>
    %350 = arith.mulf %349, %346 : vector<2x288xf32>
    %351 = arith.addf %329, %350 : vector<2x288xf32>
    %c57 = arith.constant 57 : index
    %352 = memref.load %arg0[%c57] : memref<150xf32, #tpu.memory_space<smem>>
    %353 = arith.mulf %1, %352 : f32
    %354 = vector.broadcast %353 : f32 to vector<2x288xf32>
    %355 = arith.mulf %354, %346 : vector<2x288xf32>
    %356 = arith.addf %334, %355 : vector<2x288xf32>
    %c93 = arith.constant 93 : index
    %357 = memref.load %arg0[%c93] : memref<150xf32, #tpu.memory_space<smem>>
    %358 = arith.mulf %1, %357 : f32
    %359 = vector.broadcast %358 : f32 to vector<2x288xf32>
    %360 = arith.mulf %359, %346 : vector<2x288xf32>
    %361 = arith.addf %339, %360 : vector<2x288xf32>
    %c129 = arith.constant 129 : index
    %362 = memref.load %arg0[%c129] : memref<150xf32, #tpu.memory_space<smem>>
    %363 = arith.mulf %1, %362 : f32
    %364 = vector.broadcast %363 : f32 to vector<2x288xf32>
    %365 = arith.mulf %364, %346 : vector<2x288xf32>
    %366 = arith.addf %344, %365 : vector<2x288xf32>
    %c1_45 = arith.constant 1 : index
    %c0_46 = arith.constant 0 : index
    %c37_47 = arith.constant 37 : index
    %367 = vector.load %arg1[%c1_45, %c0_46, %c37_47] : memref<4x2x384xf32, #tpu.memory_space<vmem>>, vector<1x2x288xf32>
    %368 = vector.shape_cast %367 : vector<1x2x288xf32> to vector<2x288xf32>
    %c22 = arith.constant 22 : index
    %369 = memref.load %arg0[%c22] : memref<150xf32, #tpu.memory_space<smem>>
    %370 = arith.mulf %1, %369 : f32
    %371 = vector.broadcast %370 : f32 to vector<2x288xf32>
    %372 = arith.mulf %371, %368 : vector<2x288xf32>
    %373 = arith.addf %351, %372 : vector<2x288xf32>
    %c58 = arith.constant 58 : index
    %374 = memref.load %arg0[%c58] : memref<150xf32, #tpu.memory_space<smem>>
    %375 = arith.mulf %1, %374 : f32
    %376 = vector.broadcast %375 : f32 to vector<2x288xf32>
    %377 = arith.mulf %376, %368 : vector<2x288xf32>
    %378 = arith.addf %356, %377 : vector<2x288xf32>
    %c94 = arith.constant 94 : index
    %379 = memref.load %arg0[%c94] : memref<150xf32, #tpu.memory_space<smem>>
    %380 = arith.mulf %1, %379 : f32
    %381 = vector.broadcast %380 : f32 to vector<2x288xf32>
    %382 = arith.mulf %381, %368 : vector<2x288xf32>
    %383 = arith.addf %361, %382 : vector<2x288xf32>
    %c130 = arith.constant 130 : index
    %384 = memref.load %arg0[%c130] : memref<150xf32, #tpu.memory_space<smem>>
    %385 = arith.mulf %1, %384 : f32
    %386 = vector.broadcast %385 : f32 to vector<2x288xf32>
    %387 = arith.mulf %386, %368 : vector<2x288xf32>
    %388 = arith.addf %366, %387 : vector<2x288xf32>
    %c1_48 = arith.constant 1 : index
    %c0_49 = arith.constant 0 : index
    %c38_50 = arith.constant 38 : index
    %389 = vector.load %arg1[%c1_48, %c0_49, %c38_50] : memref<4x2x384xf32, #tpu.memory_space<vmem>>, vector<1x2x288xf32>
    %390 = vector.shape_cast %389 : vector<1x2x288xf32> to vector<2x288xf32>
    %c23 = arith.constant 23 : index
    %391 = memref.load %arg0[%c23] : memref<150xf32, #tpu.memory_space<smem>>
    %392 = arith.mulf %1, %391 : f32
    %393 = vector.broadcast %392 : f32 to vector<2x288xf32>
    %394 = arith.mulf %393, %390 : vector<2x288xf32>
    %395 = arith.addf %373, %394 : vector<2x288xf32>
    %c59 = arith.constant 59 : index
    %396 = memref.load %arg0[%c59] : memref<150xf32, #tpu.memory_space<smem>>
    %397 = arith.mulf %1, %396 : f32
    %398 = vector.broadcast %397 : f32 to vector<2x288xf32>
    %399 = arith.mulf %398, %390 : vector<2x288xf32>
    %400 = arith.addf %378, %399 : vector<2x288xf32>
    %c95 = arith.constant 95 : index
    %401 = memref.load %arg0[%c95] : memref<150xf32, #tpu.memory_space<smem>>
    %402 = arith.mulf %1, %401 : f32
    %403 = vector.broadcast %402 : f32 to vector<2x288xf32>
    %404 = arith.mulf %403, %390 : vector<2x288xf32>
    %405 = arith.addf %383, %404 : vector<2x288xf32>
    %c131 = arith.constant 131 : index
    %406 = memref.load %arg0[%c131] : memref<150xf32, #tpu.memory_space<smem>>
    %407 = arith.mulf %1, %406 : f32
    %408 = vector.broadcast %407 : f32 to vector<2x288xf32>
    %409 = arith.mulf %408, %390 : vector<2x288xf32>
    %410 = arith.addf %388, %409 : vector<2x288xf32>
    %c2_51 = arith.constant 2 : index
    %c0_52 = arith.constant 0 : index
    %c0_53 = arith.constant 0 : index
    %411 = vector.load %arg1[%c2_51, %c0_52, %c0_53] : memref<4x2x384xf32, #tpu.memory_space<vmem>>, vector<1x2x288xf32>
    %412 = vector.shape_cast %411 : vector<1x2x288xf32> to vector<2x288xf32>
    %c24 = arith.constant 24 : index
    %413 = memref.load %arg0[%c24] : memref<150xf32, #tpu.memory_space<smem>>
    %414 = arith.mulf %1, %413 : f32
    %415 = vector.broadcast %414 : f32 to vector<2x288xf32>
    %416 = arith.mulf %415, %412 : vector<2x288xf32>
    %417 = arith.addf %395, %416 : vector<2x288xf32>
    %c60 = arith.constant 60 : index
    %418 = memref.load %arg0[%c60] : memref<150xf32, #tpu.memory_space<smem>>
    %419 = arith.mulf %1, %418 : f32
    %420 = vector.broadcast %419 : f32 to vector<2x288xf32>
    %421 = arith.mulf %420, %412 : vector<2x288xf32>
    %422 = arith.addf %400, %421 : vector<2x288xf32>
    %c96 = arith.constant 96 : index
    %423 = memref.load %arg0[%c96] : memref<150xf32, #tpu.memory_space<smem>>
    %424 = arith.mulf %1, %423 : f32
    %425 = vector.broadcast %424 : f32 to vector<2x288xf32>
    %426 = arith.mulf %425, %412 : vector<2x288xf32>
    %427 = arith.addf %405, %426 : vector<2x288xf32>
    %c132 = arith.constant 132 : index
    %428 = memref.load %arg0[%c132] : memref<150xf32, #tpu.memory_space<smem>>
    %429 = arith.mulf %1, %428 : f32
    %430 = vector.broadcast %429 : f32 to vector<2x288xf32>
    %431 = arith.mulf %430, %412 : vector<2x288xf32>
    %432 = arith.addf %410, %431 : vector<2x288xf32>
    %c2_54 = arith.constant 2 : index
    %c0_55 = arith.constant 0 : index
    %c1_56 = arith.constant 1 : index
    %433 = vector.load %arg1[%c2_54, %c0_55, %c1_56] : memref<4x2x384xf32, #tpu.memory_space<vmem>>, vector<1x2x288xf32>
    %434 = vector.shape_cast %433 : vector<1x2x288xf32> to vector<2x288xf32>
    %c25 = arith.constant 25 : index
    %435 = memref.load %arg0[%c25] : memref<150xf32, #tpu.memory_space<smem>>
    %436 = arith.mulf %1, %435 : f32
    %437 = vector.broadcast %436 : f32 to vector<2x288xf32>
    %438 = arith.mulf %437, %434 : vector<2x288xf32>
    %439 = arith.addf %417, %438 : vector<2x288xf32>
    %c61 = arith.constant 61 : index
    %440 = memref.load %arg0[%c61] : memref<150xf32, #tpu.memory_space<smem>>
    %441 = arith.mulf %1, %440 : f32
    %442 = vector.broadcast %441 : f32 to vector<2x288xf32>
    %443 = arith.mulf %442, %434 : vector<2x288xf32>
    %444 = arith.addf %422, %443 : vector<2x288xf32>
    %c97 = arith.constant 97 : index
    %445 = memref.load %arg0[%c97] : memref<150xf32, #tpu.memory_space<smem>>
    %446 = arith.mulf %1, %445 : f32
    %447 = vector.broadcast %446 : f32 to vector<2x288xf32>
    %448 = arith.mulf %447, %434 : vector<2x288xf32>
    %449 = arith.addf %427, %448 : vector<2x288xf32>
    %c133 = arith.constant 133 : index
    %450 = memref.load %arg0[%c133] : memref<150xf32, #tpu.memory_space<smem>>
    %451 = arith.mulf %1, %450 : f32
    %452 = vector.broadcast %451 : f32 to vector<2x288xf32>
    %453 = arith.mulf %452, %434 : vector<2x288xf32>
    %454 = arith.addf %432, %453 : vector<2x288xf32>
    %c2_57 = arith.constant 2 : index
    %c0_58 = arith.constant 0 : index
    %c2_59 = arith.constant 2 : index
    %455 = vector.load %arg1[%c2_57, %c0_58, %c2_59] : memref<4x2x384xf32, #tpu.memory_space<vmem>>, vector<1x2x288xf32>
    %456 = vector.shape_cast %455 : vector<1x2x288xf32> to vector<2x288xf32>
    %c26 = arith.constant 26 : index
    %457 = memref.load %arg0[%c26] : memref<150xf32, #tpu.memory_space<smem>>
    %458 = arith.mulf %1, %457 : f32
    %459 = vector.broadcast %458 : f32 to vector<2x288xf32>
    %460 = arith.mulf %459, %456 : vector<2x288xf32>
    %461 = arith.addf %439, %460 : vector<2x288xf32>
    %c62 = arith.constant 62 : index
    %462 = memref.load %arg0[%c62] : memref<150xf32, #tpu.memory_space<smem>>
    %463 = arith.mulf %1, %462 : f32
    %464 = vector.broadcast %463 : f32 to vector<2x288xf32>
    %465 = arith.mulf %464, %456 : vector<2x288xf32>
    %466 = arith.addf %444, %465 : vector<2x288xf32>
    %c98 = arith.constant 98 : index
    %467 = memref.load %arg0[%c98] : memref<150xf32, #tpu.memory_space<smem>>
    %468 = arith.mulf %1, %467 : f32
    %469 = vector.broadcast %468 : f32 to vector<2x288xf32>
    %470 = arith.mulf %469, %456 : vector<2x288xf32>
    %471 = arith.addf %449, %470 : vector<2x288xf32>
    %c134 = arith.constant 134 : index
    %472 = memref.load %arg0[%c134] : memref<150xf32, #tpu.memory_space<smem>>
    %473 = arith.mulf %1, %472 : f32
    %474 = vector.broadcast %473 : f32 to vector<2x288xf32>
    %475 = arith.mulf %474, %456 : vector<2x288xf32>
    %476 = arith.addf %454, %475 : vector<2x288xf32>
    %c2_60 = arith.constant 2 : index
    %c0_61 = arith.constant 0 : index
    %c18_62 = arith.constant 18 : index
    %477 = vector.load %arg1[%c2_60, %c0_61, %c18_62] : memref<4x2x384xf32, #tpu.memory_space<vmem>>, vector<1x2x288xf32>
    %478 = vector.shape_cast %477 : vector<1x2x288xf32> to vector<2x288xf32>
    %c27 = arith.constant 27 : index
    %479 = memref.load %arg0[%c27] : memref<150xf32, #tpu.memory_space<smem>>
    %480 = arith.mulf %1, %479 : f32
    %481 = vector.broadcast %480 : f32 to vector<2x288xf32>
    %482 = arith.mulf %481, %478 : vector<2x288xf32>
    %483 = arith.addf %461, %482 : vector<2x288xf32>
    %c63 = arith.constant 63 : index
    %484 = memref.load %arg0[%c63] : memref<150xf32, #tpu.memory_space<smem>>
    %485 = arith.mulf %1, %484 : f32
    %486 = vector.broadcast %485 : f32 to vector<2x288xf32>
    %487 = arith.mulf %486, %478 : vector<2x288xf32>
    %488 = arith.addf %466, %487 : vector<2x288xf32>
    %c99 = arith.constant 99 : index
    %489 = memref.load %arg0[%c99] : memref<150xf32, #tpu.memory_space<smem>>
    %490 = arith.mulf %1, %489 : f32
    %491 = vector.broadcast %490 : f32 to vector<2x288xf32>
    %492 = arith.mulf %491, %478 : vector<2x288xf32>
    %493 = arith.addf %471, %492 : vector<2x288xf32>
    %c135 = arith.constant 135 : index
    %494 = memref.load %arg0[%c135] : memref<150xf32, #tpu.memory_space<smem>>
    %495 = arith.mulf %1, %494 : f32
    %496 = vector.broadcast %495 : f32 to vector<2x288xf32>
    %497 = arith.mulf %496, %478 : vector<2x288xf32>
    %498 = arith.addf %476, %497 : vector<2x288xf32>
    %c2_63 = arith.constant 2 : index
    %c0_64 = arith.constant 0 : index
    %c19_65 = arith.constant 19 : index
    %499 = vector.load %arg1[%c2_63, %c0_64, %c19_65] : memref<4x2x384xf32, #tpu.memory_space<vmem>>, vector<1x2x288xf32>
    %500 = vector.shape_cast %499 : vector<1x2x288xf32> to vector<2x288xf32>
    %c28 = arith.constant 28 : index
    %501 = memref.load %arg0[%c28] : memref<150xf32, #tpu.memory_space<smem>>
    %502 = arith.mulf %1, %501 : f32
    %503 = vector.broadcast %502 : f32 to vector<2x288xf32>
    %504 = arith.mulf %503, %500 : vector<2x288xf32>
    %505 = arith.addf %483, %504 : vector<2x288xf32>
    %c64 = arith.constant 64 : index
    %506 = memref.load %arg0[%c64] : memref<150xf32, #tpu.memory_space<smem>>
    %507 = arith.mulf %1, %506 : f32
    %508 = vector.broadcast %507 : f32 to vector<2x288xf32>
    %509 = arith.mulf %508, %500 : vector<2x288xf32>
    %510 = arith.addf %488, %509 : vector<2x288xf32>
    %c100 = arith.constant 100 : index
    %511 = memref.load %arg0[%c100] : memref<150xf32, #tpu.memory_space<smem>>
    %512 = arith.mulf %1, %511 : f32
    %513 = vector.broadcast %512 : f32 to vector<2x288xf32>
    %514 = arith.mulf %513, %500 : vector<2x288xf32>
    %515 = arith.addf %493, %514 : vector<2x288xf32>
    %c136 = arith.constant 136 : index
    %516 = memref.load %arg0[%c136] : memref<150xf32, #tpu.memory_space<smem>>
    %517 = arith.mulf %1, %516 : f32
    %518 = vector.broadcast %517 : f32 to vector<2x288xf32>
    %519 = arith.mulf %518, %500 : vector<2x288xf32>
    %520 = arith.addf %498, %519 : vector<2x288xf32>
    %c2_66 = arith.constant 2 : index
    %c0_67 = arith.constant 0 : index
    %c20_68 = arith.constant 20 : index
    %521 = vector.load %arg1[%c2_66, %c0_67, %c20_68] : memref<4x2x384xf32, #tpu.memory_space<vmem>>, vector<1x2x288xf32>
    %522 = vector.shape_cast %521 : vector<1x2x288xf32> to vector<2x288xf32>
    %c29 = arith.constant 29 : index
    %523 = memref.load %arg0[%c29] : memref<150xf32, #tpu.memory_space<smem>>
    %524 = arith.mulf %1, %523 : f32
    %525 = vector.broadcast %524 : f32 to vector<2x288xf32>
    %526 = arith.mulf %525, %522 : vector<2x288xf32>
    %527 = arith.addf %505, %526 : vector<2x288xf32>
    %c65 = arith.constant 65 : index
    %528 = memref.load %arg0[%c65] : memref<150xf32, #tpu.memory_space<smem>>
    %529 = arith.mulf %1, %528 : f32
    %530 = vector.broadcast %529 : f32 to vector<2x288xf32>
    %531 = arith.mulf %530, %522 : vector<2x288xf32>
    %532 = arith.addf %510, %531 : vector<2x288xf32>
    %c101 = arith.constant 101 : index
    %533 = memref.load %arg0[%c101] : memref<150xf32, #tpu.memory_space<smem>>
    %534 = arith.mulf %1, %533 : f32
    %535 = vector.broadcast %534 : f32 to vector<2x288xf32>
    %536 = arith.mulf %535, %522 : vector<2x288xf32>
    %537 = arith.addf %515, %536 : vector<2x288xf32>
    %c137 = arith.constant 137 : index
    %538 = memref.load %arg0[%c137] : memref<150xf32, #tpu.memory_space<smem>>
    %539 = arith.mulf %1, %538 : f32
    %540 = vector.broadcast %539 : f32 to vector<2x288xf32>
    %541 = arith.mulf %540, %522 : vector<2x288xf32>
    %542 = arith.addf %520, %541 : vector<2x288xf32>
    %c2_69 = arith.constant 2 : index
    %c0_70 = arith.constant 0 : index
    %c36_71 = arith.constant 36 : index
    %543 = vector.load %arg1[%c2_69, %c0_70, %c36_71] : memref<4x2x384xf32, #tpu.memory_space<vmem>>, vector<1x2x288xf32>
    %544 = vector.shape_cast %543 : vector<1x2x288xf32> to vector<2x288xf32>
    %c30 = arith.constant 30 : index
    %545 = memref.load %arg0[%c30] : memref<150xf32, #tpu.memory_space<smem>>
    %546 = arith.mulf %1, %545 : f32
    %547 = vector.broadcast %546 : f32 to vector<2x288xf32>
    %548 = arith.mulf %547, %544 : vector<2x288xf32>
    %549 = arith.addf %527, %548 : vector<2x288xf32>
    %c66 = arith.constant 66 : index
    %550 = memref.load %arg0[%c66] : memref<150xf32, #tpu.memory_space<smem>>
    %551 = arith.mulf %1, %550 : f32
    %552 = vector.broadcast %551 : f32 to vector<2x288xf32>
    %553 = arith.mulf %552, %544 : vector<2x288xf32>
    %554 = arith.addf %532, %553 : vector<2x288xf32>
    %c102 = arith.constant 102 : index
    %555 = memref.load %arg0[%c102] : memref<150xf32, #tpu.memory_space<smem>>
    %556 = arith.mulf %1, %555 : f32
    %557 = vector.broadcast %556 : f32 to vector<2x288xf32>
    %558 = arith.mulf %557, %544 : vector<2x288xf32>
    %559 = arith.addf %537, %558 : vector<2x288xf32>
    %c138 = arith.constant 138 : index
    %560 = memref.load %arg0[%c138] : memref<150xf32, #tpu.memory_space<smem>>
    %561 = arith.mulf %1, %560 : f32
    %562 = vector.broadcast %561 : f32 to vector<2x288xf32>
    %563 = arith.mulf %562, %544 : vector<2x288xf32>
    %564 = arith.addf %542, %563 : vector<2x288xf32>
    %c2_72 = arith.constant 2 : index
    %c0_73 = arith.constant 0 : index
    %c37_74 = arith.constant 37 : index
    %565 = vector.load %arg1[%c2_72, %c0_73, %c37_74] : memref<4x2x384xf32, #tpu.memory_space<vmem>>, vector<1x2x288xf32>
    %566 = vector.shape_cast %565 : vector<1x2x288xf32> to vector<2x288xf32>
    %c31 = arith.constant 31 : index
    %567 = memref.load %arg0[%c31] : memref<150xf32, #tpu.memory_space<smem>>
    %568 = arith.mulf %1, %567 : f32
    %569 = vector.broadcast %568 : f32 to vector<2x288xf32>
    %570 = arith.mulf %569, %566 : vector<2x288xf32>
    %571 = arith.addf %549, %570 : vector<2x288xf32>
    %c67 = arith.constant 67 : index
    %572 = memref.load %arg0[%c67] : memref<150xf32, #tpu.memory_space<smem>>
    %573 = arith.mulf %1, %572 : f32
    %574 = vector.broadcast %573 : f32 to vector<2x288xf32>
    %575 = arith.mulf %574, %566 : vector<2x288xf32>
    %576 = arith.addf %554, %575 : vector<2x288xf32>
    %c103 = arith.constant 103 : index
    %577 = memref.load %arg0[%c103] : memref<150xf32, #tpu.memory_space<smem>>
    %578 = arith.mulf %1, %577 : f32
    %579 = vector.broadcast %578 : f32 to vector<2x288xf32>
    %580 = arith.mulf %579, %566 : vector<2x288xf32>
    %581 = arith.addf %559, %580 : vector<2x288xf32>
    %c139 = arith.constant 139 : index
    %582 = memref.load %arg0[%c139] : memref<150xf32, #tpu.memory_space<smem>>
    %583 = arith.mulf %1, %582 : f32
    %584 = vector.broadcast %583 : f32 to vector<2x288xf32>
    %585 = arith.mulf %584, %566 : vector<2x288xf32>
    %586 = arith.addf %564, %585 : vector<2x288xf32>
    %c2_75 = arith.constant 2 : index
    %c0_76 = arith.constant 0 : index
    %c38_77 = arith.constant 38 : index
    %587 = vector.load %arg1[%c2_75, %c0_76, %c38_77] : memref<4x2x384xf32, #tpu.memory_space<vmem>>, vector<1x2x288xf32>
    %588 = vector.shape_cast %587 : vector<1x2x288xf32> to vector<2x288xf32>
    %c32 = arith.constant 32 : index
    %589 = memref.load %arg0[%c32] : memref<150xf32, #tpu.memory_space<smem>>
    %590 = arith.mulf %1, %589 : f32
    %591 = vector.broadcast %590 : f32 to vector<2x288xf32>
    %592 = arith.mulf %591, %588 : vector<2x288xf32>
    %593 = arith.addf %571, %592 : vector<2x288xf32>
    %c68 = arith.constant 68 : index
    %594 = memref.load %arg0[%c68] : memref<150xf32, #tpu.memory_space<smem>>
    %595 = arith.mulf %1, %594 : f32
    %596 = vector.broadcast %595 : f32 to vector<2x288xf32>
    %597 = arith.mulf %596, %588 : vector<2x288xf32>
    %598 = arith.addf %576, %597 : vector<2x288xf32>
    %c104 = arith.constant 104 : index
    %599 = memref.load %arg0[%c104] : memref<150xf32, #tpu.memory_space<smem>>
    %600 = arith.mulf %1, %599 : f32
    %601 = vector.broadcast %600 : f32 to vector<2x288xf32>
    %602 = arith.mulf %601, %588 : vector<2x288xf32>
    %603 = arith.addf %581, %602 : vector<2x288xf32>
    %c140 = arith.constant 140 : index
    %604 = memref.load %arg0[%c140] : memref<150xf32, #tpu.memory_space<smem>>
    %605 = arith.mulf %1, %604 : f32
    %606 = vector.broadcast %605 : f32 to vector<2x288xf32>
    %607 = arith.mulf %606, %588 : vector<2x288xf32>
    %608 = arith.addf %586, %607 : vector<2x288xf32>
    %c3_78 = arith.constant 3 : index
    %c0_79 = arith.constant 0 : index
    %c0_80 = arith.constant 0 : index
    %609 = vector.load %arg1[%c3_78, %c0_79, %c0_80] : memref<4x2x384xf32, #tpu.memory_space<vmem>>, vector<1x2x288xf32>
    %610 = vector.shape_cast %609 : vector<1x2x288xf32> to vector<2x288xf32>
    %c33 = arith.constant 33 : index
    %611 = memref.load %arg0[%c33] : memref<150xf32, #tpu.memory_space<smem>>
    %612 = arith.mulf %1, %611 : f32
    %613 = vector.broadcast %612 : f32 to vector<2x288xf32>
    %614 = arith.mulf %613, %610 : vector<2x288xf32>
    %615 = arith.addf %593, %614 : vector<2x288xf32>
    %c69 = arith.constant 69 : index
    %616 = memref.load %arg0[%c69] : memref<150xf32, #tpu.memory_space<smem>>
    %617 = arith.mulf %1, %616 : f32
    %618 = vector.broadcast %617 : f32 to vector<2x288xf32>
    %619 = arith.mulf %618, %610 : vector<2x288xf32>
    %620 = arith.addf %598, %619 : vector<2x288xf32>
    %c105 = arith.constant 105 : index
    %621 = memref.load %arg0[%c105] : memref<150xf32, #tpu.memory_space<smem>>
    %622 = arith.mulf %1, %621 : f32
    %623 = vector.broadcast %622 : f32 to vector<2x288xf32>
    %624 = arith.mulf %623, %610 : vector<2x288xf32>
    %625 = arith.addf %603, %624 : vector<2x288xf32>
    %c141 = arith.constant 141 : index
    %626 = memref.load %arg0[%c141] : memref<150xf32, #tpu.memory_space<smem>>
    %627 = arith.mulf %1, %626 : f32
    %628 = vector.broadcast %627 : f32 to vector<2x288xf32>
    %629 = arith.mulf %628, %610 : vector<2x288xf32>
    %630 = arith.addf %608, %629 : vector<2x288xf32>
    %c3_81 = arith.constant 3 : index
    %c0_82 = arith.constant 0 : index
    %c1_83 = arith.constant 1 : index
    %631 = vector.load %arg1[%c3_81, %c0_82, %c1_83] : memref<4x2x384xf32, #tpu.memory_space<vmem>>, vector<1x2x288xf32>
    %632 = vector.shape_cast %631 : vector<1x2x288xf32> to vector<2x288xf32>
    %c34 = arith.constant 34 : index
    %633 = memref.load %arg0[%c34] : memref<150xf32, #tpu.memory_space<smem>>
    %634 = arith.mulf %1, %633 : f32
    %635 = vector.broadcast %634 : f32 to vector<2x288xf32>
    %636 = arith.mulf %635, %632 : vector<2x288xf32>
    %637 = arith.addf %615, %636 : vector<2x288xf32>
    %c70 = arith.constant 70 : index
    %638 = memref.load %arg0[%c70] : memref<150xf32, #tpu.memory_space<smem>>
    %639 = arith.mulf %1, %638 : f32
    %640 = vector.broadcast %639 : f32 to vector<2x288xf32>
    %641 = arith.mulf %640, %632 : vector<2x288xf32>
    %642 = arith.addf %620, %641 : vector<2x288xf32>
    %c106 = arith.constant 106 : index
    %643 = memref.load %arg0[%c106] : memref<150xf32, #tpu.memory_space<smem>>
    %644 = arith.mulf %1, %643 : f32
    %645 = vector.broadcast %644 : f32 to vector<2x288xf32>
    %646 = arith.mulf %645, %632 : vector<2x288xf32>
    %647 = arith.addf %625, %646 : vector<2x288xf32>
    %c142 = arith.constant 142 : index
    %648 = memref.load %arg0[%c142] : memref<150xf32, #tpu.memory_space<smem>>
    %649 = arith.mulf %1, %648 : f32
    %650 = vector.broadcast %649 : f32 to vector<2x288xf32>
    %651 = arith.mulf %650, %632 : vector<2x288xf32>
    %652 = arith.addf %630, %651 : vector<2x288xf32>
    %c3_84 = arith.constant 3 : index
    %c0_85 = arith.constant 0 : index
    %c2_86 = arith.constant 2 : index
    %653 = vector.load %arg1[%c3_84, %c0_85, %c2_86] : memref<4x2x384xf32, #tpu.memory_space<vmem>>, vector<1x2x288xf32>
    %654 = vector.shape_cast %653 : vector<1x2x288xf32> to vector<2x288xf32>
    %c35 = arith.constant 35 : index
    %655 = memref.load %arg0[%c35] : memref<150xf32, #tpu.memory_space<smem>>
    %656 = arith.mulf %1, %655 : f32
    %657 = vector.broadcast %656 : f32 to vector<2x288xf32>
    %658 = arith.mulf %657, %654 : vector<2x288xf32>
    %659 = arith.addf %637, %658 : vector<2x288xf32>
    %c71 = arith.constant 71 : index
    %660 = memref.load %arg0[%c71] : memref<150xf32, #tpu.memory_space<smem>>
    %661 = arith.mulf %1, %660 : f32
    %662 = vector.broadcast %661 : f32 to vector<2x288xf32>
    %663 = arith.mulf %662, %654 : vector<2x288xf32>
    %664 = arith.addf %642, %663 : vector<2x288xf32>
    %c107 = arith.constant 107 : index
    %665 = memref.load %arg0[%c107] : memref<150xf32, #tpu.memory_space<smem>>
    %666 = arith.mulf %1, %665 : f32
    %667 = vector.broadcast %666 : f32 to vector<2x288xf32>
    %668 = arith.mulf %667, %654 : vector<2x288xf32>
    %669 = arith.addf %647, %668 : vector<2x288xf32>
    %c143 = arith.constant 143 : index
    %670 = memref.load %arg0[%c143] : memref<150xf32, #tpu.memory_space<smem>>
    %671 = arith.mulf %1, %670 : f32
    %672 = vector.broadcast %671 : f32 to vector<2x288xf32>
    %673 = arith.mulf %672, %654 : vector<2x288xf32>
    %674 = arith.addf %652, %673 : vector<2x288xf32>
    %c3_87 = arith.constant 3 : index
    %c0_88 = arith.constant 0 : index
    %c18_89 = arith.constant 18 : index
    %675 = vector.load %arg1[%c3_87, %c0_88, %c18_89] : memref<4x2x384xf32, #tpu.memory_space<vmem>>, vector<1x2x288xf32>
    %676 = vector.shape_cast %675 : vector<1x2x288xf32> to vector<2x288xf32>
    %c36_90 = arith.constant 36 : index
    %677 = memref.load %arg0[%c36_90] : memref<150xf32, #tpu.memory_space<smem>>
    %678 = arith.mulf %1, %677 : f32
    %679 = vector.broadcast %678 : f32 to vector<2x288xf32>
    %680 = arith.mulf %679, %676 : vector<2x288xf32>
    %681 = arith.addf %659, %680 : vector<2x288xf32>
    %c72 = arith.constant 72 : index
    %682 = memref.load %arg0[%c72] : memref<150xf32, #tpu.memory_space<smem>>
    %683 = arith.mulf %1, %682 : f32
    %684 = vector.broadcast %683 : f32 to vector<2x288xf32>
    %685 = arith.mulf %684, %676 : vector<2x288xf32>
    %686 = arith.addf %664, %685 : vector<2x288xf32>
    %c108 = arith.constant 108 : index
    %687 = memref.load %arg0[%c108] : memref<150xf32, #tpu.memory_space<smem>>
    %688 = arith.mulf %1, %687 : f32
    %689 = vector.broadcast %688 : f32 to vector<2x288xf32>
    %690 = arith.mulf %689, %676 : vector<2x288xf32>
    %691 = arith.addf %669, %690 : vector<2x288xf32>
    %c144 = arith.constant 144 : index
    %692 = memref.load %arg0[%c144] : memref<150xf32, #tpu.memory_space<smem>>
    %693 = arith.mulf %1, %692 : f32
    %694 = vector.broadcast %693 : f32 to vector<2x288xf32>
    %695 = arith.mulf %694, %676 : vector<2x288xf32>
    %696 = arith.addf %674, %695 : vector<2x288xf32>
    %c3_91 = arith.constant 3 : index
    %c0_92 = arith.constant 0 : index
    %c19_93 = arith.constant 19 : index
    %697 = vector.load %arg1[%c3_91, %c0_92, %c19_93] : memref<4x2x384xf32, #tpu.memory_space<vmem>>, vector<1x2x288xf32>
    %698 = vector.shape_cast %697 : vector<1x2x288xf32> to vector<2x288xf32>
    %c37_94 = arith.constant 37 : index
    %699 = memref.load %arg0[%c37_94] : memref<150xf32, #tpu.memory_space<smem>>
    %700 = arith.mulf %1, %699 : f32
    %701 = vector.broadcast %700 : f32 to vector<2x288xf32>
    %702 = arith.mulf %701, %698 : vector<2x288xf32>
    %703 = arith.addf %681, %702 : vector<2x288xf32>
    %c73 = arith.constant 73 : index
    %704 = memref.load %arg0[%c73] : memref<150xf32, #tpu.memory_space<smem>>
    %705 = arith.mulf %1, %704 : f32
    %706 = vector.broadcast %705 : f32 to vector<2x288xf32>
    %707 = arith.mulf %706, %698 : vector<2x288xf32>
    %708 = arith.addf %686, %707 : vector<2x288xf32>
    %c109 = arith.constant 109 : index
    %709 = memref.load %arg0[%c109] : memref<150xf32, #tpu.memory_space<smem>>
    %710 = arith.mulf %1, %709 : f32
    %711 = vector.broadcast %710 : f32 to vector<2x288xf32>
    %712 = arith.mulf %711, %698 : vector<2x288xf32>
    %713 = arith.addf %691, %712 : vector<2x288xf32>
    %c145 = arith.constant 145 : index
    %714 = memref.load %arg0[%c145] : memref<150xf32, #tpu.memory_space<smem>>
    %715 = arith.mulf %1, %714 : f32
    %716 = vector.broadcast %715 : f32 to vector<2x288xf32>
    %717 = arith.mulf %716, %698 : vector<2x288xf32>
    %718 = arith.addf %696, %717 : vector<2x288xf32>
    %c3_95 = arith.constant 3 : index
    %c0_96 = arith.constant 0 : index
    %c20_97 = arith.constant 20 : index
    %719 = vector.load %arg1[%c3_95, %c0_96, %c20_97] : memref<4x2x384xf32, #tpu.memory_space<vmem>>, vector<1x2x288xf32>
    %720 = vector.shape_cast %719 : vector<1x2x288xf32> to vector<2x288xf32>
    %c38_98 = arith.constant 38 : index
    %721 = memref.load %arg0[%c38_98] : memref<150xf32, #tpu.memory_space<smem>>
    %722 = arith.mulf %1, %721 : f32
    %723 = vector.broadcast %722 : f32 to vector<2x288xf32>
    %724 = arith.mulf %723, %720 : vector<2x288xf32>
    %725 = arith.addf %703, %724 : vector<2x288xf32>
    %c74 = arith.constant 74 : index
    %726 = memref.load %arg0[%c74] : memref<150xf32, #tpu.memory_space<smem>>
    %727 = arith.mulf %1, %726 : f32
    %728 = vector.broadcast %727 : f32 to vector<2x288xf32>
    %729 = arith.mulf %728, %720 : vector<2x288xf32>
    %730 = arith.addf %708, %729 : vector<2x288xf32>
    %c110 = arith.constant 110 : index
    %731 = memref.load %arg0[%c110] : memref<150xf32, #tpu.memory_space<smem>>
    %732 = arith.mulf %1, %731 : f32
    %733 = vector.broadcast %732 : f32 to vector<2x288xf32>
    %734 = arith.mulf %733, %720 : vector<2x288xf32>
    %735 = arith.addf %713, %734 : vector<2x288xf32>
    %c146 = arith.constant 146 : index
    %736 = memref.load %arg0[%c146] : memref<150xf32, #tpu.memory_space<smem>>
    %737 = arith.mulf %1, %736 : f32
    %738 = vector.broadcast %737 : f32 to vector<2x288xf32>
    %739 = arith.mulf %738, %720 : vector<2x288xf32>
    %740 = arith.addf %718, %739 : vector<2x288xf32>
    %c3_99 = arith.constant 3 : index
    %c0_100 = arith.constant 0 : index
    %c36_101 = arith.constant 36 : index
    %741 = vector.load %arg1[%c3_99, %c0_100, %c36_101] : memref<4x2x384xf32, #tpu.memory_space<vmem>>, vector<1x2x288xf32>
    %742 = vector.shape_cast %741 : vector<1x2x288xf32> to vector<2x288xf32>
    %c39 = arith.constant 39 : index
    %743 = memref.load %arg0[%c39] : memref<150xf32, #tpu.memory_space<smem>>
    %744 = arith.mulf %1, %743 : f32
    %745 = vector.broadcast %744 : f32 to vector<2x288xf32>
    %746 = arith.mulf %745, %742 : vector<2x288xf32>
    %747 = arith.addf %725, %746 : vector<2x288xf32>
    %c75 = arith.constant 75 : index
    %748 = memref.load %arg0[%c75] : memref<150xf32, #tpu.memory_space<smem>>
    %749 = arith.mulf %1, %748 : f32
    %750 = vector.broadcast %749 : f32 to vector<2x288xf32>
    %751 = arith.mulf %750, %742 : vector<2x288xf32>
    %752 = arith.addf %730, %751 : vector<2x288xf32>
    %c111 = arith.constant 111 : index
    %753 = memref.load %arg0[%c111] : memref<150xf32, #tpu.memory_space<smem>>
    %754 = arith.mulf %1, %753 : f32
    %755 = vector.broadcast %754 : f32 to vector<2x288xf32>
    %756 = arith.mulf %755, %742 : vector<2x288xf32>
    %757 = arith.addf %735, %756 : vector<2x288xf32>
    %c147 = arith.constant 147 : index
    %758 = memref.load %arg0[%c147] : memref<150xf32, #tpu.memory_space<smem>>
    %759 = arith.mulf %1, %758 : f32
    %760 = vector.broadcast %759 : f32 to vector<2x288xf32>
    %761 = arith.mulf %760, %742 : vector<2x288xf32>
    %762 = arith.addf %740, %761 : vector<2x288xf32>
    %c3_102 = arith.constant 3 : index
    %c0_103 = arith.constant 0 : index
    %c37_104 = arith.constant 37 : index
    %763 = vector.load %arg1[%c3_102, %c0_103, %c37_104] : memref<4x2x384xf32, #tpu.memory_space<vmem>>, vector<1x2x288xf32>
    %764 = vector.shape_cast %763 : vector<1x2x288xf32> to vector<2x288xf32>
    %c40 = arith.constant 40 : index
    %765 = memref.load %arg0[%c40] : memref<150xf32, #tpu.memory_space<smem>>
    %766 = arith.mulf %1, %765 : f32
    %767 = vector.broadcast %766 : f32 to vector<2x288xf32>
    %768 = arith.mulf %767, %764 : vector<2x288xf32>
    %769 = arith.addf %747, %768 : vector<2x288xf32>
    %c76 = arith.constant 76 : index
    %770 = memref.load %arg0[%c76] : memref<150xf32, #tpu.memory_space<smem>>
    %771 = arith.mulf %1, %770 : f32
    %772 = vector.broadcast %771 : f32 to vector<2x288xf32>
    %773 = arith.mulf %772, %764 : vector<2x288xf32>
    %774 = arith.addf %752, %773 : vector<2x288xf32>
    %c112 = arith.constant 112 : index
    %775 = memref.load %arg0[%c112] : memref<150xf32, #tpu.memory_space<smem>>
    %776 = arith.mulf %1, %775 : f32
    %777 = vector.broadcast %776 : f32 to vector<2x288xf32>
    %778 = arith.mulf %777, %764 : vector<2x288xf32>
    %779 = arith.addf %757, %778 : vector<2x288xf32>
    %c148 = arith.constant 148 : index
    %780 = memref.load %arg0[%c148] : memref<150xf32, #tpu.memory_space<smem>>
    %781 = arith.mulf %1, %780 : f32
    %782 = vector.broadcast %781 : f32 to vector<2x288xf32>
    %783 = arith.mulf %782, %764 : vector<2x288xf32>
    %784 = arith.addf %762, %783 : vector<2x288xf32>
    %c3_105 = arith.constant 3 : index
    %c0_106 = arith.constant 0 : index
    %c38_107 = arith.constant 38 : index
    %785 = vector.load %arg1[%c3_105, %c0_106, %c38_107] : memref<4x2x384xf32, #tpu.memory_space<vmem>>, vector<1x2x288xf32>
    %786 = vector.shape_cast %785 : vector<1x2x288xf32> to vector<2x288xf32>
    %c41 = arith.constant 41 : index
    %787 = memref.load %arg0[%c41] : memref<150xf32, #tpu.memory_space<smem>>
    %788 = arith.mulf %1, %787 : f32
    %789 = vector.broadcast %788 : f32 to vector<2x288xf32>
    %790 = arith.mulf %789, %786 : vector<2x288xf32>
    %791 = arith.addf %769, %790 : vector<2x288xf32>
    %c77 = arith.constant 77 : index
    %792 = memref.load %arg0[%c77] : memref<150xf32, #tpu.memory_space<smem>>
    %793 = arith.mulf %1, %792 : f32
    %794 = vector.broadcast %793 : f32 to vector<2x288xf32>
    %795 = arith.mulf %794, %786 : vector<2x288xf32>
    %796 = arith.addf %774, %795 : vector<2x288xf32>
    %c113 = arith.constant 113 : index
    %797 = memref.load %arg0[%c113] : memref<150xf32, #tpu.memory_space<smem>>
    %798 = arith.mulf %1, %797 : f32
    %799 = vector.broadcast %798 : f32 to vector<2x288xf32>
    %800 = arith.mulf %799, %786 : vector<2x288xf32>
    %801 = arith.addf %779, %800 : vector<2x288xf32>
    %c149 = arith.constant 149 : index
    %802 = memref.load %arg0[%c149] : memref<150xf32, #tpu.memory_space<smem>>
    %803 = arith.mulf %1, %802 : f32
    %804 = vector.broadcast %803 : f32 to vector<2x288xf32>
    %805 = arith.mulf %804, %786 : vector<2x288xf32>
    %806 = arith.addf %784, %805 : vector<2x288xf32>
    %c0_108 = arith.constant 0 : index
    %c0_109 = arith.constant 0 : index
    %c19_110 = arith.constant 19 : index
    %807 = vector.load %arg1[%c0_108, %c0_109, %c19_110] : memref<4x2x384xf32, #tpu.memory_space<vmem>>, vector<1x2x288xf32>
    %808 = vector.shape_cast %807 : vector<1x2x288xf32> to vector<2x288xf32>
    %809 = arith.subf %808, %791 : vector<2x288xf32>
    %c0_111 = arith.constant 0 : index
    %c0_112 = arith.constant 0 : index
    %c0_113 = arith.constant 0 : index
    %810 = vector.load %arg2[%c0_111, %c0_112, %c0_113] : memref<4x2x288xf32, #tpu.memory_space<vmem>>, vector<1x2x288xf32>
    %811 = vector.shape_cast %810 : vector<1x2x288xf32> to vector<2x288xf32>
    %812 = arith.mulf %811, %808 : vector<2x288xf32>
    %813 = vector.broadcast %2 : f32 to vector<2x288xf32>
    %814 = arith.mulf %813, %812 : vector<2x288xf32>
    %815 = arith.addf %814, %809 : vector<2x288xf32>
    %816 = vector.broadcast %2 : f32 to vector<2x288xf32>
    %817 = arith.mulf %816, %811 : vector<2x288xf32>
    %cst_114 = arith.constant 1.000000e+00 : f32
    %818 = vector.broadcast %cst_114 : f32 to vector<2x288xf32>
    %819 = arith.addf %817, %818 : vector<2x288xf32>
    %820 = arith.divf %815, %819 : vector<2x288xf32>
    %c0_115 = arith.constant 0 : index
    %c0_116 = arith.constant 0 : index
    %c0_117 = arith.constant 0 : index
    %821 = vector.load %arg3[%c0_115, %c0_116, %c0_117] : memref<4x2x288xf32, #tpu.memory_space<vmem>>, vector<1x2x288xf32>
    %822 = vector.shape_cast %821 : vector<1x2x288xf32> to vector<2x288xf32>
    %823 = vector.shape_cast %820 : vector<2x288xf32> to vector<1x2x288xf32>
    tpu.vector_store %arg3[%c0_115, %c0_116, %c0_117], %823 {strides = array<i32>} : memref<4x2x288xf32, #tpu.memory_space<vmem>>, vector<1x2x288xf32>,
    %c1_118 = arith.constant 1 : index
    %c0_119 = arith.constant 0 : index
    %c19_120 = arith.constant 19 : index
    %824 = vector.load %arg1[%c1_118, %c0_119, %c19_120] : memref<4x2x384xf32, #tpu.memory_space<vmem>>, vector<1x2x288xf32>
    %825 = vector.shape_cast %824 : vector<1x2x288xf32> to vector<2x288xf32>
    %826 = arith.subf %825, %796 : vector<2x288xf32>
    %c1_121 = arith.constant 1 : index
    %c0_122 = arith.constant 0 : index
    %c0_123 = arith.constant 0 : index
    %827 = vector.load %arg2[%c1_121, %c0_122, %c0_123] : memref<4x2x288xf32, #tpu.memory_space<vmem>>, vector<1x2x288xf32>
    %828 = vector.shape_cast %827 : vector<1x2x288xf32> to vector<2x288xf32>
    %829 = arith.mulf %828, %825 : vector<2x288xf32>
    %830 = vector.broadcast %2 : f32 to vector<2x288xf32>
    %831 = arith.mulf %830, %829 : vector<2x288xf32>
    %832 = arith.addf %831, %826 : vector<2x288xf32>
    %833 = vector.broadcast %2 : f32 to vector<2x288xf32>
    %834 = arith.mulf %833, %828 : vector<2x288xf32>
    %cst_124 = arith.constant 1.000000e+00 : f32
    %835 = vector.broadcast %cst_124 : f32 to vector<2x288xf32>
    %836 = arith.addf %834, %835 : vector<2x288xf32>
    %837 = arith.divf %832, %836 : vector<2x288xf32>
    %c1_125 = arith.constant 1 : index
    %c0_126 = arith.constant 0 : index
    %c0_127 = arith.constant 0 : index
    %838 = vector.load %arg3[%c1_125, %c0_126, %c0_127] : memref<4x2x288xf32, #tpu.memory_space<vmem>>, vector<1x2x288xf32>
    %839 = vector.shape_cast %838 : vector<1x2x288xf32> to vector<2x288xf32>
    %840 = vector.shape_cast %837 : vector<2x288xf32> to vector<1x2x288xf32>
    tpu.vector_store %arg3[%c1_125, %c0_126, %c0_127], %840 {strides = array<i32>} : memref<4x2x288xf32, #tpu.memory_space<vmem>>, vector<1x2x288xf32>,
    %c2_128 = arith.constant 2 : index
    %c0_129 = arith.constant 0 : index
    %c19_130 = arith.constant 19 : index
    %841 = vector.load %arg1[%c2_128, %c0_129, %c19_130] : memref<4x2x384xf32, #tpu.memory_space<vmem>>, vector<1x2x288xf32>
    %842 = vector.shape_cast %841 : vector<1x2x288xf32> to vector<2x288xf32>
    %843 = arith.subf %842, %801 : vector<2x288xf32>
    %c2_131 = arith.constant 2 : index
    %c0_132 = arith.constant 0 : index
    %c0_133 = arith.constant 0 : index
    %844 = vector.load %arg2[%c2_131, %c0_132, %c0_133] : memref<4x2x288xf32, #tpu.memory_space<vmem>>, vector<1x2x288xf32>
    %845 = vector.shape_cast %844 : vector<1x2x288xf32> to vector<2x288xf32>
    %846 = arith.mulf %845, %842 : vector<2x288xf32>
    %847 = vector.broadcast %2 : f32 to vector<2x288xf32>
    %848 = arith.mulf %847, %846 : vector<2x288xf32>
    %849 = arith.addf %848, %843 : vector<2x288xf32>
    %850 = vector.broadcast %2 : f32 to vector<2x288xf32>
    %851 = arith.mulf %850, %845 : vector<2x288xf32>
    %cst_134 = arith.constant 1.000000e+00 : f32
    %852 = vector.broadcast %cst_134 : f32 to vector<2x288xf32>
    %853 = arith.addf %851, %852 : vector<2x288xf32>
    %854 = arith.divf %849, %853 : vector<2x288xf32>
    %c2_135 = arith.constant 2 : index
    %c0_136 = arith.constant 0 : index
    %c0_137 = arith.constant 0 : index
    %855 = vector.load %arg3[%c2_135, %c0_136, %c0_137] : memref<4x2x288xf32, #tpu.memory_space<vmem>>, vector<1x2x288xf32>
    %856 = vector.shape_cast %855 : vector<1x2x288xf32> to vector<2x288xf32>
    %857 = vector.shape_cast %854 : vector<2x288xf32> to vector<1x2x288xf32>
    tpu.vector_store %arg3[%c2_135, %c0_136, %c0_137], %857 {strides = array<i32>} : memref<4x2x288xf32, #tpu.memory_space<vmem>>, vector<1x2x288xf32>,
    %c3_138 = arith.constant 3 : index
    %c0_139 = arith.constant 0 : index
    %c19_140 = arith.constant 19 : index
    %858 = vector.load %arg1[%c3_138, %c0_139, %c19_140] : memref<4x2x384xf32, #tpu.memory_space<vmem>>, vector<1x2x288xf32>
    %859 = vector.shape_cast %858 : vector<1x2x288xf32> to vector<2x288xf32>
    %860 = arith.subf %859, %806 : vector<2x288xf32>
    %c3_141 = arith.constant 3 : index
    %c0_142 = arith.constant 0 : index
    %c0_143 = arith.constant 0 : index
    %861 = vector.load %arg2[%c3_141, %c0_142, %c0_143] : memref<4x2x288xf32, #tpu.memory_space<vmem>>, vector<1x2x288xf32>
    %862 = vector.shape_cast %861 : vector<1x2x288xf32> to vector<2x288xf32>
    %863 = arith.mulf %862, %859 : vector<2x288xf32>
    %864 = vector.broadcast %2 : f32 to vector<2x288xf32>
    %865 = arith.mulf %864, %863 : vector<2x288xf32>
    %866 = arith.addf %865, %860 : vector<2x288xf32>
    %867 = vector.broadcast %2 : f32 to vector<2x288xf32>
    %868 = arith.mulf %867, %862 : vector<2x288xf32>
    %cst_144 = arith.constant 1.000000e+00 : f32
    %869 = vector.broadcast %cst_144 : f32 to vector<2x288xf32>
    %870 = arith.addf %868, %869 : vector<2x288xf32>
    %871 = arith.divf %866, %870 : vector<2x288xf32>
    %c3_145 = arith.constant 3 : index
    %c0_146 = arith.constant 0 : index
    %c0_147 = arith.constant 0 : index
    %872 = vector.load %arg3[%c3_145, %c0_146, %c0_147] : memref<4x2x288xf32, #tpu.memory_space<vmem>>, vector<1x2x288xf32>
    %873 = vector.shape_cast %872 : vector<1x2x288xf32> to vector<2x288xf32>
    %874 = vector.shape_cast %871 : vector<2x288xf32> to vector<1x2x288xf32>
    tpu.vector_store %arg3[%c3_145, %c0_146, %c0_147], %874 {strides = array<i32>} : memref<4x2x288xf32, #tpu.memory_space<vmem>>, vector<1x2x288xf32>,
    return
  }
}

</mosaic_0001>

<bundles_post_ra>
// kernel: tpu_custom_call.1
= control target key start
LH: loop header
LB: loop body
LE: loop exit
PB: predicated region body
PF: predicated region fallthrough
CT: control target
= control target key end

     0   :  { %s3502_s0 = inlined_call_operand.hbm [shape: f32[150], index: 0, kind: input, shape index: {}]   ;;  %s3503_s1 = inlined_call_operand.hbm [shape: f32[4,2,384], index: 1, kind: input, shape index: {}]   ;;  %s3504_s2 = inlined_call_operand.hbm [shape: f32[4,2,288], index: 2, kind: input, shape index: {}]   ;;  %s3505_s3 = inlined_call_operand.hbm [shape: f32[4,2,288], index: 3, kind: output, shape index: {}]  }
   0x1   :  { %3532 = sst [smem:[#allocation29_spill]] %s3505_s3 }
   0x2   :  { %8 = vsyncpa [#allocation5], 0 }
   0x3   :  { %9 = vsyncpa [#allocation3], 0 }
   0x4   :  { %10 = vsyncpa [#allocation8], 0 }
   0x5   :  { %11 = vsyncpa [#allocation4], 0  ;;  %s1900_s14 = scalar_lea.hbm %s3502_s0, 32 }
   0x6   :  { %p1901_p0 = scmp.ne.s32.totalorder %s3502_s0, %s1900_s14  ;;  %p1904_p1 = scmp.lt.u32.totalorder %s1900_s14, %s3502_s0 }
   0x8   :  { %p1906_p2 = pnand %p1904_p1, %p1901_p0 }
   0xa   :  { %1909 = shalt.err (!%p1906_p2)
}
   0xb   :  { %s1984_s19 = smov [#allocation2]   ;;  %s1985_s22 = smov [#allocation6]  }
   0xc   :  { %19 = dma.hbm_to_smem %s3502_s0, 32, %s1984_s19, [#allocation5]  }
   0xd   :  { %s25_s23 = sshll.u32 %s1985_s22, 4  ;;  %s1910_s26 = scalar_lea.hbm %s3503_s1, 384  ;;  %s26_s23 = int_to_ptr.vmem [resolvable:$true] %s25_s23 }
   0xe   :  { %p1911_p3 = scmp.ne.s32.totalorder %s3503_s1, %s1910_s26  ;;  %p1914_p4 = scmp.lt.u32.totalorder %s1910_s26, %s3503_s1 }
  0x10   :  { %p1916_p5 = pnand %p1914_p4, %p1911_p3 }
  0x12   :  { %1919 = shalt.err (!%p1916_p5)
}
  0x13   :  { %s1920_s4 = scalar_lea.vmem %s26_s23, 384  ;;  %p1925_p7 = scmp.lt.s32.totalorder %s26_s23, %s26_s23 }
  0x14   :  { %p1921_p6 = scmp.ne.s32.totalorder %s26_s23, %s1920_s4  ;;  %p1926_p8 = scmp.lt.s32.totalorder %s1920_s4, %s1920_s4 }
  0x16   :  { %p1927_p9 = por %p1926_p8, %p1925_p7 }
  0x18   :  { %p1928_p10 = pnand %p1927_p9, %p1921_p6 }
  0x1a   :  { %1931 = shalt.err (!%p1928_p10)
}
  0x1b   :  { %s3506_s0 = smov 96   ;;  %s3507_s5 = smov 6  }
  0x1c   :  { %31 = dma.hbm_to_vmem [thread:$0]  %s3503_s1, 384, %s26_s23, [#allocation3], %s3506_s0, %s3506_s0, %s3507_s5  }
  0x1d   :  { %s1988_s8 = smov [#allocation7]   ;;  %s1932_s12 = scalar_lea.hbm %s3504_s2, 384 }
  0x1e   :  { %s37_s9 = sshll.u32 %s1988_s8, 4  ;;  %p1933_p11 = scmp.ne.s32.totalorder %s3504_s2, %s1932_s12  ;;  %s38_s9 = int_to_ptr.vmem [resolvable:$true] %s37_s9 }
  0x1f   :  { %p1936_p12 = scmp.lt.u32.totalorder %s1932_s12, %s3504_s2 }
  0x21   :  { %p1938_p13 = pnand %p1936_p12, %p1933_p11 }
  0x23   :  { %1941 = shalt.err (!%p1938_p13)
}
  0x24   :  { %s1942_s17 = scalar_lea.vmem %s38_s9, 384  ;;  %p1947_p1 = scmp.lt.s32.totalorder %s38_s9, %s38_s9 }
  0x25   :  { %p1943_p0 = scmp.ne.s32.totalorder %s38_s9, %s1942_s17  ;;  %p1948_p2 = scmp.lt.s32.totalorder %s1942_s17, %s1942_s17 }
  0x27   :  { %p1949_p3 = por %p1948_p2, %p1947_p1 }
  0x29   :  { %p1950_p4 = pnand %p1949_p3, %p1943_p0 }
  0x2b   :  { %1953 = shalt.err (!%p1950_p4)
}
  0x2c   :  { %43 = dma.hbm_to_vmem [thread:$0]  %s3504_s2, 384, %s38_s9, [#allocation8], %s3506_s0, %s3506_s0, %s3507_s5  }
  0x2d   :  { %1976 = dma.done.wait [#allocation5], 32  }
  0x2e   :  { %1977 = vsyncadd [#allocation5], 4294967264 }
  0x2f   :  { %1978 = dma.done.wait [#allocation3], 384  }
  0x30   :  { %1979 = vsyncadd [#allocation3], 4294966912 }
  0x31   :  { %1980 = dma.done.wait [#allocation8], 384  }
  0x32   :  { %1981 = vsyncadd [#allocation8], 4294966912 }
  0x33   :  { %53 = sfence }
  0x34   :  { %s2061_s19 = sld [smem:[#allocation2 + $0x1]]  ;;  %s1732_s20 = sld [smem:[#allocation2 + $0x4f]]  ;;  %v2067_v0 = vld [vmem:[#allocation6] sm:$0x3f]  ;;  %vm100_vm0 = vcmask 1039360   ;;  %vm145_vm1 = vcmask 1031168  }
  0x35   :  { %s1730_s21 = sld [smem:[#allocation2 + $0x7]]  ;;  %s1733_s22 = sld [smem:[#allocation2 + $0x73]]  ;;  %vm190_vm2 = vcmask 900096   ;;  %vm235_vm3 = vcmask 891904   ;;  %vm280_vm4 = vcmask 883712   ;;  %vm325_vm5 = vcmask 752640  }
  0x36   :  { %s1731_s23 = sld [smem:[#allocation2 + $0x2b]]  ;;  %s1735_s24 = sld [smem:[#allocation2 + $0x2c]]  ;;  %vm370_vm6 = vcmask 744448   ;;  %vm415_vm7 = vcmask 736256   ;;  %vm1578_vm8 = vcmask 154624   ;;  %vm1603_vm9 = vcmask 1041408  }
  0x37   :  { %s1734_s2 = sld [smem:[#allocation2 + $0x8]]  ;;  %s2063_s25 = sld [smem:[#allocation2 + $0x74]]  ;;  %vm1604_vm10 = vcmask 1043458   ;;  %vm1606_vm12 = vcmask 259076  }
  0x38   :  { %s2065_s26 = sld [smem:[#allocation2 + $0x50]]  ;;  %s2072_s30 = sld [smem:[#allocation2 + $0x2d]]  ;;  %vm1605_vm11 = vmor %vm1604_vm10, %vm1603_vm9 }
  0x39   :  { %s2076_s6 = sld [smem:[#allocation2 + $0x9]]  ;;  %s3518_s8 = smov 127   ;;  %vm3473_vm13 = vmor %vm1606_vm12, %vm1605_vm11 }
  0x3a   :  { %s116_s27 = smul.f32 %s1732_s20, %s2061_s19  ;;  %s2087_s11 = sld [smem:[#allocation2 + $0x75]] }
  0x3b   :  { %s93_s28 = smul.f32 %s1730_s21, %s2061_s19  ;;  %s2091_s13 = sld [smem:[#allocation2 + $0x51]] }
  0x3c   :  { %v117_v1 = vstv %s116_s27  ;;  %s127_s29 = smul.f32 %s1733_s22, %s2061_s19  ;;  %s2099_s15 = sld [smem:[#allocation2 + $0x2e]] }
  0x3d   :  { %v118_v2 = vmul.f32 %v117_v1, %v2067_v0  ;;  %v94_v3 = vstv %s93_s28  ;;  %s105_s4 = smul.f32 %s1731_s23, %s2061_s19  ;;  %s2103_s17 = sld [smem:[#allocation2 + $0xa]] }
  0x3e   :  { %v95_v4 = vmul.f32 %v94_v3, %v2067_v0  ;;  %v128_v5 = vstv %s127_s29  ;;  %s150_s7 = smul.f32 %s1735_s24, %s2061_s19  ;;  %s3523_s1 = smov 126  }
  0x3f   :  { %120 = vrot.lane.b32.xlu1 %v118_v2, %s3518_s8  ;;  %v129_v6 = vmul.f32 %v128_v5, %v2067_v0  ;;  %v106_v7 = vstv %s105_s4  ;;  %s138_s9 = smul.f32 %s1734_s2, %s2061_s19  ;;  %s2111_s20 = sld [smem:[#allocation2 + $0x76]]  ;;  %v2253_v2 = vld [vmem:[#allocation6 + $0x6] sm:$0x3f] }
  0x40   :  { %97 = vrot.lane.b32.xlu0 %v95_v4, %s3518_s8  ;;  %v107_v8 = vmul.f32 %v106_v7, %v2067_v0  ;;  %v151_v9 = vstv %s150_s7  ;;  %s172_s10 = smul.f32 %s2063_s25, %s2061_s19  ;;  %s2115_s22 = sld [smem:[#allocation2 + $0x52]] }
  0x41   :  { %v139_v10 = vstv %s138_s9  ;;  %s161_s12 = smul.f32 %s2065_s26, %s2061_s19  ;;  %v152_v11 = vmul.f32 %v151_v9, %v2067_v0  ;;  %s2123_s24 = sld [smem:[#allocation2 + $0x2f]] }
  0x42   :  { %v140_v12 = vmul.f32 %v139_v10, %v2067_v0  ;;  %v173_v13 = vstv %s172_s10  ;;  %s195_s14 = smul.f32 %s2072_s30, %s2061_s19  ;;  %s2127_s25 = sld [smem:[#allocation2 + $0xb]] }
  0x43   :  { %131 = vrot.lane.b32.xlu1 %v129_v6, %s3518_s8  ;;  %v162_v14 = vstv %s161_s12  ;;  %s183_s16 = smul.f32 %s2076_s6, %s2061_s19  ;;  %v174_v15 = vmul.f32 %v173_v13, %v2067_v0  ;;  %s3520_s26 = smov 110  }
  0x44   :  { %109 = vrot.lane.b32.xlu0 %v107_v8, %s3518_s8  ;;  %v163_v16 = vmul.f32 %v162_v14, %v2067_v0  ;;  %v196_v17 = vstv %s195_s14  ;;  %s217_s18 = smul.f32 %s2087_s11, %s2061_s19  ;;  %s2135_s28 = sld [smem:[#allocation2 + $0x77]] }
  0x45   :  { %v184_v18 = vstv %s183_s16  ;;  %s206_s21 = smul.f32 %s2091_s13, %s2061_s19  ;;  %v197_v19 = vmul.f32 %v196_v17, %v2067_v0  ;;  %s2139_s30 = sld [smem:[#allocation2 + $0x53]] }
  0x46   :  { %v185_v20 = vmul.f32 %v184_v18, %v2067_v0  ;;  %v218_v21 = vstv %s217_s18  ;;  %s240_s23 = smul.f32 %s2099_s15, %s2061_s19  ;;  %s2147_s6 = sld [smem:[#allocation2 + $0x30]] }
  0x47   :  { %154 = vrot.lane.b32.xlu1 %v152_v11, %s3523_s1  ;;  %v207_v22 = vstv %s206_s21  ;;  %s228_s2 = smul.f32 %s2103_s17, %s2061_s19  ;;  %v219_v23 = vmul.f32 %v218_v21, %v2067_v0  ;;  %s2151_s9 = sld [smem:[#allocation2 + $0xc]] }
  0x48   :  { %142 = vrot.lane.b32.xlu0 %v140_v12, %s3523_s1  ;;  %v208_v24 = vmul.f32 %v207_v22, %v2067_v0  ;;  %v241_v25 = vstv %s240_s23  ;;  %s262_s27 = smul.f32 %s2111_s20, %s2061_s19  ;;  %s3516_s10 = smov 109  }
  0x49   :  { %v229_v26 = vstv %s228_s2  ;;  %s251_s29 = smul.f32 %s2115_s22, %s2061_s19  ;;  %v242_v27 = vmul.f32 %v241_v25, %v2067_v0  ;;  %s2159_s12 = sld [smem:[#allocation2 + $0x78]] }
  0x4a   :  { %v230_v28 = vmul.f32 %v229_v26, %v2067_v0  ;;  %v263_v29 = vstv %s262_s27  ;;  %s285_s4 = smul.f32 %s2123_s24, %s2061_s19  ;;  %s2163_s14 = sld [smem:[#allocation2 + $0x54]] }
  0x4b   :  { %176 = vrot.lane.b32.xlu1 %v174_v15, %s3523_s1  ;;  %v252_v30 = vstv %s251_s29  ;;  %s273_s7 = smul.f32 %s2127_s25, %s2061_s19  ;;  %v264_v31 = vmul.f32 %v263_v29, %v2067_v0  ;;  %s2171_s16 = sld [smem:[#allocation2 + $0x31]] }
  0x4c   :  { %165 = vrot.lane.b32.xlu0 %v163_v16, %s3523_s1  ;;  %v253_v32 = vmul.f32 %v252_v30, %v2067_v0  ;;  %v286_v33 = vstv %s285_s4  ;;  %s307_s11 = smul.f32 %s2135_s28, %s2061_s19  ;;  %s2175_s18 = sld [smem:[#allocation2 + $0xd]] }
  0x4d   :  { %v274_v34 = vstv %s273_s7  ;;  %s296_s13 = smul.f32 %s2139_s30, %s2061_s19  ;;  %v287_v35 = vmul.f32 %v286_v33, %v2067_v0  ;;  %s3512_s20 = smov 108  }
  0x4e   :  { %v275_v36 = vmul.f32 %v274_v34, %v2067_v0  ;;  %v308_v37 = vstv %s307_s11  ;;  %s330_s15 = smul.f32 %s2147_s6, %s2061_s19  ;;  %s2183_s22 = sld [smem:[#allocation2 + $0x79]] }
  0x4f   :  { %199 = vrot.lane.b32.xlu1 %v197_v19, %s3520_s26  ;;  %v297_v38 = vstv %s296_s13  ;;  %s318_s17 = smul.f32 %s2151_s9, %s2061_s19  ;;  %v309_v39 = vmul.f32 %v308_v37, %v2067_v0  ;;  %s2187_s24 = sld [smem:[#allocation2 + $0x55]] }
  0x50   :  { %187 = vrot.lane.b32.xlu0 %v185_v20, %s3520_s26  ;;  %v298_v40 = vmul.f32 %v297_v38, %v2067_v0  ;;  %v331_v41 = vstv %s330_s15  ;;  %s352_s21 = smul.f32 %s2159_s12, %s2061_s19  ;;  %s2195_s25 = sld [smem:[#allocation2 + $0x32]] }
  0x51   :  { %v319_v42 = vstv %s318_s17  ;;  %s341_s23 = smul.f32 %s2163_s14, %s2061_s19  ;;  %v332_v43 = vmul.f32 %v331_v41, %v2067_v0  ;;  %s2199_s28 = sld [smem:[#allocation2 + $0xe]] }
  0x52   :  { %v320_v44 = vmul.f32 %v319_v42, %v2067_v0  ;;  %v353_v45 = vstv %s352_s21  ;;  %s375_s2 = smul.f32 %s2171_s16, %s2061_s19  ;;  %s3510_s29 = smov 92  }
  0x53   :  { %221 = vrot.lane.b32.xlu1 %v219_v23, %s3520_s26  ;;  %v342_v46 = vstv %s341_s23  ;;  %s363_s27 = smul.f32 %s2175_s18, %s2061_s19  ;;  %v354_v47 = vmul.f32 %v353_v45, %v2067_v0  ;;  %s2207_s4 = sld [smem:[#allocation2 + $0x7a]] }
  0x54   :  { %210 = vrot.lane.b32.xlu0 %v208_v24, %s3520_s26  ;;  %v343_v48 = vmul.f32 %v342_v46, %v2067_v0  ;;  %v376_v49 = vstv %s375_s2  ;;  %s397_s30 = smul.f32 %s2183_s22, %s2061_s19  ;;  %s2211_s7 = sld [smem:[#allocation2 + $0x56]] }
  0x55   :  { %v364_v50 = vstv %s363_s27  ;;  %s386_s6 = smul.f32 %s2187_s24, %s2061_s19  ;;  %v377_v51 = vmul.f32 %v376_v49, %v2067_v0  ;;  %s2219_s11 = sld [smem:[#allocation2 + $0x34]] }
  0x56   :  { %v365_v52 = vmul.f32 %v364_v50, %v2067_v0  ;;  %v398_v53 = vstv %s397_s30  ;;  %s420_s9 = smul.f32 %s2195_s25, %s2061_s19  ;;  %s2223_s13 = sld [smem:[#allocation2 + $0x10]] }
  0x57   :  { %244 = vrot.lane.b32.xlu1 %v242_v27, %s3516_s10  ;;  %v387_v54 = vstv %s386_s6  ;;  %s408_s12 = smul.f32 %s2199_s28, %s2061_s19  ;;  %s3508_s14 = smov 91   ;;  %v399_v55 = vmul.f32 %v398_v53, %v2067_v0 }
  0x58   :  { %232 = vrot.lane.b32.xlu0 %v230_v28, %s3516_s10  ;;  %v388_v56 = vmul.f32 %v387_v54, %v2067_v0  ;;  %v421_v57 = vstv %s420_s9  ;;  %s2231_s16 = sld [smem:[#allocation2 + $0x7c]]  ;;  %s2235_s18 = sld [smem:[#allocation2 + $0x58]] }
  0x59   :  { %s442_s15 = smul.f32 %s2207_s4, %s2061_s19  ;;  %v409_v58 = vstv %s408_s12  ;;  %v422_v59 = vmul.f32 %v421_v57, %v2067_v0  ;;  %s2243_s22 = sld [smem:[#allocation2 + $0x35]] }
  0x5a   :  { %s431_s17 = smul.f32 %s2211_s7, %s2061_s19  ;;  %v410_v60 = vmul.f32 %v409_v58, %v2067_v0  ;;  %s2247_s24 = sld [smem:[#allocation2 + $0x11]] }
  0x5b   :  { %266 = vrot.lane.b32.xlu1 %v264_v31, %s3516_s10  ;;  %v443_v61 = vstv %s442_s15  ;;  %s486_s21 = smul.f32 %s2219_s11, %s2061_s19  ;;  %s3514_s2 = smov 90  }
  0x5c   :  { %255 = vrot.lane.b32.xlu0 %v253_v32, %s3516_s10  ;;  %v432_v62 = vstv %s431_s17  ;;  %s475_s23 = smul.f32 %s2223_s13, %s2061_s19  ;;  %v444_v63 = vmul.f32 %v443_v61, %v2067_v0  ;;  %s1773_s27 = sld [smem:[#allocation2 + $0x7d]] }
  0x5d   :  { %v433_v1 = vmul.f32 %v432_v62, %v2067_v0  ;;  %v487_v3 = vstv %s486_s21  ;;  %s1772_s30 = sld [smem:[#allocation2 + $0x59]]  ;;  %s1775_s6 = sld [smem:[#allocation2 + $0x36]] }
  0x5e   :  { %s508_s25 = smul.f32 %s2231_s16, %s2061_s19  ;;  %v476_v4 = vstv %s475_s23  ;;  %v488_v5 = vmul.f32 %v487_v3, %v2253_v2  ;;  %s1774_s9 = sld [smem:[#allocation2 + $0x12]] }
  0x5f   :  { %289 = vrot.lane.b32.xlu1 %v287_v35, %s3512_s20  ;;  %s497_s28 = smul.f32 %s2235_s18, %s2061_s19  ;;  %v477_v6 = vmul.f32 %v476_v4, %v2253_v2  ;;  %s1777_s12 = sld [smem:[#allocation2 + $0x7e]] }
  0x60   :  { %277 = vrot.lane.b32.xlu0 %v275_v36, %s3512_s20  ;;  %v509_v7 = vstv %s508_s25  ;;  %s530_s4 = smul.f32 %s2243_s22, %s2061_s19  ;;  %s1776_s15 = sld [smem:[#allocation2 + $0x5a]] }
  0x61   :  { %v498_v8 = vstv %s497_s28  ;;  %s519_s7 = smul.f32 %s2247_s24, %s2061_s19  ;;  %v510_v9 = vmul.f32 %v509_v7, %v2253_v2  ;;  %s1779_s17 = sld [smem:[#allocation2 + $0x37]] }
  0x62   :  { %v499_v10 = vmul.f32 %v498_v8, %v2253_v2  ;;  %v531_v11 = vstv %s530_s4  ;;  %s552_s11 = smul.f32 %s1773_s27, %s2061_s19  ;;  %s1778_s21 = sld [smem:[#allocation2 + $0x13]] }
  0x63   :  { %311 = vrot.lane.b32.xlu1 %v309_v39, %s3512_s20  ;;  %v520_v12 = vstv %s519_s7  ;;  %s541_s13 = smul.f32 %s1772_s30, %s2061_s19  ;;  %v532_v13 = vmul.f32 %v531_v11, %v2253_v2  ;;  %s1781_s23 = sld [smem:[#allocation2 + $0x7f]] }
  0x64   :  { %300 = vrot.lane.b32.xlu0 %v298_v40, %s3512_s20  ;;  %v521_v14 = vmul.f32 %v520_v12, %v2253_v2  ;;  %v553_v15 = vstv %s552_s11  ;;  %s574_s16 = smul.f32 %s1775_s6, %s2061_s19  ;;  %s1780_s25 = sld [smem:[#allocation2 + $0x5b]] }
  0x65   :  { %v542_v16 = vstv %s541_s13  ;;  %s563_s18 = smul.f32 %s1774_s9, %s2061_s19  ;;  %v554_v17 = vmul.f32 %v553_v15, %v2253_v2  ;;  %s1783_s28 = sld [smem:[#allocation2 + $0x38]] }
  0x66   :  { %v543_v18 = vmul.f32 %v542_v16, %v2253_v2  ;;  %v575_v19 = vstv %s574_s16  ;;  %s596_s22 = smul.f32 %s1777_s12, %s2061_s19  ;;  %s1782_s4 = sld [smem:[#allocation2 + $0x14]] }
  0x67   :  { %334 = vrot.lane.b32.xlu1 %v332_v43, %s3510_s29  ;;  %v564_v20 = vstv %s563_s18  ;;  %s585_s24 = smul.f32 %s1776_s15, %s2061_s19  ;;  %v576_v21 = vmul.f32 %v575_v19, %v2253_v2  ;;  %s1785_s7 = sld [smem:[#allocation2 + $0x80]] }
  0x68   :  { %322 = vrot.lane.b32.xlu0 %v320_v44, %s3510_s29  ;;  %v565_v22 = vmul.f32 %v564_v20, %v2253_v2  ;;  %v597_v23 = vstv %s596_s22  ;;  %s618_s27 = smul.f32 %s1779_s17, %s2061_s19  ;;  %s1784_s11 = sld [smem:[#allocation2 + $0x5c]] }
  0x69   :  { %v586_v24 = vstv %s585_s24  ;;  %s607_s30 = smul.f32 %s1778_s21, %s2061_s19  ;;  %v598_v25 = vmul.f32 %v597_v23, %v2253_v2  ;;  %s1787_s13 = sld [smem:[#allocation2 + $0x39]] }
  0x6a   :  { %v587_v26 = vmul.f32 %v586_v24, %v2253_v2  ;;  %v619_v27 = vstv %s618_s27  ;;  %s640_s6 = smul.f32 %s1781_s23, %s2061_s19  ;;  %s1786_s16 = sld [smem:[#allocation2 + $0x15]] }
  0x6b   :  { %356 = vrot.lane.b32.xlu1 %v354_v47, %s3510_s29  ;;  %v608_v28 = vstv %s607_s30  ;;  %s629_s9 = smul.f32 %s1780_s25, %s2061_s19  ;;  %v620_v29 = vmul.f32 %v619_v27, %v2253_v2  ;;  %s1789_s18 = sld [smem:[#allocation2 + $0x81]] }
  0x6c   :  { %345 = vrot.lane.b32.xlu0 %v343_v48, %s3510_s29  ;;  %v609_v30 = vmul.f32 %v608_v28, %v2253_v2  ;;  %v641_v31 = vstv %s640_s6  ;;  %s662_s12 = smul.f32 %s1783_s28, %s2061_s19  ;;  %s1788_s22 = sld [smem:[#allocation2 + $0x5d]] }
  0x6d   :  { %v630_v32 = vstv %s629_s9  ;;  %s651_s15 = smul.f32 %s1782_s4, %s2061_s19  ;;  %v642_v33 = vmul.f32 %v641_v31, %v2253_v2  ;;  %s1791_s24 = sld [smem:[#allocation2 + $0x3a]] }
  0x6e   :  { %v631_v34 = vmul.f32 %v630_v32, %v2253_v2  ;;  %v663_v35 = vstv %s662_s12  ;;  %s684_s17 = smul.f32 %s1785_s7, %s2061_s19  ;;  %s1790_s27 = sld [smem:[#allocation2 + $0x16]] }
  0x6f   :  { %379 = vrot.lane.b32.xlu1 %v377_v51, %s3508_s14  ;;  %v652_v36 = vstv %s651_s15  ;;  %s673_s21 = smul.f32 %s1784_s11, %s2061_s19  ;;  %v664_v37 = vmul.f32 %v663_v35, %v2253_v2  ;;  %s2320_s30 = sld [smem:[#allocation2 + $0x82]] }
  0x70   :  { %367 = vrot.lane.b32.xlu0 %v365_v52, %s3508_s14  ;;  %v653_v38 = vmul.f32 %v652_v36, %v2253_v2  ;;  %v685_v39 = vstv %s684_s17  ;;  %s706_s23 = smul.f32 %s1787_s13, %s2061_s19  ;;  %s2323_s6 = sld [smem:[#allocation2 + $0x5e]] }
  0x71   :  { %v674_v40 = vstv %s673_s21  ;;  %s695_s25 = smul.f32 %s1786_s16, %s2061_s19  ;;  %v686_v41 = vmul.f32 %v685_v39, %v2253_v2  ;;  %s2330_s9 = sld [smem:[#allocation2 + $0x3b]] }
  0x72   :  { %v675_v42 = vmul.f32 %v674_v40, %v2253_v2  ;;  %v707_v43 = vstv %s706_s23  ;;  %s728_s28 = smul.f32 %s1789_s18, %s2061_s19  ;;  %s2333_s12 = sld [smem:[#allocation2 + $0x17]] }
  0x73   :  { %401 = vrot.lane.b32.xlu1 %v399_v55, %s3508_s14  ;;  %v696_v44 = vstv %s695_s25  ;;  %s717_s4 = smul.f32 %s1788_s22, %s2061_s19  ;;  %v708_v45 = vmul.f32 %v707_v43, %v2253_v2  ;;  %s2341_s15 = sld [smem:[#allocation2 + $0x83]] }
  0x74   :  { %390 = vrot.lane.b32.xlu0 %v388_v56, %s3508_s14  ;;  %v697_v46 = vmul.f32 %v696_v44, %v2253_v2  ;;  %v729_v47 = vstv %s728_s28  ;;  %s750_s7 = smul.f32 %s1791_s24, %s2061_s19  ;;  %s2345_s17 = sld [smem:[#allocation2 + $0x5f]] }
  0x75   :  { %v718_v48 = vstv %s717_s4  ;;  %s739_s11 = smul.f32 %s1790_s27, %s2061_s19  ;;  %v730_v49 = vmul.f32 %v729_v47, %v2253_v2  ;;  %s2347_s18 = sld [smem:[#allocation2 + $0x4]] }
  0x76   :  { %v719_v50 = vmul.f32 %v718_v48, %v2253_v2  ;;  %v751_v51 = vstv %s750_s7  ;;  %s772_s13 = smul.f32 %s2320_s30, %s2061_s19  ;;  %s2351_s21 = sld [smem:[#allocation2 + $0x4e]] }
  0x77   :  { %424 = vrot.lane.b32.xlu1 %v422_v59, %s3514_s2  ;;  %v740_v52 = vstv %s739_s11  ;;  %s761_s16 = smul.f32 %s2323_s6, %s2061_s19  ;;  %v752_v53 = vmul.f32 %v751_v51, %v2253_v2  ;;  %s2357_s23 = sld [smem:[#allocation2 + $0x3d]] }
  0x78   :  { %412 = vrot.lane.b32.xlu0 %v410_v60, %s3514_s2  ;;  %v741_v54 = vmul.f32 %v740_v52, %v2253_v2  ;;  %v773_v55 = vstv %s772_s13  ;;  %s794_s22 = smul.f32 %s2330_s9, %s2061_s19  ;;  %s2361_s25 = sld [smem:[#allocation2 + $0x19]] }
  0x79   :  { %v762_v56 = vstv %s761_s16  ;;  %s783_s24 = smul.f32 %s2333_s12, %s2061_s19  ;;  %s2363_s27 = sld [smem:[#allocation2 + $0x2]]  ;;  %v774_v57 = vmul.f32 %v773_v55, %v2253_v2 }
  0x7a   :  { %s2366_s28 = sld [smem:[#allocation2 + $0x6]]  ;;  %v763_v58 = vmul.f32 %v762_v56, %v2253_v2  ;;  %v795_v59 = vstv %s794_s22  ;;  %s816_s30 = smul.f32 %s2341_s15, %s2061_s19 }
  0x7b   :  { %446 = vrot.lane.b32.xlu1 %v444_v63, %s3514_s2  ;;  %s2373_s4 = sld [smem:[#allocation2 + $0x85]]  ;;  %v784_v61 = vstv %s783_s24  ;;  %s805_s6 = smul.f32 %s2345_s17, %s2061_s19  ;;  %v796_v63 = vmul.f32 %v795_v59, %v2253_v2 }
  0x7c   :  { %435 = vrot.lane.b32.xlu0 %v433_v1, %s3514_s2  ;;  %s2379_s7 = sld [smem:[#allocation2 + $0x61]]  ;;  %s2385_s11 = sld [smem:[#allocation2 + $0x5]]  ;;  %v785_v1 = vmul.f32 %v784_v61, %v2253_v2  ;;  %v817_v3 = vstv %s816_s30 }
  0x7d   :  { %s2390_s13 = sld [smem:[#allocation2 + $0x72]]  ;;  %s860_s15 = smul.f32 %s2357_s23, %s2061_s19  ;;  %v818_v7 = vmul.f32 %v817_v3, %v2253_v2 }
  0x7e   :  { %s2397_s16 = sld [smem:[#allocation2 + $0x3e]]  ;;  %s849_s17 = smul.f32 %s2361_s25, %s2061_s19 }
  0x7f   :  { %490 = vrot.lane.b32.xlu1 %v488_v5, %s3518_s8  ;;  %v806_v5 = vstv %s805_s6  ;;  %s2403_s22 = sld [smem:[#allocation2 + $0x1a]]  ;;  %s2407_s0 = sld [smem:[#allocation2 + $0x3]] }
  0x80   :  { %479 = vrot.lane.b32.xlu0 %v477_v6, %s3518_s8  ;;  %s2413_s30 = sld [smem:[#allocation2 + $0x2a]]  ;;  %v807_v8 = vmul.f32 %v806_v5, %v2253_v2  ;;  %s2423_s6 = sld [smem:[#allocation2 + $0x86]]  ;;  %v850_v12 = vstv %s849_s17 }
  0x81   :  { %s882_s25 = smul.f32 %s2373_s4, %s2061_s19  ;;  %s2447_s17 = sld [smem:[#allocation2 + $0x87]] }
  0x82   :  { %s871_s5 = smul.f32 %s2379_s7, %s2061_s19  ;;  %s2453_s24 = sld [smem:[#allocation2 + $0x63]] }
  0x83   :  { %512 = vrot.lane.b32.xlu1 %v510_v9, %s3518_s8  ;;  %v2419_v9 = vld [vmem:[#allocation6 + $0xc] sm:$0x3f]  ;;  %v883_v16 = vstv %s882_s25  ;;  %s2471_s25 = sld [smem:[#allocation2 + $0x88]]  ;;  %s2519_s23 = sld [smem:[#allocation2 + $0x8a]] }
  0x84   :  { %501 = vrot.lane.b32.xlu0 %v499_v10, %s3518_s8  ;;  %v861_v10 = vstv %s860_s15  ;;  %s2441_s15 = sld [smem:[#allocation2 + $0x1b]]  ;;  %v851_v15 = vmul.f32 %v850_v12, %v2419_v9  ;;  %s904_s7 = smul.f32 %s2397_s16, %s2061_s19  ;;  %v884_v20 = vmul.f32 %v883_v16, %v2419_v9 }
  0x85   :  { %s2477_s16 = sld [smem:[#allocation2 + $0x64]]  ;;  %s2531_s12 = sld [smem:[#allocation2 + $0x43]] }
  0x87   :  { %534 = vrot.lane.b32.xlu1 %v532_v13, %s3523_s1 }
  0x88   :  { %523 = vrot.lane.b32.xlu0 %v521_v14, %s3523_s1  ;;  %v862_v14 = vmul.f32 %v861_v10, %v2419_v9 }
  0x8b   :  { %556 = vrot.lane.b32.xlu1 %v554_v17, %s3523_s1 }
  0x8c   :  { %545 = vrot.lane.b32.xlu0 %v543_v18, %s3523_s1  ;;  %v872_v18 = vstv %s871_s5  ;;  %s2465_s5 = sld [smem:[#allocation2 + $0x1c]] }
  0x8f   :  { %578 = vrot.lane.b32.xlu1 %v576_v21, %s3520_s26  ;;  %v873_v21 = vmul.f32 %v872_v18, %v2419_v9 }
  0x90   :  { %567 = vrot.lane.b32.xlu0 %v565_v22, %s3520_s26  ;;  %v905_v22 = vstv %s904_s7  ;;  %s3537_s7 = smul.f32 %s2453_s24, %s2061_s19 }
  0x92   :  { %s3541_s24 = smul.f32 %s2465_s5, %s2061_s19 }
  0x93   :  { %600 = vrot.lane.b32.xlu1 %v598_v25, %s3520_s26  ;;  %s3544_s5 = smul.f32 %s2477_s16, %s2061_s19 }
  0x94   :  { %589 = vrot.lane.b32.xlu0 %v587_v26, %s3520_s26  ;;  %v906_v26 = vmul.f32 %v905_v22, %v2419_v9  ;;  %s2525_s26 = sld [smem:[#allocation2 + $0x66]]  ;;  %v982_v48 = vstv %s3541_s24  ;;  %s2597_s24 = sld [smem:[#allocation2 + $0x20]] }
  0x95   :  { %v983_v51 = vmul.f32 %v982_v48, %v2419_v9  ;;  %s3546_s16 = smul.f32 %s2366_s28, %s2061_s19 }
  0x97   :  { %622 = vrot.lane.b32.xlu1 %v620_v29, %s3516_s10 }
  0x98   :  { %611 = vrot.lane.b32.xlu0 %v609_v30, %s3516_s10 }
  0x9b   :  { %644 = vrot.lane.b32.xlu1 %v642_v33, %s3516_s10 }
  0x9c   :  { %633 = vrot.lane.b32.xlu0 %v631_v34, %s3516_s10  ;;  %s2483_s10 = sld [smem:[#allocation2 + $0x41]] }
  0x9f   :  { %666 = vrot.lane.b32.xlu1 %v664_v37, %s3512_s20 }
  0xa0   :  { %655 = vrot.lane.b32.xlu0 %v653_v38, %s3512_s20 }
  0xa2   :  { %s3550_s28 = smul.f32 %s2483_s10, %s2061_s19 }
  0xa3   :  { %688 = vrot.lane.b32.xlu1 %v686_v41, %s3512_s20  ;;  %s3553_s10 = smul.f32 %s2363_s27, %s2061_s19 }
  0xa4   :  { %677 = vrot.lane.b32.xlu0 %v675_v42, %s3512_s20  ;;  %s2435_s20 = sld [smem:[#allocation2 + $0x3f]]  ;;  %v960_v42 = vstv %s3537_s7 }
  0xa5   :  { %s2567_s7 = sld [smem:[#allocation2 + $0x67]]  ;;  %v61_v10 = vstv %s3553_s10  ;;  %s3557_s10 = smul.f32 %s2385_s11, %s2061_s19 }
  0xa7   :  { %710 = vrot.lane.b32.xlu1 %v708_v45, %s3510_s29  ;;  %v961_v45 = vmul.f32 %v960_v42, %v2419_v9 }
  0xa8   :  { %699 = vrot.lane.b32.xlu0 %v697_v46, %s3510_s29 }
  0xaa   :  { %s948_s4 = smul.f32 %s2435_s20, %s2061_s19  ;;  %s2495_s20 = sld [smem:[#allocation2 + $0x89]] }
  0xab   :  { %732 = vrot.lane.b32.xlu1 %v730_v49, %s3510_s29 }
  0xac   :  { %721 = vrot.lane.b32.xlu0 %v719_v50, %s3510_s29  ;;  %s893_s29 = smul.f32 %s2403_s22, %s2061_s19  ;;  %v949_v34 = vstv %s948_s4  ;;  %s3539_s4 = smov 110  }
  0xad   :  { %s926_s22 = smul.f32 %s2423_s6, %s2061_s19  ;;  %v950_v38 = vmul.f32 %v949_v34, %v2419_v9 }
  0xae   :  { %v894_v24 = vstv %s893_s29  ;;  %s937_s6 = smul.f32 %s2441_s15, %s2061_s19  ;;  %s2489_s29 = sld [smem:[#allocation2 + $0x1d]] }
  0xaf   :  { %754 = vrot.lane.b32.xlu1 %v752_v53, %s3508_s14  ;;  %v895_v27 = vmul.f32 %v894_v24, %v2419_v9  ;;  %v927_v28 = vstv %s926_s22  ;;  %s2501_s15 = sld [smem:[#allocation2 + $0x65]]  ;;  %s2546_s22 = sld [smem:[#allocation2 + $0x33]] }
  0xb0   :  { %743 = vrot.lane.b32.xlu0 %v741_v54, %s3508_s14  ;;  %v928_v32 = vmul.f32 %v927_v28, %v2419_v9  ;;  %v938_v36 = vstv %s937_s6  ;;  %s2537_s6 = sld [smem:[#allocation2 + $0x1f]]  ;;  %v1004_v54 = vstv %s3544_s5  ;;  %s3547_s5 = smov 109  }
  0xb1   :  { %v2375_v60 = vpop.permute.xlu1 %120  ;;  %v939_v39 = vmul.f32 %v938_v36, %v2419_v9 }
  0xb2   :  { %v2383_v62 = vpop.permute.xlu0 %97 }
  0xb3   :  { %776 = vrot.lane.b32.xlu1 %v774_v57, %s3508_s14  ;;  %v74_v57 = vstv %s3546_s16  ;;  %s2648_s16 = sld [smem:[#allocation2 + $0x8e]] }
  0xb4   :  { %765 = vrot.lane.b32.xlu0 %v763_v58, %s3508_s14  ;;  %s2429_s14 = sld [smem:[#allocation2 + $0x62]] }
  0xb5   :  { %v2399_v4 = vpop.permute.xlu1 %131  ;;  %3533 = sst [smem:[#allocation14_spill]] %s2501_s15  ;;  %s2585_s15 = sld [smem:[#allocation2 + $0x57]] }
  0xb6   :  { %v2409_v6 = vpop.permute.xlu0 %109  ;;  %3536 = sst [smem:[#allocation17_spill]] %s2537_s6  ;;  %s2615_s6 = sld [smem:[#allocation2 + $0x68]] }
  0xb7   :  { %798 = vrot.lane.b32.xlu1 %v796_v63, %s3514_s2  ;;  %v1005_v63 = vmul.f32 %v1004_v54, %v2419_v9 }
  0xb8   :  { %787 = vrot.lane.b32.xlu0 %v785_v1, %s3514_s2  ;;  %v1037_v1 = vstv %s3550_s28  ;;  %s2709_s28 = sld [smem:[#allocation2 + $0x6b]] }
  0xb9   :  { %v2425_v11 = vpop.permute.xlu1 %154  ;;  %v1038_v18 = vmul.f32 %v1037_v1, %v2419_v9 }
  0xba   :  { %v2433_v13 = vpop.permute.xlu0 %142  ;;  %s915_s9 = smul.f32 %s2429_s14, %s2061_s19 }
  0xbb   :  { %820 = vrot.lane.b32.xlu1 %v818_v7, %s3514_s2  ;;  %s970_s14 = smul.f32 %s2447_s17, %s2061_s19  ;;  %s2606_s17 = sld [smem:[#allocation2 + $0x8c]] }
  0xbc   :  { %809 = vrot.lane.b32.xlu0 %v807_v8, %s3514_s2  ;;  %s2459_s2 = sld [smem:[#allocation2 + $0x40]]  ;;  %v916_v30 = vstv %s915_s9  ;;  %s2513_s9 = sld [smem:[#allocation2 + $0x1e]] }
  0xbd   :  { %v2449_v17 = vpop.permute.xlu1 %176  ;;  %v917_v33 = vmul.f32 %v916_v30, %v2419_v9  ;;  %v971_v40 = vstv %s970_s14  ;;  %s2561_s14 = sld [smem:[#allocation2 + $0x8b]] }
  0xbe   :  { %v2457_v19 = vpop.permute.xlu0 %165  ;;  %v972_v44 = vmul.f32 %v971_v40, %v2419_v9 }
  0xbf   :  { %864 = vrot.lane.b32.xlu1 %v862_v14, %s3518_s8  ;;  %v75_v14 = vmul.f32 %v74_v57, %v2067_v0 }
  0xc0   :  { %853 = vrot.lane.b32.xlu0 %v851_v15, %s3518_s8 }
  0xc1   :  { %v2473_v23 = vpop.permute.xlu1 %199  ;;  %v2720_v34 = vadd.f32 %v75_v14, %v61_v10 }
  0xc2   :  { %v2479_v25 = vpop.permute.xlu0 %187  ;;  %3535 = sst [smem:[#allocation16_spill]] %s2513_s9  ;;  %s3540_s3 = smul.f32 %s2459_s2, %s2061_s19 }
  0xc3   :  { %886 = vrot.lane.b32.xlu1 %v884_v20, %s3518_s8  ;;  %3538 = sst [smem:[#allocation18_spill]] %s2561_s14  ;;  %s3545_s9 = smul.f32 %s2351_s21, %s2061_s19  ;;  %v70_v20 = vstv %s3557_s10 }
  0xc4   :  { %875 = vrot.lane.b32.xlu0 %v873_v21, %s3518_s8  ;;  %s2507_s8 = sld [smem:[#allocation2 + $0x42]]  ;;  %v993_v46 = vstv %s3540_s3  ;;  %s2591_s2 = sld [smem:[#allocation2 + $0x44]] }
  0xc5   :  { %v2497_v29 = vpop.permute.xlu1 %221  ;;  %v994_v50 = vmul.f32 %v993_v46, %v2419_v9  ;;  %s3543_s3 = smul.f32 %s2471_s25, %s2061_s19  ;;  %v84_v56 = vstv %s3545_s9  ;;  %s2633_s25 = sld [smem:[#allocation2 + $0x22]] }
  0xc6   :  { %v2503_v31 = vpop.permute.xlu0 %210  ;;  %s3548_s14 = smul.f32 %s2390_s13, %s2061_s19  ;;  %v85_v8 = vmul.f32 %v84_v56, %v2067_v0  ;;  %s3556_s27 = sld [smem:[#allocation16_spill]] }
  0xc7   :  { %908 = vrot.lane.b32.xlu1 %v906_v26, %s3523_s1  ;;  %v1015_v52 = vstv %s3543_s3  ;;  %s2621_s3 = sld [smem:[#allocation2 + $0x46]]  ;;  %s3549_s21 = smul.f32 %s2413_s30, %s2061_s19 }
  0xc8   :  { %897 = vrot.lane.b32.xlu0 %v895_v27, %s3523_s1  ;;  %v1016_v58 = vmul.f32 %v1015_v52, %v2419_v9  ;;  %v89_v59 = vstv %s3548_s14  ;;  %s2657_s30 = sld [smem:[#allocation2 + $0x6a]]  ;;  %s3552_s14 = smul.f32 %s2347_s18, %s2061_s19 }
  0xc9   :  { %v2521_v35 = vpop.permute.xlu1 %244  ;;  %v79_v61 = vstv %s3549_s21  ;;  %s3554_s21 = sld [smem:[#allocation14_spill]]  ;;  %v90_v15 = vmul.f32 %v89_v59, %v2067_v0  ;;  %s3559_s13 = smul.f32 %s2495_s20, %s2061_s19 }
  0xca   :  { %3534 = sst [smem:[#allocation15_spill]] %s2507_s8  ;;  %v2527_v37 = vpop.permute.xlu0 %232  ;;  %s2576_s8 = sld [smem:[#allocation2 + $0x7b]]  ;;  %v67_v7 = vstv %s3552_s14  ;;  %v80_v16 = vmul.f32 %v79_v61, %v2067_v0 }
  0xcb   :  { %930 = vrot.lane.b32.xlu1 %v928_v32, %s3523_s1  ;;  %3542 = sst [smem:[#allocation19_spill]] %s2591_s2  ;;  %s3555_s18 = sld [smem:[#allocation15_spill]]  ;;  %v1059_v22 = vstv %s3559_s13  ;;  %v2711_v30 = vadd.f32 %v85_v8, %v67_v7  ;;  %v2722_v36 = vadd.f32 %v90_v15, %v70_v20 }
  0xcc   :  { %919 = vrot.lane.b32.xlu0 %v917_v33, %s3523_s1  ;;  %s2555_s1 = sld [smem:[#allocation2 + $0xf]]  ;;  %s2679_s14 = sld [smem:[#allocation2 + $0x23]] }
  0xcd   :  { %v2548_v41 = vpop.permute.xlu1 %266  ;;  %s2694_s2 = sld [smem:[#allocation2 + $0x8f]]  ;;  %s3563_s20 = smul.f32 %s2519_s23, %s2061_s19 }
  0xce   :  { %v2557_v43 = vpop.permute.xlu0 %255  ;;  %s3569_s23 = smul.f32 %s2531_s12, %s2061_s19 }
  0xcf   :  { %952 = vrot.lane.b32.xlu1 %v950_v38, %s3539_s4  ;;  %s3560_s11 = smul.f32 %s3554_s21, %s2061_s19  ;;  %v1103_v33 = vstv %s3563_s20  ;;  %s3564_s21 = sld [smem:[#allocation17_spill]] }
  0xd0   :  { %941 = vrot.lane.b32.xlu0 %v939_v39, %s3539_s4  ;;  %v1060_v39 = vmul.f32 %v1059_v22, %v2419_v9  ;;  %s3568_s20 = sld [smem:[#allocation19_spill]]  ;;  %v1104_v48 = vmul.f32 %v1103_v33, %v2419_v9  ;;  %s3574_s9 = smul.f32 %s2567_s7, %s2061_s19 }
  0xd1   :  { %v2578_v47 = vpop.permute.xlu1 %289  ;;  %v1048_v26 = vstv %s3560_s11  ;;  %s3561_s10 = smul.f32 %s3555_s18, %s2061_s19  ;;  %s3565_s18 = smov 108  }
  0xd2   :  { %v2587_v49 = vpop.permute.xlu0 %277  ;;  %s3566_s11 = sld [smem:[#allocation18_spill]]  ;;  %v1049_v40 = vmul.f32 %v1048_v26, %v2419_v9  ;;  %s3575_s12 = smul.f32 %s2576_s8, %s2061_s19 }
  0xd3   :  { %974 = vrot.lane.b32.xlu1 %v972_v44, %s3539_s4  ;;  %v1081_v27 = vstv %s3561_s10  ;;  %s3567_s10 = smul.f32 %s2525_s26, %s2061_s19  ;;  %s2786_s8 = sld [smem:[#allocation2 + $0x90]] }
  0xd4   :  { %963 = vrot.lane.b32.xlu0 %v961_v45, %s3539_s4  ;;  %s3551_s4 = smul.f32 %s2489_s29, %s2061_s19  ;;  %v1082_v42 = vmul.f32 %v1081_v27, %v2419_v9  ;;  %v471_v59 = vstv %s3575_s12  ;;  %s3598_s12 = smov 126  }
  0xd5   :  { %v2608_v53 = vpop.permute.xlu1 %311  ;;  %s3558_s29 = smul.f32 %s2407_s0, %s2061_s19  ;;  %v1092_v45 = vstv %s3567_s10 }
  0xd6   :  { %v2617_v55 = vpop.permute.xlu0 %300  ;;  %v1026_v5 = vstv %s3551_s4  ;;  %s2670_s4 = sld [smem:[#allocation2 + $0x47]]  ;;  %s3562_s0 = smul.f32 %s3556_s27, %s2061_s19  ;;  %v1093_v61 = vmul.f32 %v1092_v45, %v2419_v9 }
  0xd7   :  { %996 = vrot.lane.b32.xlu1 %v994_v50, %s3547_s5  ;;  %v64_v21 = vstv %s3558_s29  ;;  %v1027_v0 = vmul.f32 %v1026_v5, %v2419_v9  ;;  %s2730_s27 = sld [smem:[#allocation2 + $0x48]]  ;;  %v1125_v50 = vstv %s3569_s23  ;;  %s3570_s13 = smul.f32 %s3564_s21, %s2061_s19 }
  0xd8   :  { %985 = vrot.lane.b32.xlu0 %v983_v51, %s3547_s5  ;;  %v1070_v28 = vstv %s3562_s0  ;;  %v2724_v38 = vadd.f32 %v80_v16, %v64_v21  ;;  %s3571_s26 = smul.f32 %s2546_s22, %s2061_s19  ;;  %s2771_s23 = sld [smem:[#allocation2 + $0x24]]  ;;  %v2790_v7 = vmul.f32 %v1125_v50, %v2419_v9  ;;  %v2815_v21 = vmul.f32 %v471_v59, %v2253_v2 }
  0xd9   :  { %v2650_v3 = vpop.permute.xlu1 %334  ;;  %v1071_v44 = vmul.f32 %v1070_v28, %v2419_v9  ;;  %v1114_v51 = vstv %s3570_s13  ;;  %s1245_s10 = smul.f32 %s2657_s30, %s2061_s19  ;;  %v122_v50 = vrot.slane %v2375_v60, 2  ;;  %s3595_s30 = smov 90  }
  0xda   :  { %v2666_v12 = vpop.permute.xlu0 %322  ;;  %v461_v52 = vstv %s3571_s26  ;;  %s3572_s0 = smul.f32 %s2555_s1, %s2061_s19  ;;  %v2793_v8 = vmul.f32 %v1114_v51, %v2419_v9  ;;  %3582 = vst [vmem:[#allocation22_spill] sm:$0xff] %v2815_v21  ;;  %v111_v21 = vrot.slane %v2409_v6, 2 }
  0xdb   :  { %1018 = vrot.lane.b32.xlu1 %v1016_v58, %s3547_s5  ;;  %s3573_s29 = smul.f32 %s3566_s11, %s2061_s19  ;;  %v1136_v58 = vstv %s3574_s9  ;;  %v2796_v10 = vmul.f32 %v461_v52, %v2253_v2 }
  0xdc   :  { %1007 = vrot.lane.b32.xlu0 %v1005_v63, %s3547_s5  ;;  %v456_v56 = vstv %s3572_s0  ;;  %s1278_s21 = smul.f32 %s2670_s4, %s2061_s19  ;;  %v2812_v20 = vmul.f32 %v1136_v58, %v2419_v9  ;;  %s2994_s4 = sld [smem:[#allocation2 + $0x49]] }
  0xdd   :  { %v2696_v24 = vpop.permute.xlu1 %356  ;;  %v1147_v57 = vstv %s3573_s29  ;;  %s3576_s22 = smul.f32 %s2585_s15, %s2061_s19  ;;  %3579 = vst [vmem:[#allocation20_spill] sm:$0xff] %v2796_v10  ;;  %v2806_v16 = vmul.f32 %v456_v56, %v2253_v2  ;;  %v99_v56 = vrot.slane %v2383_v62, 2  ;;  %v246_v10 = vrot.slane %v2521_v35, 2 }
  0xde   :  { %v2713_v32 = vpop.permute.xlu0 %345  ;;  %s3577_s1 = smul.f32 %s3568_s20, %s2061_s19  ;;  %v1279_v51 = vstv %s1278_s21  ;;  %s3596_s20 = smov 127  }
  0xdf   :  { %1040 = vrot.lane.b32.xlu1 %v1038_v18, %s3565_s18  ;;  %v466_v63 = vstv %s3576_s22  ;;  %s3578_s7 = smul.f32 %s2597_s24, %s2061_s19  ;;  %3581 = vst [vmem:[#allocation21_spill] sm:$0xff] %v2806_v16  ;;  %v2809_v18 = vmul.f32 %v1147_v57, %v2419_v9  ;;  %v133_v57 = vrot.slane %v2399_v4, 2  ;;  %s3096_s21 = sld [smem:[#allocation2 + $0x91]] }
  0xe0   :  { %1029 = vrot.lane.b32.xlu0 %v1027_v0, %s3565_s18  ;;  %v1169_v1 = vstv %s3577_s1  ;;  %s1267_s9 = smul.f32 %s2679_s14, %s2061_s19  ;;  %v2822_v22 = vmul.f32 %v466_v63, %v2253_v2  ;;  %s3000_s14 = sld [smem:[#allocation2 + $0x25]] }
  0xe1   :  { %v2741_v46 = vpop.permute.xlu1 %379  ;;  %v1158_v5 = vstv %s3578_s7  ;;  %s3580_s15 = smul.f32 %s2606_s17, %s2061_s19  ;;  %v2825_v26 = vmul.f32 %v1169_v1, %v2419_v9  ;;  %s3120_s22 = sld [smem:[#allocation2 + $0x4a]] }
  0xe2   :  { %v2755_v54 = vpop.permute.xlu0 %367  ;;  %s1300_s24 = smul.f32 %s2694_s2, %s2061_s19  ;;  %3583 = vst [vmem:[#allocation23_spill] sm:$0xff] %v2822_v22  ;;  %v2828_v27 = vmul.f32 %v1158_v5, %v2419_v9  ;;  %v1268_v52 = vstv %s1267_s9  ;;  %s3125_s1 = sld [smem:[#allocation2 + $0x26]] }
  0xe3   :  { %1062 = vrot.lane.b32.xlu1 %v1060_v39, %s3565_s18  ;;  %v1191_v14 = vstv %s3580_s15  ;;  %s1289_s17 = smul.f32 %s2709_s28, %s2061_s19  ;;  %s3585_s28 = smov 92   ;;  %v2837_v39 = vld [vmem:[#allocation6 + $0x12] sm:$0x3f] }
  0xe4   :  { %1051 = vrot.lane.b32.xlu0 %v1049_v40, %s3565_s18  ;;  %s3584_s2 = smul.f32 %s2615_s6, %s2061_s19  ;;  %v2835_v33 = vmul.f32 %v1191_v14, %v2419_v9  ;;  %v1301_v59 = vstv %s1300_s24  ;;  %s3606_s7 = smov 110  }
  0xe5   :  { %v2803_v15 = vpop.permute.xlu1 %401  ;;  %s3586_s29 = smul.f32 %s2621_s3, %s2061_s19  ;;  %v1290_v63 = vstv %s1289_s17  ;;  %s3594_s3 = smov 91  }
  0xe6   :  { %v2819_v0 = vpop.permute.xlu0 %390  ;;  %v1180_v28 = vstv %s3584_s2  ;;  %s3587_s13 = smul.f32 %s2633_s25, %s2061_s19  ;;  %s3145_s24 = sld [smem:[#allocation2 + $0x6e]] }
  0xe7   :  { %1084 = vrot.lane.b32.xlu1 %v1082_v42, %s3585_s28  ;;  %v1235_v2 = vstv %s3586_s29  ;;  %s3588_s11 = smul.f32 %s2648_s16, %s2061_s19  ;;  %v1246_v42 = vstv %s1245_s10  ;;  %s2974_s16 = sld [smem:[#allocation2 + $0x6c]] }
  0xe8   :  { %v1224_v40 = vstv %s3587_s13  ;;  %s1322_s0 = smul.f32 %s2730_s27, %s2061_s19  ;;  %1073 = vrot.lane.b32.xlu0 %v1071_v44, %s3585_s28  ;;  %v2868_v44 = vmul.f32 %v1180_v28, %v2419_v9  ;;  %v2871_v5 = vmul.f32 %v1235_v2, %v2837_v39  ;;  %v2884_v16 = vmul.f32 %v1246_v42, %v2837_v39  ;;  %s3158_s2 = sld [smem:[#allocation2 + $0x4b]] }
  0xe9   :  { %v1257_v45 = vstv %s3588_s11  ;;  %v2863_v58 = vpop.permute.xlu1 %424  ;;  %v2874_v14 = vmul.f32 %v1224_v40, %v2837_v39  ;;  %s1311_s6 = smul.f32 %s2771_s23, %s2061_s19  ;;  %v2887_v9 = vmul.f32 %v1279_v51, %v2837_v39  ;;  %v123_v2 = vsel %vm100_vm0, %v2375_v60, %v122_v50  ;;  %s3102_s23 = sld [smem:[#allocation2 + $0x6d]] }
  0xea   :  { %v2865_v1 = vpop.permute.xlu0 %412  ;;  %v2877_v22 = vmul.f32 %v1257_v45, %v2837_v39  ;;  %v1323_v28 = vstv %s1322_s0  ;;  %s1344_s25 = smul.f32 %s2786_s8, %s2061_s19  ;;  %v2895_v40 = vmul.f32 %v1268_v52, %v2837_v39  ;;  %v2898_v45 = vmul.f32 %v1301_v59, %v2837_v39  ;;  %s3139_s8 = sld [smem:[#allocation2 + $0x92]] }
  0xeb   :  { %1106 = vrot.lane.b32.xlu1 %v1104_v48, %s3585_s28  ;;  %3589 = vst [vmem:[#allocation24_spill] sm:$0xff] %v2887_v9  ;;  %v2901_v48 = vmul.f32 %v1290_v63, %v2837_v39  ;;  %v101_v42 = vsel %vm100_vm0, %v2383_v62, %v99_v56  ;;  %v134_v51 = vsel %vm100_vm0, %v2399_v4, %v133_v57  ;;  %v156_v9 = vrot.slane %v2425_v11, 2  ;;  %s1366_s26 = smul.f32 %s2994_s4, %s2061_s19  ;;  %s3163_s13 = sld [smem:[#allocation2 + $0x27]] }
  0xec   :  { %1095 = vrot.lane.b32.xlu0 %v1093_v61, %s3585_s28  ;;  %3590 = vst [vmem:[#allocation25_spill] sm:$0xff] %v2895_v40  ;;  %3591 = vst [vmem:[#allocation26_spill] sm:$0xff] %v2898_v45  ;;  %v144_v60 = vrot.slane %v2433_v13, 2  ;;  %v178_v50 = vrot.slane %v2449_v17, 2  ;;  %v167_v52 = vrot.slane %v2457_v19, 2  ;;  %v2916_v63 = vmul.f32 %v1323_v28, %v2837_v39  ;;  %s1355_s10 = smul.f32 %s3000_s14, %s2061_s19  ;;  %s3172_s0 = sld [smem:[#allocation2 + $0x93]] }
  0xed   :  { %3592 = vst [vmem:[#allocation27_spill] sm:$0xff] %v2901_v48  ;;  %v2909_v61 = vpop.permute.xlu1 %446  ;;  %v2918_v62 = vstv %s1311_s6  ;;  %v112_v4 = vsel %vm100_vm0, %v2409_v6, %v111_v21  ;;  %v201_v56 = vrot.slane %v2473_v23, 2  ;;  %v189_v57 = vrot.slane %v2479_v25, 2  ;;  %s1333_s27 = smul.f32 %s2974_s16, %s2061_s19  ;;  %s3186_s4 = sld [smem:[#allocation2 + $0x4c]] }
  0xee   :  { %v2913_v59 = vpop.permute.xlu0 %435  ;;  %3593 = vst [vmem:[#allocation28_spill] sm:$0xff] %v2916_v63  ;;  %v2926_v48 = vstv %s1344_s25  ;;  %v125_v45 = vadd.f32 %v123_v2, %v2711_v30  ;;  %v103_v40 = vadd.f32 %v101_v42, %v2720_v34  ;;  %v136_v28 = vadd.f32 %v134_v51, %v2722_v36  ;;  %s1388_s9 = smul.f32 %s3096_s21, %s2061_s19  ;;  %s3177_s25 = sld [smem:[#allocation2 + $0x6f]] }
  0xef   :  { %1128 = vrot.lane.b32.xlu1 %v2790_v7, %s3594_s3  ;;  %v223_v63 = vrot.slane %v2497_v29, 2  ;;  %v157_v6 = vsel %vm145_vm1, %v2425_v11, %v156_v9  ;;  %v146_v21 = vsel %vm145_vm1, %v2433_v13, %v144_v60  ;;  %v212_v7 = vrot.slane %v2503_v31, 2  ;;  %s1377_s15 = smul.f32 %s3102_s23, %s2061_s19  ;;  %s3209_s23 = sld [smem:[#allocation2 + $0x70]] }
  0xf0   :  { %1117 = vrot.lane.b32.xlu0 %v2793_v8, %s3594_s3  ;;  %v114_v34 = vadd.f32 %v112_v4, %v2724_v38  ;;  %v179_v36 = vsel %vm145_vm1, %v2449_v17, %v178_v50  ;;  %v168_v8 = vsel %vm145_vm1, %v2457_v19, %v167_v52  ;;  %v234_v11 = vrot.slane %v2527_v37, 2  ;;  %s1410_s17 = smul.f32 %s3120_s22, %s2061_s19  ;;  %s3211_s22 = sld [smem:[#allocation2 + $0x84]] }
  0xf1   :  { %v2940_v30 = vpop.permute.xlu1 %490  ;;  %v202_v13 = vsel %vm190_vm2, %v2473_v23, %v201_v56  ;;  %v191_v2 = vsel %vm190_vm2, %v2479_v25, %v189_v57  ;;  %v268_v42 = vrot.slane %v2548_v41, 2  ;;  %v257_v38 = vrot.slane %v2557_v43, 2  ;;  %s1399_s29 = smul.f32 %s3125_s1, %s2061_s19  ;;  %s3215_s1 = sld [smem:[#allocation2 + $0x60]] }
  0xf2   :  { %v2948_v9 = vpop.permute.xlu0 %479  ;;  %v159_v17 = vadd.f32 %v157_v6, %v114_v34  ;;  %v148_v19 = vadd.f32 %v146_v21, %v103_v40  ;;  %v224_v51 = vsel %vm190_vm2, %v2497_v29, %v223_v63  ;;  %v291_v60 = vrot.slane %v2578_v47, 2  ;;  %s1432_s11 = smul.f32 %s3139_s8, %s2061_s19 }
  0xf3   :  { %1150 = vrot.lane.b32.xlu1 %v2809_v18, %s3594_s3  ;;  %v181_v23 = vadd.f32 %v179_v36, %v136_v28  ;;  %v213_v25 = vsel %vm190_vm2, %v2503_v31, %v212_v7  ;;  %v247_v50 = vsel %vm235_vm3, %v2521_v35, %v246_v10  ;;  %v279_v52 = vrot.slane %v2587_v49, 2  ;;  %s1421_s6 = smul.f32 %s3145_s24, %s2061_s19 }
  0xf4   :  { %1139 = vrot.lane.b32.xlu0 %v2812_v20, %s3594_s3  ;;  %v170_v40 = vadd.f32 %v168_v8, %v125_v45  ;;  %v204_v4 = vadd.f32 %v202_v13, %v159_v17  ;;  %v193_v29 = vadd.f32 %v191_v2, %v148_v19  ;;  %v236_v63 = vsel %vm235_vm3, %v2527_v37, %v234_v11  ;;  %s1454_s16 = smul.f32 %s3158_s2, %s2061_s19  ;;  %s3240_s2 = sld [smem:[#allocation2 + $0x95]] }
  0xf5   :  { %v2968_v18 = vpop.permute.xlu1 %512  ;;  %v226_v20 = vadd.f32 %v224_v51, %v181_v23  ;;  %v269_v31 = vsel %vm235_vm3, %v2548_v41, %v268_v42  ;;  %v258_v35 = vsel %vm235_vm3, %v2557_v43, %v257_v38  ;;  %v313_v10 = vrot.slane %v2608_v53, 2  ;;  %s1443_s14 = smul.f32 %s3163_s13, %s2061_s19  ;;  %s3245_s13 = sld [smem:[#allocation2 + $0x71]] }
  0xf6   :  { %v2972_v56 = vpop.permute.xlu0 %501  ;;  %v215_v45 = vadd.f32 %v213_v25, %v170_v40  ;;  %v249_v57 = vadd.f32 %v247_v50, %v204_v4  ;;  %v292_v37 = vsel %vm280_vm4, %v2578_v47, %v291_v60  ;;  %v336_v28 = vrot.slane %v2650_v3, 2  ;;  %s1465_s21 = smul.f32 %s3177_s25, %s2061_s19 }
  0xf7   :  { %1172 = vrot.lane.b32.xlu1 %v2825_v26, %s3595_s30  ;;  %v238_v6 = vadd.f32 %v236_v63, %v193_v29  ;;  %v281_v41 = vsel %vm280_vm4, %v2587_v49, %v279_v52  ;;  %v302_v43 = vrot.slane %v2617_v55, 2  ;;  %v324_v21 = vrot.slane %v2666_v12, 2 }
  0xf8   :  { %1161 = vrot.lane.b32.xlu0 %v2828_v27, %s3595_s30  ;;  %v271_v26 = vadd.f32 %v269_v31, %v226_v20  ;;  %v260_v34 = vadd.f32 %v258_v35, %v215_v45  ;;  %v358_v47 = vrot.slane %v2696_v24, 2  ;;  %v381_v36 = vrot.slane %v2741_v46, 2 }
  0xf9   :  { %v2992_v7 = vpop.permute.xlu1 %534  ;;  %v294_v27 = vadd.f32 %v292_v37, %v249_v57  ;;  %v314_v49 = vsel %vm280_vm4, %v2608_v53, %v313_v10  ;;  %v347_v11 = vrot.slane %v2713_v32, 2  ;;  %v369_v13 = vrot.slane %v2755_v54, 2 }
  0xfa   :  { %v2998_v8 = vpop.permute.xlu0 %523  ;;  %v283_v2 = vadd.f32 %v281_v41, %v238_v6  ;;  %v337_v42 = vsel %vm325_vm5, %v2650_v3, %v336_v28  ;;  %v403_v38 = vrot.slane %v2803_v15, 2  ;;  %v426_v17 = vrot.slane %v2863_v58, 2 }
  0xfb   :  { %1194 = vrot.lane.b32.xlu1 %v2835_v33, %s3595_s30  ;;  %v303_v53 = vsel %vm280_vm4, %v2617_v55, %v302_v43  ;;  %v326_v19 = vsel %vm325_vm5, %v2666_v12, %v324_v21  ;;  %v392_v33 = vrot.slane %v2819_v0, 2  ;;  %v414_v51 = vrot.slane %v2865_v1, 2 }
  0xfc   :  { %1183 = vrot.lane.b32.xlu0 %v2868_v44, %s3595_s30  ;;  %v316_v3 = vadd.f32 %v314_v49, %v271_v26  ;;  %v359_v23 = vsel %vm325_vm5, %v2696_v24, %v358_v47  ;;  %v382_v25 = vsel %vm370_vm6, %v2741_v46, %v381_v36  ;;  %v448_v44 = vrot.slane %v2909_v61, 2 }
  0xfd   :  { %v3020_v60 = vpop.permute.xlu1 %556  ;;  %v339_v55 = vadd.f32 %v337_v42, %v294_v27  ;;  %v348_v12 = vsel %vm325_vm5, %v2713_v32, %v347_v11  ;;  %v371_v52 = vsel %vm370_vm6, %v2755_v54, %v369_v13  ;;  %v437_v40 = vrot.slane %v2913_v59, 2  ;;  %v3599_v11 = vld [vmem:[#allocation24_spill] sm:$0xff]  ;;  %v3600_v13 = vld [vmem:[#allocation21_spill] sm:$0xff] }
  0xfe   :  { %v3027_v50 = vpop.permute.xlu0 %545  ;;  %v305_v24 = vadd.f32 %v303_v53, %v260_v34  ;;  %v328_v46 = vadd.f32 %v326_v19, %v283_v2  ;;  %v404_v4 = vsel %vm370_vm6, %v2803_v15, %v403_v38  ;;  %v427_v29 = vsel %vm415_vm7, %v2863_v58, %v426_v17  ;;  %v3601_v53 = vld [vmem:[#allocation25_spill] sm:$0xff] }
  0xff   :  { %1238 = vrot.lane.b32.xlu1 %v2871_v5, %s3596_s20  ;;  %v361_v32 = vadd.f32 %v359_v23, %v316_v3  ;;  %v384_v54 = vadd.f32 %v382_v25, %v339_v55  ;;  %v393_v63 = vsel %vm370_vm6, %v2819_v0, %v392_v33  ;;  %v416_v5 = vsel %vm415_vm7, %v2865_v1, %v414_v51  ;;  %v3603_v25 = vld [vmem:[#allocation23_spill] sm:$0xff] }
 0x100   :  { %1227 = vrot.lane.b32.xlu0 %v2874_v14, %s3596_s20  ;;  %v350_v31 = vadd.f32 %v348_v12, %v305_v24  ;;  %v373_v35 = vadd.f32 %v371_v52, %v328_v46  ;;  %v449_v15 = vsel %vm415_vm7, %v2909_v61, %v448_v44  ;;  %v1334_v10 = vstv %s1333_s27  ;;  %s3191_s27 = sld [smem:[#allocation2 + $0x28]] }
 0x101   :  { %v3048_v20 = vpop.permute.xlu1 %578  ;;  %v406_v14 = vadd.f32 %v404_v4, %v361_v32  ;;  %v429_v45 = vadd.f32 %v427_v29, %v384_v54  ;;  %v438_v0 = vsel %vm415_vm7, %v2913_v59, %v437_v40  ;;  %v492_v57 = vrot.slane %v2940_v30, 2  ;;  %v3604_v4 = vld [vmem:[#allocation26_spill] sm:$0xff] }
 0x102   :  { %v3054_v58 = vpop.permute.xlu0 %567  ;;  %v395_v1 = vadd.f32 %v393_v63, %v350_v31  ;;  %v418_v37 = vadd.f32 %v416_v5, %v373_v35  ;;  %v514_v28 = vrot.slane %v2968_v18, 2  ;;  %v3068_v61 = vmul.f32 %v2918_v62, %v2837_v39  ;;  %v3597_v62 = vld [vmem:[#allocation20_spill] sm:$0xff]  ;;  %v3605_v63 = vld [vmem:[#allocation27_spill] sm:$0xff] }
 0x103   :  { %1260 = vrot.lane.b32.xlu1 %v2877_v22, %s3596_s20  ;;  %v451_v6 = vadd.f32 %v449_v15, %v406_v14  ;;  %v503_v41 = vrot.slane %v2972_v56, 2  ;;  %v3073_v43 = vmul.f32 %v2926_v48, %v2837_v39  ;;  %v3076_v22 = vmul.f32 %v1334_v10, %v2837_v39 }
 0x104   :  { %1249 = vrot.lane.b32.xlu0 %v2884_v16, %s3596_s20  ;;  %v440_v21 = vadd.f32 %v438_v0, %v395_v1  ;;  %v558_v26 = vrot.slane %v3020_v60, 2  ;;  %v3079_v16 = vstv %s1366_s26  ;;  %v3081_v47 = vstv %s1355_s10  ;;  %s3193_s20 = sld [smem:[#allocation2 + $0x3c]]  ;;  %s3197_s26 = sld [smem:[#allocation2 + $0x18]] }
 0x105   :  { %v601_v59 = vpop.permute.xlu1 %600  ;;  %v463_v36 = vadd.f32 %v3597_v62, %v429_v45  ;;  %v493_v27 = vsel %vm100_vm0, %v2940_v30, %v492_v57  ;;  %v481_v49 = vrot.slane %v2948_v9, 2  ;;  %v547_v48 = vrot.slane %v3027_v50, 2  ;;  %v3602_v30 = vld [vmem:[#allocation22_spill] sm:$0xff]  ;;  %s1476_s10 = smul.f32 %s3172_s0, %s2061_s19 }
 0x106   :  { %v590_v34 = vpop.permute.xlu0 %589  ;;  %v458_v2 = vadd.f32 %v3600_v13, %v418_v37  ;;  %v515_v42 = vsel %vm100_vm0, %v2968_v18, %v514_v28  ;;  %v536_v38 = vrot.slane %v2992_v7, 2  ;;  %v602_v17 = vrot.slane %v601_v59, 2  ;;  %v3607_v37 = vld [vmem:[#allocation28_spill] sm:$0xff]  ;;  %s1487_s8 = smul.f32 %s3191_s27, %s2061_s19  ;;  %s3340_s27 = sld [smem:[#allocation2 + $0x69]] }
 0x107   :  { %1282 = vrot.lane.b32.xlu1 %v3599_v11, %s3598_s12  ;;  %v473_v19 = vadd.f32 %v3602_v30, %v451_v6  ;;  %v504_v33 = vsel %vm100_vm0, %v2972_v56, %v503_v41  ;;  %v525_v51 = vrot.slane %v2998_v8, 2  ;;  %v591_v3 = vrot.slane %v590_v34, 2  ;;  %s839_s0 = smul.f32 %s3215_s1, %s2061_s19 }
 0x108   :  { %1271 = vrot.lane.b32.xlu0 %v3601_v53, %s3598_s12  ;;  %v495_v18 = vadd.f32 %v493_v27, %v463_v36  ;;  %v468_v44 = vadd.f32 %v3603_v25, %v440_v21  ;;  %v559_v55 = vsel %vm145_vm1, %v3020_v60, %v558_v26  ;;  %v580_v12 = vrot.slane %v3048_v20, 2 }
 0x109   :  { %v623_v23 = vpop.permute.xlu1 %622  ;;  %v482_v40 = vsel %vm100_vm0, %v2948_v9, %v481_v49  ;;  %v517_v24 = vadd.f32 %v515_v42, %v473_v19  ;;  %v548_v56 = vsel %vm145_vm1, %v3027_v50, %v547_v48  ;;  %v569_v46 = vrot.slane %v3054_v58, 2 }
 0x10a   :  { %v612_v52 = vpop.permute.xlu0 %611  ;;  %v506_v29 = vadd.f32 %v504_v33, %v468_v44  ;;  %v537_v32 = vsel %vm145_vm1, %v2992_v7, %v536_v38  ;;  %v603_v60 = vsel %vm190_vm2, %v601_v59, %v602_v17  ;;  %v624_v54 = vrot.slane %v623_v23, 2  ;;  %s829_s24 = smul.f32 %s3197_s26, %s2061_s19 }
 0x10b   :  { %1304 = vrot.lane.b32.xlu1 %v3604_v4, %s3598_s12  ;;  %v526_v9 = vsel %vm145_vm1, %v2998_v8, %v525_v51  ;;  %v561_v50 = vadd.f32 %v559_v55, %v517_v24  ;;  %v592_v5 = vsel %vm190_vm2, %v590_v34, %v591_v3  ;;  %v613_v31 = vrot.slane %v612_v52, 2 }
 0x10c   :  { %1293 = vrot.lane.b32.xlu0 %v3605_v63, %s3598_s12  ;;  %v484_v7 = vadd.f32 %v482_v40, %v458_v2  ;;  %v550_v15 = vadd.f32 %v548_v56, %v506_v29  ;;  %v581_v10 = vsel %vm190_vm2, %v3048_v20, %v580_v12  ;;  %v539_v0 = vadd.f32 %v537_v32, %v495_v18  ;;  %s3204_s12 = sld [smem:[#allocation2 + $0x94]] }
 0x10d   :  { %v645_v35 = vpop.permute.xlu1 %644  ;;  %v570_v8 = vsel %vm190_vm2, %v3054_v58, %v569_v46  ;;  %v605_v57 = vadd.f32 %v603_v60, %v561_v50  ;;  %v625_v41 = vsel %vm235_vm3, %v623_v23, %v624_v54  ;;  %v614_v58 = vsel %vm235_vm3, %v612_v52, %v613_v31 }
 0x10e   :  { %v646_v14 = vrot.slane %v645_v35, 2  ;;  %v634_v45 = vpop.permute.xlu0 %633  ;;  %v528_v28 = vadd.f32 %v526_v9, %v484_v7  ;;  %v594_v6 = vadd.f32 %v592_v5, %v550_v15  ;;  %v583_v20 = vadd.f32 %v581_v10, %v539_v0 }
 0x10f   :  { %v635_v1 = vrot.slane %v634_v45, 2  ;;  %1326 = vrot.lane.b32.xlu1 %v3607_v37, %s3606_s7  ;;  %v1368_v11 = vmul.f32 %v3079_v16, %v2837_v39  ;;  %v1357_v42 = vmul.f32 %v3081_v47, %v2837_v39  ;;  %v1389_v38 = vstv %s1388_s9  ;;  %s3222_s9 = sld [smem:[#allocation2 + $0x4d]] }
 0x110   :  { %v647_v59 = vsel %vm235_vm3, %v645_v35, %v646_v14  ;;  %1315 = vrot.lane.b32.xlu0 %v3068_v61, %s3606_s7  ;;  %v572_v62 = vadd.f32 %v570_v8, %v528_v28  ;;  %v627_v61 = vadd.f32 %v625_v41, %v583_v20  ;;  %v1378_v16 = vstv %s1377_s15  ;;  %s3227_s15 = sld [smem:[#allocation2 + $0x29]] }
 0x111   :  { %v649_v21 = vadd.f32 %v647_v59, %v605_v57  ;;  %v636_v26 = vsel %vm235_vm3, %v634_v45, %v635_v1  ;;  %v667_v34 = vpop.permute.xlu1 %666  ;;  %v1390_v33 = vmul.f32 %v1389_v38, %v2837_v39  ;;  %v1379_v3 = vmul.f32 %v1378_v16, %v2837_v39 }
 0x112   :  { %v638_v36 = vadd.f32 %v636_v26, %v594_v6  ;;  %v668_v27 = vrot.slane %v667_v34, 2  ;;  %v656_v49 = vpop.permute.xlu0 %655  ;;  %v616_v13 = vadd.f32 %v614_v58, %v572_v62  ;;  %v1411_v23 = vstv %s1410_s17  ;;  %s1520_s17 = smul.f32 %s3204_s12, %s2061_s19  ;;  %s1997_s12 = smov 19  }
 0x113   :  { %v657_v48 = vrot.slane %v656_v49, 2  ;;  %1348 = vrot.lane.b32.xlu1 %v3073_v43, %s3606_s7  ;;  %v1400_v55 = vstv %s1399_s29  ;;  %v1412_v56 = vmul.f32 %v1411_v23, %v2837_v39  ;;  %v1433_v29 = vstv %s1432_s11  ;;  %s1509_s29 = smul.f32 %s3209_s23, %s2061_s19 }
 0x114   :  { %v669_v2 = vsel %vm280_vm4, %v667_v34, %v668_v27  ;;  %1337 = vrot.lane.b32.xlu0 %v3076_v22, %s3606_s7  ;;  %v1401_v4 = vmul.f32 %v1400_v55, %v2837_v39  ;;  %v1422_v63 = vstv %s1421_s6  ;;  %v1434_v35 = vmul.f32 %v1433_v29, %v2837_v39  ;;  %s1498_s7 = smul.f32 %s3186_s4, %s2061_s19  ;;  %s3335_s4 = sld [smem:[#allocation2 + $0x8d]] }
 0x115   :  { %v671_v17 = vadd.f32 %v669_v2, %v627_v61  ;;  %v658_v43 = vsel %vm280_vm4, %v656_v49, %v657_v48  ;;  %v689_v53 = vpop.permute.xlu1 %688  ;;  %v1423_v15 = vmul.f32 %v1422_v63, %v2837_v39  ;;  %v1455_v10 = vstv %s1454_s16  ;;  %s844_s11 = smul.f32 %s3211_s22, %s2061_s19 }
 0x116   :  { %v660_v30 = vadd.f32 %v658_v43, %v616_v13  ;;  %v690_v22 = vrot.slane %v689_v53, 2  ;;  %v678_v19 = vpop.permute.xlu0 %677  ;;  %v1444_v8 = vstv %s1443_s14  ;;  %v1456_v6 = vmul.f32 %v1455_v10, %v2837_v39  ;;  %s1542_s6 = smul.f32 %s3222_s9, %s2061_s19 }
 0x117   :  { %v679_v47 = vrot.slane %v678_v19, 2  ;;  %1370 = vrot.lane.b32.xlu1 %v1368_v11, %s3547_s5  ;;  %v1445_v59 = vmul.f32 %v1444_v8, %v2837_v39  ;;  %v1477_v20 = vstv %s1476_s10  ;;  %v1466_v34 = vstv %s1465_s21  ;;  %s1531_s25 = smul.f32 %s3227_s15, %s2061_s19 }
 0x118   :  { %v691_v51 = vsel %vm280_vm4, %v689_v53, %v690_v22  ;;  %1359 = vrot.lane.b32.xlu0 %v1357_v42, %s3547_s5  ;;  %v1478_v61 = vmul.f32 %v1477_v20, %v2837_v39  ;;  %v1467_v11 = vmul.f32 %v1466_v34, %v2837_v39  ;;  %v1499_v13 = vstv %s1498_s7  ;;  %s1553_s16 = smul.f32 %s3245_s13, %s2061_s19 }
 0x119   :  { %v693_v18 = vadd.f32 %v691_v51, %v649_v21  ;;  %v680_v25 = vsel %vm280_vm4, %v678_v19, %v679_v47  ;;  %v711_v44 = vpop.permute.xlu1 %710  ;;  %v1500_v22 = vmul.f32 %v1499_v13, %v2837_v39  ;;  %v830_v51 = vstv %s829_s24  ;;  %s1213_s10 = smul.f32 %s3340_s27, %s2061_s19 }
 0x11a   :  { %v682_v12 = vadd.f32 %v680_v25, %v638_v36  ;;  %v712_v52 = vrot.slane %v711_v44, 2  ;;  %v700_v40 = vpop.permute.xlu0 %699  ;;  %v845_v29 = vstv %s844_s11  ;;  %v1543_v63 = vstv %s1542_s6  ;;  %s1218_s26 = smul.f32 %s3335_s4, %s2061_s19 }
 0x11b   :  { %v701_v24 = vrot.slane %v700_v40, 2  ;;  %1392 = vrot.lane.b32.xlu1 %v1390_v33, %s3547_s5  ;;  %v1544_v8 = vmul.f32 %v1543_v63, %v2837_v39  ;;  %v1554_v20 = vstv %s1553_s16 }
 0x11c   :  { %v713_v46 = vsel %vm325_vm5, %v711_v44, %v712_v52  ;;  %1381 = vrot.lane.b32.xlu0 %v1379_v3, %s3547_s5  ;;  %v1521_v3 = vstv %s1520_s17  ;;  %v1510_v44 = vstv %s1509_s29 }
 0x11d   :  { %v715_v32 = vadd.f32 %v713_v46, %v671_v17  ;;  %v702_v60 = vsel %vm325_vm5, %v700_v40, %v701_v24  ;;  %v733_v54 = vpop.permute.xlu1 %732  ;;  %v1488_v17 = vstv %s1487_s8  ;;  %v1897_v40 = vld [vmem:[#allocation6 + $0xc] sm:$0x3f] }
 0x11e   :  { %v704_v9 = vadd.f32 %v702_v60, %v660_v30  ;;  %v734_v50 = vrot.slane %v733_v54, 2  ;;  %v722_v5 = vpop.permute.xlu0 %721  ;;  %v1489_v33 = vmul.f32 %v1488_v17, %v2837_v39  ;;  %v831_v46 = vmul.f32 %v1897_v40, %v830_v51 }
 0x11f   :  { %v723_v31 = vrot.slane %v722_v5, 2  ;;  %1414 = vrot.lane.b32.xlu1 %v1412_v56, %s3565_s18  ;;  %v1511_v60 = vmul.f32 %v1510_v44, %v2837_v39  ;;  %v846_v10 = vmul.f32 %v1897_v40, %v845_v29 }
 0x120   :  { %v735_v7 = vsel %vm325_vm5, %v733_v54, %v734_v50  ;;  %1403 = vrot.lane.b32.xlu0 %v1401_v4, %s3565_s18  ;;  %v1522_v4 = vmul.f32 %v1521_v3, %v2837_v39  ;;  %v840_v54 = vstv %s839_s0 }
 0x121   :  { %v737_v14 = vadd.f32 %v735_v7, %v693_v18  ;;  %v724_v45 = vsel %vm325_vm5, %v722_v5, %v723_v31  ;;  %v755_v0 = vpop.permute.xlu1 %754  ;;  %v1532_v31 = vstv %s1531_s25 }
 0x122   :  { %v726_v57 = vadd.f32 %v724_v45, %v682_v12  ;;  %v756_v1 = vrot.slane %v755_v0, 2  ;;  %v744_v37 = vpop.permute.xlu0 %743 }
 0x123   :  { %v745_v28 = vrot.slane %v744_v37, 2  ;;  %1436 = vrot.lane.b32.xlu1 %v1434_v35, %s3565_s18 }
 0x124   :  { %v757_v41 = vsel %vm370_vm6, %v755_v0, %v756_v1  ;;  %1425 = vrot.lane.b32.xlu0 %v1423_v15, %s3565_s18  ;;  %s834_s18 = smul.f32 %s3193_s20, %s2061_s19  ;;  %v841_v0 = vmul.f32 %v1897_v40, %v840_v54 }
 0x125   :  { %v759_v58 = vadd.f32 %v757_v41, %v715_v32  ;;  %v746_v21 = vsel %vm370_vm6, %v744_v37, %v745_v28  ;;  %v777_v26 = vpop.permute.xlu1 %776  ;;  %v1533_v37 = vmul.f32 %v1532_v31, %v2837_v39 }
 0x126   :  { %v748_v62 = vadd.f32 %v746_v21, %v704_v9  ;;  %v778_v36 = vrot.slane %v777_v26, 2  ;;  %v766_v27 = vpop.permute.xlu0 %765  ;;  %v835_v19 = vstv %s834_s18 }
 0x127   :  { %v767_v49 = vrot.slane %v766_v27, 2  ;;  %1458 = vrot.lane.b32.xlu1 %v1456_v6, %s3585_s28  ;;  %v836_v24 = vmul.f32 %v1897_v40, %v835_v19 }
 0x128   :  { %v779_v48 = vsel %vm370_vm6, %v777_v26, %v778_v36  ;;  %1447 = vrot.lane.b32.xlu0 %v1445_v59, %s3585_s28 }
 0x129   :  { %v781_v2 = vadd.f32 %v779_v48, %v737_v14  ;;  %v768_v42 = vsel %vm370_vm6, %v766_v27, %v767_v49  ;;  %v799_v38 = vpop.permute.xlu1 %798 }
 0x12a   :  { %v770_v43 = vadd.f32 %v768_v42, %v726_v57  ;;  %v800_v53 = vrot.slane %v799_v38, 2  ;;  %v788_v16 = vpop.permute.xlu0 %787 }
 0x12b   :  { %v789_v30 = vrot.slane %v788_v16, 2  ;;  %1480 = vrot.lane.b32.xlu1 %v1478_v61, %s3585_s28  ;;  %v1555_v61 = vmul.f32 %v1554_v20, %v2837_v39 }
 0x12c   :  { %v801_v47 = vsel %vm415_vm7, %v799_v38, %v800_v53  ;;  %1469 = vrot.lane.b32.xlu0 %v1467_v11, %s3585_s28  ;;  %s1564_s28 = smul.f32 %s3240_s2, %s2061_s19 }
 0x12d   :  { %v803_v23 = vadd.f32 %v801_v47, %v759_v58  ;;  %v790_v18 = vsel %vm415_vm7, %v788_v16, %v789_v30  ;;  %v821_v25 = vpop.permute.xlu1 %820 }
 0x12e   :  { %v792_v55 = vadd.f32 %v790_v18, %v748_v62  ;;  %v822_v12 = vrot.slane %v821_v25, 2  ;;  %v810_v52 = vpop.permute.xlu0 %809  ;;  %v1565_v28 = vstv %s1564_s28 }
 0x12f   :  { %v811_v56 = vrot.slane %v810_v52, 2  ;;  %1502 = vrot.lane.b32.xlu1 %v1500_v22, %s3594_s3  ;;  %v837_v14 = vadd.f32 %v836_v24, %v803_v23  ;;  %v1566_v36 = vmul.f32 %v1565_v28, %v2837_v39 }
 0x130   :  { %v823_v32 = vsel %vm415_vm7, %v821_v25, %v822_v12  ;;  %1491 = vrot.lane.b32.xlu0 %v1489_v33, %s3594_s3  ;;  %v832_v1 = vadd.f32 %v831_v46, %v792_v55 }
 0x131   :  { %v825_v9 = vadd.f32 %v823_v32, %v781_v2  ;;  %v812_v50 = vsel %vm415_vm7, %v810_v52, %v811_v56  ;;  %v865_v5 = vpop.permute.xlu1 %864 }
 0x132   :  { %v814_v35 = vadd.f32 %v812_v50, %v770_v43  ;;  %v866_v7 = vrot.slane %v865_v5, 2  ;;  %v854_v15 = vpop.permute.xlu0 %853 }
 0x133   :  { %v855_v45 = vrot.slane %v854_v15, 2  ;;  %1524 = vrot.lane.b32.xlu1 %v1522_v4, %s3594_s3  ;;  %v847_v34 = vadd.f32 %v846_v10, %v825_v9 }
 0x134   :  { %v867_v57 = vsel %vm100_vm0, %v865_v5, %v866_v7  ;;  %1513 = vrot.lane.b32.xlu0 %v1511_v60, %s3594_s3  ;;  %v842_v49 = vadd.f32 %v841_v0, %v814_v35  ;;  %s1835_s3 = sld [smem:[#allocation2 + $0x45]] }
 0x135   :  { %v869_v6 = vadd.f32 %v867_v57, %v837_v14  ;;  %v856_v41 = vsel %vm100_vm0, %v854_v15, %v855_v45  ;;  %v887_v59 = vpop.permute.xlu1 %886 }
 0x136   :  { %v858_v58 = vadd.f32 %v856_v41, %v832_v1  ;;  %v888_v21 = vrot.slane %v887_v59, 2  ;;  %v876_v26 = vpop.permute.xlu0 %875 }
 0x137   :  { %v877_v62 = vrot.slane %v876_v26, 2  ;;  %1546 = vrot.lane.b32.xlu1 %v1544_v8, %s3595_s30 }
 0x138   :  { %v889_v27 = vsel %vm100_vm0, %v887_v59, %v888_v21  ;;  %1535 = vrot.lane.b32.xlu0 %v1533_v37, %s3595_s30 }
 0x139   :  { %v891_v48 = vadd.f32 %v889_v27, %v847_v34  ;;  %v878_v11 = vsel %vm100_vm0, %v876_v26, %v877_v62  ;;  %v909_v13 = vpop.permute.xlu1 %908 }
 0x13a   :  { %v880_v2 = vadd.f32 %v878_v11, %v842_v49  ;;  %v910_v42 = vrot.slane %v909_v13, 2  ;;  %v898_v38 = vpop.permute.xlu0 %897  ;;  %s1208_s14 = smul.f32 %s1835_s3, %s2061_s19 }
 0x13b   :  { %v899_v17 = vrot.slane %v898_v38, 2  ;;  %1568 = vrot.lane.b32.xlu1 %v1566_v36, %s3595_s30 }
 0x13c   :  { %v911_v43 = vsel %vm145_vm1, %v909_v13, %v910_v42  ;;  %1557 = vrot.lane.b32.xlu0 %v1555_v61, %s3595_s30  ;;  %s1834_s30 = sld [smem:[#allocation2 + $0x21]] }
 0x13d   :  { %v913_v53 = vadd.f32 %v911_v43, %v869_v6  ;;  %v900_v16 = vsel %vm145_vm1, %v898_v38, %v899_v17  ;;  %v931_v30 = vpop.permute.xlu1 %930 }
 0x13e   :  { %v902_v22 = vadd.f32 %v900_v16, %v858_v58  ;;  %v932_v39 = vrot.slane %v931_v30, 2  ;;  %v920_v19 = vpop.permute.xlu0 %919 }
 0x13f   :  { %v921_v47 = vrot.slane %v920_v19, 2 }
 0x140   :  { %v933_v33 = vsel %vm145_vm1, %v931_v30, %v932_v39 }
 0x141   :  { %v935_v51 = vadd.f32 %v933_v33, %v891_v48  ;;  %v922_v3 = vsel %vm145_vm1, %v920_v19, %v921_v47  ;;  %v953_v23 = vpop.permute.xlu1 %952 }
 0x142   :  { %v924_v18 = vadd.f32 %v922_v3, %v880_v2  ;;  %v954_v25 = vrot.slane %v953_v23, 2  ;;  %v942_v44 = vpop.permute.xlu0 %941  ;;  %s1203_s20 = smul.f32 %s1834_s30, %s2061_s19  ;;  %s54_s19 = sld [smem:[#allocation2]] }
 0x143   :  { %v943_v55 = vrot.slane %v942_v44, 2 }
 0x144   :  { %v955_v12 = vsel %vm190_vm2, %v953_v23, %v954_v25 }
 0x145   :  { %v957_v52 = vadd.f32 %v955_v12, %v913_v53  ;;  %v944_v40 = vsel %vm190_vm2, %v942_v44, %v943_v55  ;;  %v975_v24 = vpop.permute.xlu1 %974 }
 0x146   :  { %v946_v56 = vadd.f32 %v944_v40, %v902_v22  ;;  %v976_v46 = vrot.slane %v975_v24, 2  ;;  %v964_v4 = vpop.permute.xlu0 %963 }
 0x147   :  { %v965_v29 = vrot.slane %v964_v4, 2 }
 0x148   :  { %v977_v32 = vsel %vm190_vm2, %v975_v24, %v976_v46 }
 0x149   :  { %v979_v60 = vadd.f32 %v977_v32, %v935_v51  ;;  %v966_v54 = vsel %vm190_vm2, %v964_v4, %v965_v29  ;;  %v997_v63 = vpop.permute.xlu1 %996 }
 0x14a   :  { %v968_v9 = vadd.f32 %v966_v54, %v924_v18  ;;  %v998_v50 = vrot.slane %v997_v63, 2  ;;  %v986_v5 = vpop.permute.xlu0 %985 }
 0x14b   :  { %v987_v31 = vrot.slane %v986_v5, 2 }
 0x14c   :  { %v999_v35 = vsel %vm235_vm3, %v997_v63, %v998_v50  ;;  %v1209_v63 = vstv %s1208_s14 }
 0x14d   :  { %v1001_v7 = vadd.f32 %v999_v35, %v957_v52  ;;  %v988_v15 = vsel %vm235_vm3, %v986_v5, %v987_v31  ;;  %v1019_v10 = vpop.permute.xlu1 %1018 }
 0x14e   :  { %v990_v14 = vadd.f32 %v988_v15, %v946_v56  ;;  %v1020_v45 = vrot.slane %v1019_v10, 2  ;;  %v1008_v0 = vpop.permute.xlu0 %1007 }
 0x14f   :  { %v1009_v8 = vrot.slane %v1008_v0, 2 }
 0x150   :  { %v1021_v57 = vsel %vm235_vm3, %v1019_v10, %v1020_v45  ;;  %v1898_v45 = vld [vmem:[#allocation6 + $0x12] sm:$0x3f] }
 0x151   :  { %v1023_v1 = vadd.f32 %v1021_v57, %v979_v60  ;;  %v1010_v37 = vsel %vm235_vm3, %v1008_v0, %v1009_v8  ;;  %v1041_v28 = vpop.permute.xlu1 %1040  ;;  %v1210_v0 = vmul.f32 %v1898_v45, %v1209_v63  ;;  %v1204_v8 = vstv %s1203_s20 }
 0x152   :  { %v1012_v6 = vadd.f32 %v1010_v37, %v968_v9  ;;  %v1042_v41 = vrot.slane %v1041_v28, 2  ;;  %v1030_v59 = vpop.permute.xlu0 %1029 }
 0x153   :  { %v1031_v20 = vrot.slane %v1030_v59, 2 }
 0x154   :  { %v1043_v58 = vsel %vm280_vm4, %v1041_v28, %v1042_v41 }
 0x155   :  { %v3298_v21 = vadd.f32 %v1043_v58, %v1001_v7  ;;  %v1032_v26 = vsel %vm280_vm4, %v1030_v59, %v1031_v20  ;;  %v1063_v34 = vpop.permute.xlu1 %1062 }
 0x156   :  { %v3301_v62 = vadd.f32 %v1032_v26, %v990_v14  ;;  %v1064_v36 = vrot.slane %v1063_v34, 2  ;;  %v1052_v27 = vpop.permute.xlu0 %1051 }
 0x157   :  { %v1053_v49 = vrot.slane %v1052_v27, 2 }
 0x158   :  { %v1065_v61 = vsel %vm280_vm4, %v1063_v34, %v1064_v36  ;;  %v1205_v36 = vmul.f32 %v1898_v45, %v1204_v8 }
 0x159   :  { %v3304_v48 = vadd.f32 %v1065_v61, %v1023_v1  ;;  %v1054_v11 = vsel %vm280_vm4, %v1052_v27, %v1053_v49  ;;  %v1085_v13 = vpop.permute.xlu1 %1084 }
 0x15a   :  { %v3307_v2 = vadd.f32 %v1054_v11, %v1012_v6  ;;  %v1074_v42 = vpop.permute.xlu0 %1073  ;;  %v1086_v56 = vrot.slane %v1085_v13, 2 }
 0x15b   :  { %v1075_v46 = vrot.slane %v1074_v42, 2 }
 0x15c   :  { %v1087_v9 = vsel %vm325_vm5, %v1085_v13, %v1086_v56 }
 0x15d   :  { %v1107_v38 = vpop.permute.xlu1 %1106  ;;  %v1076_v31 = vsel %vm325_vm5, %v1074_v42, %v1075_v46  ;;  %v1089_v1 = vadd.f32 %v1087_v9, %v3298_v21 }
 0x15e   :  { %v1096_v17 = vpop.permute.xlu0 %1095  ;;  %v1108_v29 = vrot.slane %v1107_v38, 2  ;;  %v1078_v41 = vadd.f32 %v1076_v31, %v3301_v62  ;;  %v1219_v62 = vstv %s1218_s26 }
 0x15f   :  { %v1097_v50 = vrot.slane %v1096_v17, 2 }
 0x160   :  { %v1109_v10 = vsel %vm325_vm5, %v1107_v38, %v1108_v29  ;;  %v1220_v29 = vmul.f32 %v1898_v45, %v1219_v62 }
 0x161   :  { %v1129_v43 = vpop.permute.xlu1 %1128  ;;  %v1098_v59 = vsel %vm325_vm5, %v1096_v17, %v1097_v50  ;;  %v1111_v26 = vadd.f32 %v1109_v10, %v3304_v48  ;;  %v1214_v17 = vstv %s1213_s10 }
 0x162   :  { %v1118_v53 = vpop.permute.xlu0 %1117  ;;  %v1130_v60 = vrot.slane %v1129_v43, 2  ;;  %v1100_v42 = vadd.f32 %v1098_v59, %v3307_v2  ;;  %v1215_v63 = vmul.f32 %v1898_v45, %v1214_v17 }
 0x163   :  { %v1119_v54 = vrot.slane %v1118_v53, 2 }
 0x164   :  { %v1131_v37 = vsel %vm370_vm6, %v1129_v43, %v1130_v60 }
 0x165   :  { %v1151_v16 = vpop.permute.xlu1 %1150  ;;  %v1120_v28 = vsel %vm370_vm6, %v1118_v53, %v1119_v54  ;;  %v1133_v49 = vadd.f32 %v1131_v37, %v1089_v1 }
 0x166   :  { %v1140_v30 = vpop.permute.xlu0 %1139  ;;  %v1152_v5 = vrot.slane %v1151_v16, 2  ;;  %v1122_v61 = vadd.f32 %v1120_v28, %v1078_v41 }
 0x167   :  { %v1141_v14 = vrot.slane %v1140_v30, 2 }
 0x168   :  { %v1153_v20 = vsel %vm370_vm6, %v1151_v16, %v1152_v5 }
 0x169   :  { %v1173_v22 = vpop.permute.xlu1 %1172  ;;  %v1142_v11 = vsel %vm370_vm6, %v1140_v30, %v1141_v14  ;;  %v1155_v38 = vadd.f32 %v1153_v20, %v1111_v26 }
 0x16a   :  { %v1162_v39 = vpop.permute.xlu0 %1161  ;;  %v1174_v35 = vrot.slane %v1173_v22, 2 }
 0x16b   :  { %v1163_v7 = vrot.slane %v1162_v39, 2 }
 0x16c   :  { %v1175_v34 = vsel %vm415_vm7, %v1173_v22, %v1174_v35 }
 0x16d   :  { %v3309_v19 = vpop.permute.xlu1 %1194  ;;  %v1164_v21 = vsel %vm415_vm7, %v1162_v39, %v1163_v7  ;;  %v1177_v43 = vadd.f32 %v1175_v34, %v1133_v49  ;;  %v1144_v39 = vadd.f32 %v1142_v11, %v1100_v42 }
 0x16e   :  { %v3311_v47 = vpop.permute.xlu0 %1183  ;;  %v1196_v6 = vrot.slane %v3309_v19, 2  ;;  %v1166_v53 = vadd.f32 %v1164_v21, %v1122_v61 }
 0x16f   :  { %v1185_v58 = vrot.slane %v3311_v47, 2 }
 0x170   :  { %v1197_v48 = vsel %vm415_vm7, %v3309_v19, %v1196_v6  ;;  %v1206_v5 = vadd.f32 %v1205_v36, %v1166_v53 }
 0x171   :  { %v3313_v33 = vpop.permute.xlu1 %1238  ;;  %v1186_v16 = vsel %vm415_vm7, %v3311_v47, %v1185_v58  ;;  %v1199_v2 = vadd.f32 %v1197_v48, %v1155_v38  ;;  %v1211_v47 = vadd.f32 %v1210_v0, %v1177_v43 }
 0x172   :  { %v3315_v51 = vpop.permute.xlu0 %1227  ;;  %v1240_v22 = vrot.slane %v3313_v33, 2  ;;  %v1188_v54 = vadd.f32 %v1186_v16, %v1144_v39 }
 0x173   :  { %v1229_v30 = vrot.slane %v3315_v51, 2  ;;  %v1221_v8 = vadd.f32 %v1220_v29, %v1199_v2 }
 0x174   :  { %v1241_v50 = vsel %vm100_vm0, %v3313_v33, %v1240_v22  ;;  %v1216_v37 = vadd.f32 %v1215_v63, %v1188_v54 }
 0x175   :  { %v3317_v3 = vpop.permute.xlu1 %1260  ;;  %v1230_v31 = vsel %vm100_vm0, %v3315_v51, %v1229_v30  ;;  %v1243_v6 = vadd.f32 %v1241_v50, %v1211_v47 }
 0x176   :  { %v3319_v23 = vpop.permute.xlu0 %1249  ;;  %v1262_v56 = vrot.slane %v3317_v3, 2  ;;  %v1232_v41 = vadd.f32 %v1230_v31, %v1206_v5 }
 0x177   :  { %v1251_v60 = vrot.slane %v3319_v23, 2 }
 0x178   :  { %v1263_v35 = vsel %vm100_vm0, %v3317_v3, %v1262_v56 }
 0x179   :  { %v3321_v18 = vpop.permute.xlu1 %1282  ;;  %v1252_v45 = vsel %vm100_vm0, %v3319_v23, %v1251_v60  ;;  %v1265_v59 = vadd.f32 %v1263_v35, %v1221_v8 }
 0x17a   :  { %v3323_v25 = vpop.permute.xlu0 %1271  ;;  %v1284_v9 = vrot.slane %v3321_v18, 2  ;;  %v1254_v20 = vadd.f32 %v1252_v45, %v1216_v37 }
 0x17b   :  { %v1273_v7 = vrot.slane %v3323_v25, 2 }
 0x17c   :  { %v1285_v51 = vsel %vm145_vm1, %v3321_v18, %v1284_v9 }
 0x17d   :  { %v3325_v44 = vpop.permute.xlu1 %1304  ;;  %v1274_v23 = vsel %vm145_vm1, %v3323_v25, %v1273_v7  ;;  %v1287_v21 = vadd.f32 %v1285_v51, %v1243_v6 }
 0x17e   :  { %v3327_v55 = vpop.permute.xlu0 %1293  ;;  %v1306_v10 = vrot.slane %v3325_v44, 2  ;;  %v1276_v42 = vadd.f32 %v1274_v23, %v1232_v41 }
 0x17f   :  { %v1295_v0 = vrot.slane %v3327_v55, 2 }
 0x180   :  { %v1307_v58 = vsel %vm145_vm1, %v3325_v44, %v1306_v10 }
 0x181   :  { %v3329_v12 = vpop.permute.xlu1 %1326  ;;  %v1296_v18 = vsel %vm145_vm1, %v3327_v55, %v1295_v0  ;;  %v1309_v38 = vadd.f32 %v1307_v58, %v1265_v59 }
 0x182   :  { %v3331_v52 = vpop.permute.xlu0 %1315  ;;  %v1328_v33 = vrot.slane %v3329_v12, 2  ;;  %v1298_v48 = vadd.f32 %v1296_v18, %v1254_v20 }
 0x183   :  { %v1317_v3 = vrot.slane %v3331_v52, 2 }
 0x184   :  { %v1329_v36 = vsel %vm190_vm2, %v3329_v12, %v1328_v33 }
 0x185   :  { %v3333_v40 = vpop.permute.xlu1 %1348  ;;  %v1318_v11 = vsel %vm190_vm2, %v3331_v52, %v1317_v3  ;;  %v1331_v17 = vadd.f32 %v1329_v36, %v1287_v21 }
 0x186   :  { %v3337_v24 = vpop.permute.xlu0 %1337  ;;  %v1350_v28 = vrot.slane %v3333_v40, 2  ;;  %v1320_v52 = vadd.f32 %v1318_v11, %v1276_v42 }
 0x187   :  { %v1339_v26 = vrot.slane %v3337_v24, 2 }
 0x188   :  { %v1351_v25 = vsel %vm190_vm2, %v3333_v40, %v1350_v28 }
 0x189   :  { %v3342_v4 = vpop.permute.xlu1 %1370  ;;  %v1340_v12 = vsel %vm190_vm2, %v3337_v24, %v1339_v26  ;;  %v1353_v16 = vadd.f32 %v1351_v25, %v1309_v38 }
 0x18a   :  { %v3345_v32 = vpop.permute.xlu0 %1359  ;;  %v1372_v49 = vrot.slane %v3342_v4, 2  ;;  %v1342_v24 = vadd.f32 %v1340_v12, %v1298_v48 }
 0x18b   :  { %v1361_v44 = vrot.slane %v3345_v32, 2 }
 0x18c   :  { %v1373_v40 = vsel %vm235_vm3, %v3342_v4, %v1372_v49 }
 0x18d   :  { %v3349_v15 = vpop.permute.xlu1 %1392  ;;  %v1362_v30 = vsel %vm235_vm3, %v3345_v32, %v1361_v44  ;;  %v1375_v9 = vadd.f32 %v1373_v40, %v1331_v17  ;;  %v1609_v40 = vld [vmem:[#allocation6 + $0x6] sm:$0x3f] }
 0x18e   :  { %v3354_v57 = vpop.permute.xlu0 %1381  ;;  %v1394_v62 = vrot.slane %v3349_v15, 2  ;;  %v1364_v5 = vadd.f32 %v1362_v30, %v1320_v52  ;;  %v1640_v30 = vld [vmem:[#allocation6 + $0xc] sm:$0x3f] }
 0x18f   :  { %v1383_v2 = vrot.slane %v3354_v57, 2 }
 0x190   :  { %v1395_v56 = vsel %vm235_vm3, %v3349_v15, %v1394_v62 }
 0x191   :  { %v3369_v27 = vpop.permute.xlu1 %1414  ;;  %v1397_v15 = vadd.f32 %v1395_v56, %v1353_v16  ;;  %v56_v16 = vstv %s54_s19 }
 0x192   :  { %v3372_v13 = vpop.permute.xlu0 %1403  ;;  %v1416_v55 = vrot.slane %v3369_v27, 2  ;;  %1887 = vrcp.f32 %v56_v16 }
 0x193   :  { %v1405_v43 = vrot.slane %v3372_v13, 2 }
 0x194   :  { %v1417_v60 = vsel %vm280_vm4, %v3369_v27, %v1416_v55  ;;  %v1384_v27 = vsel %vm235_vm3, %v3354_v57, %v1383_v2 }
 0x195   :  { %v3382_v46 = vpop.permute.xlu1 %1436  ;;  %v1406_v4 = vsel %vm280_vm4, %v3372_v13, %v1405_v43  ;;  %v1419_v10 = vadd.f32 %v1417_v60, %v1375_v9  ;;  %v1386_v57 = vadd.f32 %v1384_v27, %v1342_v24  ;;  %v1618_v27 = vld [vmem:[#allocation7 + $0x6] sm:$0x3f] }
 0x196   :  { %v3385_v19 = vpop.permute.xlu0 %1425  ;;  %v1438_v54 = vrot.slane %v3382_v46, 2  ;;  %v1408_v0 = vadd.f32 %v1406_v4, %v1364_v5 }
 0x197   :  { %v1427_v47 = vrot.slane %v3385_v19, 2 }
 0x198   :  { %v1439_v13 = vsel %vm280_vm4, %v3382_v46, %v1438_v54 }
 0x199   :  { %v1459_v14 = vpop.permute.xlu1 %1458  ;;  %v1428_v51 = vsel %vm280_vm4, %v3385_v19, %v1427_v47  ;;  %v1441_v23 = vadd.f32 %v1439_v13, %v1397_v15 }
 0x19a   :  { %v1448_v1 = vpop.permute.xlu0 %1447  ;;  %v1460_v22 = vrot.slane %v1459_v14, 2  ;;  %v1430_v21 = vadd.f32 %v1428_v51, %v1386_v57  ;;  %v1649_v51 = vld [vmem:[#allocation7 + $0xc] sm:$0x3f] }
 0x19b   :  { %v1449_v29 = vrot.slane %v1448_v1, 2 }
 0x19c   :  { %v1461_v31 = vsel %vm325_vm5, %v1459_v14, %v1460_v22  ;;  %v1899_v22 = vld [vmem:[#allocation6] sm:$0x3f]  ;;  %v1888_v56 = vpop.eup %1887 }
 0x19d   :  { %v1481_v34 = vpop.permute.xlu1 %1480  ;;  %v1450_v8 = vsel %vm325_vm5, %v1448_v1, %v1449_v29  ;;  %v1463_v14 = vadd.f32 %v1461_v31, %v1419_v10  ;;  %1870 = vpush %v1888_v56 }
 0x19e   :  { %v1470_v61 = vpop.permute.xlu0 %1469  ;;  %v1482_v35 = vrot.slane %v1481_v34, 2  ;;  %v1452_v41 = vadd.f32 %v1450_v8, %v1408_v0  ;;  %v1582_v8 = vld [vmem:[#allocation7] sm:$0x3f] }
 0x19f   :  { %v1471_v45 = vrot.slane %v1470_v61, 2 }
 0x1a0   :  { %v1483_v1 = vsel %vm325_vm5, %v1481_v34, %v1482_v35 }
 0x1a1   :  { %v1503_v53 = vpop.permute.xlu1 %1502  ;;  %v1472_v46 = vsel %vm325_vm5, %v1470_v61, %v1471_v45  ;;  %v1485_v49 = vadd.f32 %v1483_v1, %v1441_v23 }
 0x1a2   :  { %v1492_v39 = vpop.permute.xlu0 %1491  ;;  %v1504_v63 = vrot.slane %v1503_v53, 2  ;;  %v1474_v62 = vadd.f32 %v1472_v46, %v1430_v21 }
 0x1a3   :  { %v1493_v32 = vrot.slane %v1492_v39, 2 }
 0x1a4   :  { %v1505_v33 = vsel %vm370_vm6, %v1503_v53, %v1504_v63 }
 0x1a5   :  { %v1525_v50 = vpop.permute.xlu1 %1524  ;;  %v1494_v3 = vsel %vm370_vm6, %v1492_v39, %v1493_v32  ;;  %v1507_v58 = vadd.f32 %v1505_v33, %v1463_v14  ;;  %v1671_v39 = vld [vmem:[#allocation6 + $0x12] sm:$0x3f] }
 0x1a6   :  { %v1514_v7 = vpop.permute.xlu0 %1513  ;;  %v1526_v37 = vrot.slane %v1525_v50, 2  ;;  %v1496_v18 = vadd.f32 %v1494_v3, %v1452_v41 }
 0x1a7   :  { %v1515_v28 = vrot.slane %v1514_v7, 2 }
 0x1a8   :  { %v1527_v19 = vsel %vm370_vm6, %v1525_v50, %v1526_v37  ;;  %v1680_v37 = vld [vmem:[#allocation7 + $0x12] sm:$0x3f] }
 0x1a9   :  { %v1547_v6 = vpop.permute.xlu1 %1546  ;;  %v1516_v11 = vsel %vm370_vm6, %v1514_v7, %v1515_v28  ;;  %v1529_v55 = vadd.f32 %v1527_v19, %v1485_v49 }
 0x1aa   :  { %v1548_v59 = vrot.slane %v1547_v6, 2  ;;  %v1536_v20 = vpop.permute.xlu0 %1535  ;;  %v1518_v17 = vadd.f32 %v1516_v11, %v1474_v62 }
 0x1ab   :  { %v1537_v26 = vrot.slane %v1536_v20, 2 }
 0x1ac   :  { %v1549_v36 = vsel %vm415_vm7, %v1547_v6, %v1548_v59 }
 0x1ad   :  { %v1551_v25 = vadd.f32 %v1549_v36, %v1507_v58  ;;  %v1538_v34 = vsel %vm415_vm7, %v1536_v20, %v1537_v26  ;;  %v1569_v44 = vpop.permute.xlu1 %1568 }
 0x1ae   :  { %v1540_v42 = vadd.f32 %v1538_v34, %v1496_v18  ;;  %v1570_v38 = vrot.slane %v1569_v44, 2  ;;  %v1558_v61 = vpop.permute.xlu0 %1557 }
 0x1af   :  { %v1559_v48 = vrot.slane %v1558_v61, 2  ;;  %1611 = vrot.lane.b32.xlu1 %v1551_v25, %s1997_s12 }
 0x1b0   :  { %v1571_v12 = vsel %vm415_vm7, %v1569_v44, %v1570_v38  ;;  %1575 = vrot.lane.b32.xlu0 %v1540_v42, %s1997_s12 }
 0x1b1   :  { %v1573_v43 = vadd.f32 %v1571_v12, %v1529_v55  ;;  %v1560_v53 = vsel %vm415_vm7, %v1558_v61, %v1559_v48 }
 0x1b2   :  { %v1562_v52 = vadd.f32 %v1560_v53, %v1518_v17 }
 0x1b3   :  { %1673 = vrot.lane.b32.xlu1 %v1573_v43, %s1997_s12 }
 0x1b4   :  { %1642 = vrot.lane.b32.xlu0 %v1562_v52, %s1997_s12 }
 0x1b7   :  { %1620 = vrot.lane.b32.xlu1 %v1609_v40, %s3547_s5 }
 0x1b8   :  { %1584 = vrot.lane.b32.xlu0 %v1899_v22, %s3547_s5 }
 0x1bb   :  { %1682 = vrot.lane.b32.xlu1 %v1671_v39, %s3547_s5 }
 0x1bc   :  { %1651 = vrot.lane.b32.xlu0 %v1640_v30, %s3547_s5 }
 0x1ce   :  { %s1871_s21 = spop %1870 }
 0x1cf   :  { %v1590_v10 = vstv %s1871_s21 }
 0x1d0   :  { %v1634_v45 = vmul.f32 %v1618_v27, %v1590_v10  ;;  %v1599_v13 = vmul.f32 %v1590_v10, %v1582_v8  ;;  %v1696_v14 = vmul.f32 %v1680_v37, %v1590_v10  ;;  %v1665_v28 = vmul.f32 %v1649_v51, %v1590_v10 }
 0x1d2   :  { %v1635_v3 = vadd.f32 1.0, %v1634_v45  ;;  %v1600_v6 = vadd.f32 1.0, %v1599_v13  ;;  %v1697_v20 = vadd.f32 1.0, %v1696_v14  ;;  %v1666_v23 = vadd.f32 1.0, %v1665_v28 }
 0x1d4   :  { %1889 = vrcp.f32 %v1635_v3 }
 0x1d5   :  { %1891 = vrcp.f32 %v1600_v6 }
 0x1d6   :  { %1893 = vrcp.f32 %v1697_v20 }
 0x1d7   :  { %1895 = vrcp.f32 %v1666_v23 }
 0x1de   :  { %v1890_v38 = vpop.eup %1889 }
 0x1df   :  { %v1892_v17 = vpop.eup %1891 }
 0x221   :  { %v1612_v2 = vpop.permute.xlu1 %1611 }
 0x222   :  { %v1613_v29 = vrot.slane %v1612_v2, 6  ;;  %v1576_v24 = vpop.permute.xlu0 %1575 }
 0x223   :  { %v1577_v60 = vrot.slane %v1576_v24, 6 }
 0x224   :  { %v1614_v54 = vsel %vm1578_vm8, %v1613_v29, %v1612_v2  ;;  %v1894_v2 = vpop.eup %1893 }
 0x225   :  { %v1616_v63 = vsub.f32 %v1609_v40, %v1614_v54  ;;  %v1579_v9 = vsel %vm1578_vm8, %v1577_v60, %v1576_v24  ;;  %v1674_v4 = vpop.permute.xlu1 %1673  ;;  %v1896_v54 = vpop.eup %1895 }
 0x226   :  { %v1581_v47 = vsub.f32 %v1899_v22, %v1579_v9  ;;  %v1675_v32 = vrot.slane %v1674_v4, 6  ;;  %v1643_v50 = vpop.permute.xlu0 %1642 }
 0x227   :  { %v1644_v5 = vrot.slane %v1643_v50, 6  ;;  %1628 = vrot.lane.b32.xlu1 %v1616_v63, %s3547_s5 }
 0x228   :  { %v1676_v15 = vsel %vm1578_vm8, %v1675_v32, %v1674_v4  ;;  %1593 = vrot.lane.b32.xlu0 %v1581_v47, %s3547_s5 }
 0x229   :  { %v1678_v31 = vsub.f32 %v1671_v39, %v1676_v15  ;;  %v1645_v35 = vsel %vm1578_vm8, %v1644_v5, %v1643_v50  ;;  %v1621_v0 = vpop.permute.xlu1 %1620 }
 0x22a   :  { %v1647_v7 = vsub.f32 %v1640_v30, %v1645_v35  ;;  %v1585_v33 = vpop.permute.xlu0 %1584  ;;  %v1622_v57 = vrot.slane %v1621_v0, 2 }
 0x22b   :  { %1690 = vrot.lane.b32.xlu1 %v1678_v31, %s3547_s5  ;;  %v1586_v41 = vrot.slane %v1585_v33, 2 }
 0x22c   :  { %1659 = vrot.lane.b32.xlu0 %v1647_v7, %s3547_s5  ;;  %v1623_v46 = vsel %vm235_vm3, %v1621_v0, %v1622_v57  ;;  %s1998_s5 = smov [#allocation9]  }
 0x22d   :  { %v1683_v1 = vpop.permute.xlu1 %1682  ;;  %v1587_v26 = vsel %vm235_vm3, %v1585_v33, %v1586_v41  ;;  %v1625_v18 = vmul.f32 %v1623_v46, %v1618_v27  ;;  %s1707_s23 = sshll.u32 %s1998_s5, 4  ;;  %s1708_s23 = int_to_ptr.vmem [resolvable:$true] %s1707_s23 }
 0x22e   :  { %v1652_v59 = vpop.permute.xlu0 %1651  ;;  %v1684_v58 = vrot.slane %v1683_v1, 2  ;;  %v1589_v19 = vmul.f32 %v1587_v26, %v1582_v8  ;;  %s1954_s22 = scalar_lea.vmem %s1708_s23, 384  ;;  %p1959_p6 = scmp.lt.s32.totalorder %s1708_s23, %s1708_s23 }
 0x22f   :  { %v1653_v21 = vrot.slane %v1652_v59, 2  ;;  %v1626_v62 = vmul.f32 %v1625_v18, %v1590_v10  ;;  %p1955_p5 = scmp.ne.s32.totalorder %s1708_s23, %s1954_s22  ;;  %p1960_p7 = scmp.lt.s32.totalorder %s1954_s22, %s1954_s22 }
 0x230   :  { %v1685_v36 = vsel %vm235_vm3, %v1683_v1, %v1684_v58  ;;  %v1591_v48 = vmul.f32 %v1590_v10, %v1589_v19 }
 0x231   :  { %v1654_v49 = vsel %vm235_vm3, %v1652_v59, %v1653_v21  ;;  %v1687_v44 = vmul.f32 %v1685_v36, %v1680_v37  ;;  %p1961_p8 = por %p1960_p7, %p1959_p6 }
 0x232   :  { %v1656_v61 = vmul.f32 %v1654_v49, %v1649_v51 }
 0x233   :  { %v1688_v30 = vmul.f32 %v1687_v44, %v1590_v10  ;;  %p1962_p9 = pnand %p1961_p8, %p1955_p5 }
 0x234   :  { %v1657_v60 = vmul.f32 %v1656_v61, %v1590_v10 }
 0x299   :  { %v1629_v11 = vpop.permute.xlu1 %1628 }
 0x29a   :  { %v1630_v25 = vrot.slane %v1629_v11, 2  ;;  %v1594_v34 = vpop.permute.xlu0 %1593 }
 0x29b   :  { %v1595_v42 = vrot.slane %v1594_v34, 2 }
 0x29c   :  { %v1631_v55 = vsel %vm235_vm3, %v1629_v11, %v1630_v25 }
 0x29d   :  { %v1633_v12 = vadd.f32 %v1631_v55, %v1626_v62  ;;  %v1596_v43 = vsel %vm235_vm3, %v1594_v34, %v1595_v42  ;;  %v1691_v53 = vpop.permute.xlu1 %1690 }
 0x29e   :  { %v1598_v52 = vadd.f32 %v1596_v43, %v1591_v48  ;;  %v1692_v16 = vrot.slane %v1691_v53, 2  ;;  %v1660_v40 = vpop.permute.xlu0 %1659 }
 0x29f   :  { %v1637_v39 = vmul.f32 %v1890_v38, %v1633_v12  ;;  %v1661_v56 = vrot.slane %v1660_v40, 2 }
 0x2a0   :  { %v1602_v29 = vmul.f32 %v1892_v17, %v1598_v52  ;;  %v1693_v24 = vsel %vm235_vm3, %v1691_v53, %v1692_v16 }
 0x2a1   :  { %v1695_v63 = vadd.f32 %v1693_v24, %v1688_v30  ;;  %v1662_v9 = vsel %vm235_vm3, %v1660_v40, %v1661_v56  ;;  %1639 = vst.msk [vmem:[#allocation9 + $0x6] sm:$0x3f] %vm3473_vm13, %v1637_v39 }
 0x2a2   :  { %v1664_v4 = vadd.f32 %v1662_v9, %v1657_v60  ;;  %1608 = vst.msk [vmem:[#allocation9] sm:$0x3f] %vm3473_vm13, %v1602_v29 }
 0x2a3   :  { %v1699_v47 = vmul.f32 %v1894_v2, %v1695_v63 }
 0x2a4   :  { %v1668_v32 = vmul.f32 %v1896_v54, %v1664_v4 }
 0x2a5   :  { %1701 = vst.msk [vmem:[#allocation9 + $0x12] sm:$0x3f] %vm3473_vm13, %v1699_v47 }
 0x2a6   :  { %1670 = vst.msk [vmem:[#allocation9 + $0xc] sm:$0x3f] %vm3473_vm13, %v1668_v32 }
 0x2a7   :  { %1965 = shalt.err (!%p1962_p9)
}
 0x2a8   :  { %s3610_s9 = sld [smem:[#allocation29_spill]] }
 0x2ae   :  { %s1966_s8 = scalar_lea.hbm %s3610_s9, 384 }
 0x2af   :  { %p1967_p10 = scmp.ne.s32.totalorder %s3610_s9, %s1966_s8  ;;  %p1970_p11 = scmp.lt.u32.totalorder %s1966_s8, %s3610_s9 }
 0x2b1   :  { %p1972_p12 = pnand %p1970_p11, %p1967_p10 }
 0x2b3   :  { %1975 = shalt.err (!%p1972_p12)
}
 0x2b4   :  { %s3611_s2 = smov 6   ;;  %s3612_s29 = smov 96  }
 0x2b5   :  { %1713 = dma.vmem_to_hbm [thread:$0]  %s1708_s23, 384, %s3610_s9, [#allocation4], %s3612_s29, %s3612_s29, %s3611_s2  }
 0x2b6   :  { %1982 = dma.done.wait [#allocation4], 384  }
 0x2b7   :  { %1983 = vsyncadd [#allocation4], 4294966912 }
 0x2b8   :  { %1717 = vsyncpa [#allocation3], 1 }
 0x2b9   :  { %1718 = vsyncpa [#allocation8], 1 }
 0x2ba   :  { %1719 = vsyncpa [#allocation4], 1 }
 0x2bb   :  { %1720 = vsyncpa [#allocation5], 1 }

</bundles_post_ra>
